<compile_context>
chip_gen: v5e
topology: v5e:2x2
jax: 0.10.0
libtpu: 0.0.40
codegen_flags: <defaults>
</compile_context>

<pallas_src>
import jax
import jax.numpy as jnp
import numpy as np
from jax.experimental import pallas as pl
from jax.experimental.pallas import tpu as pltpu  # noqa: F401  (imported for completeness)

# ----- small, deterministic ViT configuration (scaled-down vit_*_patchP) -----
BATCH = 2
IN_CH = 4
IMG = 16
PATCH = 4
N_PATCH = (IMG // PATCH) ** 2          # 16 patches
PATCH_DIM = IN_CH * PATCH * PATCH      # 64
EMBED = 32
NUM_HEADS = 4
HEAD_DIM = EMBED // NUM_HEADS          # 8
DEPTH = 2
MLP_HIDDEN = 4 * EMBED                 # 128
SEQ = N_PATCH + 1                      # 17 = [CLS] + patches
SEQ_PAD = 24                           # SEQ rounded up to a multiple of 8 (sublane alignment)
TOK = BATCH * SEQ_PAD                  # 48 rows in the folded token slab
LN_EPS = 1e-6

# ---- packed weight slab layout (f32, lane width 128) ----
W_LANES = 128
W_PATCH_ROW = 0                                     # wp:    rows [0,64)   lanes [0,32)
LAYER_W_ROWS = 3 * EMBED + MLP_HIDDEN               # 224 = qkvw 32 + projw 32 + fc1w 32 + fc2w 128
W_LAYER_ROW = PATCH_DIM                             # 64
W_ROWS = W_LAYER_ROW + DEPTH * LAYER_W_ROWS         # 512

# ---- packed vector slab layout (f32, lane width 128) ----
V_LANES = 128
ADD_ROW = 0                                         # additive CLS/pos/bias table: [TOK, 0:EMBED]
MASK_ROW = TOK                                      # 48: block-diag attention mask [TOK, 0:TOK]
VEC_ROW = MASK_ROW + TOK                            # 96: per-layer LN params / biases
VEC_PER_LAYER = 8
LNF_ROW = VEC_ROW + DEPTH * VEC_PER_LAYER           # 112: final LN weight / bias
V_ROWS = 120                                        # padded to a multiple of 8


def _ln(x, w, b):
    """LayerNorm over the last axis. x: [..., D], w/b broadcastable to x."""
    mu = jnp.mean(x, axis=-1, keepdims=True)
    var = jnp.mean(jnp.square(x - mu), axis=-1, keepdims=True)
    return (x - mu) * jax.lax.rsqrt(var + LN_EPS) * w + b


def _softmax(x):
    # exact softmax (review: approx reciprocal consumed most of the tolerance budget)
    m = jnp.max(x, axis=-1, keepdims=True)
    e = jnp.exp(x - m)
    return e / jnp.sum(e, axis=-1, keepdims=True)


def _gelu(x):
    # TODO(synk): timm default GELU is exact-erf; tanh approximation used for TPU-friendly lowering.
    return 0.5 * x * (1.0 + jnp.tanh(0.7978845608028654 * (x + 0.044715 * x * x * x)))


# --------------------------- Pallas kernel -----------------------------------
def vit_forward_kernel(tok_ref, w_ref, v_ref, out_ref):
    # tok_ref: [TOK, PATCH_DIM]  per-batch rows = [zero CLS patch, 16 patches, 7 zero pads]
    # w_ref:   [W_ROWS, 128]     packed matmul weights
    # v_ref:   [V_ROWS, 128]     packed add-table / attention mask / LN params / biases
    # out_ref: [TOK, EMBED]
    scale = HEAD_DIM ** -0.5

    # patch embedding for the whole folded batch slab in one MXU pass; CLS token, positional
    # embedding and patch-embed bias come in via a precomputed additive table (no concat).
    x = jnp.dot(tok_ref[...], w_ref[W_PATCH_ROW:W_PATCH_ROW + PATCH_DIM, 0:EMBED],
                preferred_element_type=jnp.float32)
    x = x + v_ref[ADD_ROW:ADD_ROW + TOK, 0:EMBED]

    # block-diagonal additive mask (also -1e30 on padded key columns); loaded once, reused.
    mask = v_ref[MASK_ROW:MASK_ROW + TOK, 0:TOK]

    for l in range(DEPTH):  # static unroll over layers; weights loaded at point of use
        wb = W_LAYER_ROW + l * LAYER_W_ROWS
        vb = VEC_ROW + l * VEC_PER_LAYER

        # ---- multi-head self-attention (pre-LN), batch folded along sublanes ----
        h = _ln(x, v_ref[vb + 0:vb + 1, 0:EMBED], v_ref[vb + 1:vb + 2, 0:EMBED])
        qkv = jnp.dot(h, w_ref[wb:wb + EMBED, 0:3 * EMBED],
                      preferred_element_type=jnp.float32) + v_ref[vb + 2:vb + 3, 0:3 * EMBED]
        q_all = qkv[:, 0:EMBED] * scale
        k_all = qkv[:, EMBED:2 * EMBED]
        v_all = qkv[:, 2 * EMBED:3 * EMBED]
        kT = k_all.T                      # one XLU transpose per layer (not per head)

        heads = []
        for hd in range(NUM_HEADS):
            lo, hi = hd * HEAD_DIM, (hd + 1) * HEAD_DIM
            s = jnp.dot(q_all[:, lo:hi], kT[lo:hi, :],
                        preferred_element_type=jnp.float32) + mask
            p = _softmax(s)
            heads.append(jnp.dot(p, v_all[:, lo:hi],
                                 preferred_element_type=jnp.float32))
        attn = jnp.concatenate(heads, axis=-1)          # stays in vregs
        attn = jnp.dot(attn, w_ref[wb + EMBED:wb + 2 * EMBED, 0:EMBED],
                       preferred_element_type=jnp.float32) + v_ref[vb + 3:vb + 4, 0:EMBED]
        x = x + attn

        # ---- MLP ----
        h = _ln(x, v_ref[vb + 4:vb + 5, 0:EMBED], v_ref[vb + 5:vb + 6, 0:EMBED])
        m = jnp.dot(h, w_ref[wb + 2 * EMBED:wb + 3 * EMBED, 0:MLP_HIDDEN],
                    preferred_element_type=jnp.float32) + v_ref[vb + 6:vb + 7, 0:MLP_HIDDEN]
        m = _gelu(m)
        m = jnp.dot(m, w_ref[wb + 3 * EMBED:wb + 3 * EMBED + MLP_HIDDEN, 0:EMBED],
                    preferred_element_type=jnp.float32) + v_ref[vb + 7:vb + 8, 0:EMBED]
        x = x + m

    # final LayerNorm; single aligned 2D slab store (padded rows dropped wrapper-side)
    out_ref[...] = _ln(x, v_ref[LNF_ROW:LNF_ROW + 1, 0:EMBED],
                       v_ref[LNF_ROW + 1:LNF_ROW + 2, 0:EMBED])


# ------------------------------ wrapper ---------------------------------------
def _extract_patches(x_nchw):
    B, C, H, W = x_nchw.shape
    hp, wpn = H // PATCH, W // PATCH
    xp = x_nchw.reshape(B, C, hp, PATCH, wpn, PATCH).transpose(0, 2, 4, 1, 3, 5)
    return xp.reshape(B, hp * wpn, C * PATCH * PATCH)


def _pad_tokens(patches):
    """[B, N_PATCH, PATCH_DIM] -> [B*SEQ_PAD, PATCH_DIM]; row 0 per batch is a zero CLS patch."""
    B = patches.shape[0]
    slab = jnp.zeros((B, SEQ_PAD, PATCH_DIM), patches.dtype)
    slab = slab.at[:, 1:1 + N_PATCH, :].set(patches)
    return slab.reshape(B * SEQ_PAD, PATCH_DIM)


def prepare_params(params):
    """One-time parameter prep: pack the 18 tensors into two contiguous [rows,128] f32 slabs."""
    (wp, bp, cls, pos, ln1w, ln1b, qkvw, qkvb, projw, projb,
     ln2w, ln2b, fc1w, fc1b, fc2w, fc2b, lnfw, lnfb) = [np.asarray(p) for p in params]

    wslab = np.zeros((W_ROWS, W_LANES), np.float32)
    wslab[W_PATCH_ROW:W_PATCH_ROW + PATCH_DIM, 0:EMBED] = wp
    for l in range(DEPTH):
        b0 = W_LAYER_ROW + l * LAYER_W_ROWS
        wslab[b0:b0 + EMBED, 0:3 * EMBED] = qkvw[l]
        wslab[b0 + EMBED:b0 + 2 * EMBED, 0:EMBED] = projw[l]
        wslab[b0 + 2 * EMBED:b0 + 3 * EMBED, 0:MLP_HIDDEN] = fc1w[l]
        wslab[b0 + 3 * EMBED:b0 + 3 * EMBED + MLP_HIDDEN, 0:EMBED] = fc2w[l]

    vslab = np.zeros((V_ROWS, V_LANES), np.float32)
    # additive table: CLS + pos[0] on row 0, bp + pos[1:] on the patch rows, zeros on padding
    add = np.zeros((SEQ_PAD, EMBED), np.float32)
    add[0, :] = cls[0] + pos[0]
    add[1:SEQ, :] = bp[0] + pos[1:]
    vslab[ADD_ROW:ADD_ROW + TOK, 0:EMBED] = np.tile(add, (BATCH, 1))
    # block-diagonal attention mask; padded key columns get -1e30
    mask = np.full((TOK, TOK), -1e30, np.float32)
    for b in range(BATCH):
        r0 = b * SEQ_PAD
        mask[r0:r0 + SEQ_PAD, r0:r0 + SEQ] = 0.0
    vslab[MASK_ROW:MASK_ROW + TOK, 0:TOK] = mask
    # per-layer LN params / biases
    for l in range(DEPTH):
        vb = VEC_ROW + l * VEC_PER_LAYER
        vslab[vb + 0, 0:EMBED] = ln1w[l]
        vslab[vb + 1, 0:EMBED] = ln1b[l]
        vslab[vb + 2, 0:3 * EMBED] = qkvb[l]
        vslab[vb + 3, 0:EMBED] = projb[l]
        vslab[vb + 4, 0:EMBED] = ln2w[l]
        vslab[vb + 5, 0:EMBED] = ln2b[l]
        vslab[vb + 6, 0:MLP_HIDDEN] = fc1b[l]
        vslab[vb + 7, 0:EMBED] = fc2b[l]
    vslab[LNF_ROW, 0:EMBED] = lnfw[0]
    vslab[LNF_ROW + 1, 0:EMBED] = lnfb[0]
    return jnp.asarray(wslab), jnp.asarray(vslab)


def protonet_vit_forward(x_nchw, packed):
    wslab, vslab = packed
    patches = _extract_patches(x_nchw)               # [B, N_PATCH, PATCH_DIM]
    assert patches.shape[0] == BATCH
    tok_in = _pad_tokens(patches)                    # [TOK, PATCH_DIM]

    def full_spec(a):  # whole array as one block (exempt from (8,128) tiling rule)
        nd = a.ndim
        return pl.BlockSpec(a.shape, lambda i, _nd=nd: (0,) * _nd)

    out = pl.pallas_call(
        vit_forward_kernel,
        out_shape=jax.ShapeDtypeStruct((TOK, EMBED), jnp.float32),
        grid=(1,),  # single grid step; batch folded along sublanes inside the kernel
        in_specs=[full_spec(tok_in), full_spec(wslab), full_spec(vslab)],
        out_specs=pl.BlockSpec((TOK, EMBED), lambda i: (0, 0)),
    )(tok_in, wslab, vslab)

    # drop the per-batch sublane padding in the wrapper
    return out.reshape(BATCH, SEQ_PAD, EMBED)[:, :SEQ, :]


# --------------------------- pure-JAX reference --------------------------------
def vit_reference(x_nchw, params):
    patches = _extract_patches(x_nchw)
    (wp, bp, cls, pos, ln1w, ln1b, qkvw, qkvb, projw, projb,
     ln2w, ln2b, fc1w, fc1b, fc2w, fc2b, lnfw, lnfb) = params
    B = patches.shape[0]
    tok = jnp.einsum('bnc,cd->bnd', patches, wp) + bp
    x = jnp.concatenate([jnp.broadcast_to(cls[None], (B, 1, EMBED)), tok], axis=1) + pos[None]
    for l in range(DEPTH):
        h = _ln(x, ln1w[l], ln1b[l])
        qkv = jnp.einsum('bsd,de->bse', h, qkvw[l]) + qkvb[l]
        q, k, v = jnp.split(qkv, 3, axis=-1)
        q = q.reshape(B, SEQ, NUM_HEADS, HEAD_DIM) * (HEAD_DIM ** -0.5)
        k = k.reshape(B, SEQ, NUM_HEADS, HEAD_DIM)
        v = v.reshape(B, SEQ, NUM_HEADS, HEAD_DIM)
        att = _softmax(jnp.einsum('bqhd,bkhd->bhqk', q, k))
        o = jnp.einsum('bhqk,bkhd->bqhd', att, v).reshape(B, SEQ, EMBED)
        x = x + jnp.einsum('bsd,de->bse', o, projw[l]) + projb[l]
        h = _ln(x, ln2w[l], ln2b[l])
        m = _gelu(jnp.einsum('bsd,dh->bsh', h, fc1w[l]) + fc1b[l])
        x = x + jnp.einsum('bsh,hd->bsd', m, fc2w[l]) + fc2b[l]
    return _ln(x, lnfw, lnfb)


# ------------------------ deterministic parameter init -------------------------
def init_params(key):
    ks = jax.random.split(key, 8)
    w = lambda k, s: 0.02 * jax.random.normal(k, s, jnp.float32)
    wp = w(ks[0], (PATCH_DIM, EMBED))                       # conv weight flattened (c,ph,pw) x D
    bp = jnp.zeros((1, EMBED), jnp.float32)
    cls = w(ks[1], (1, EMBED))
    pos = w(ks[2], (SEQ, EMBED))
    ln1w = jnp.ones((DEPTH, EMBED), jnp.float32)
    ln1b = jnp.zeros((DEPTH, EMBED), jnp.float32)
    qkvw = w(ks[3], (DEPTH, EMBED, 3 * EMBED))
    qkvb = jnp.zeros((DEPTH, 3 * EMBED), jnp.float32)
    projw = w(ks[4], (DEPTH, EMBED, EMBED))
    projb = jnp.zeros((DEPTH, EMBED), jnp.float32)
    ln2w = jnp.ones((DEPTH, EMBED), jnp.float32)
    ln2b = jnp.zeros((DEPTH, EMBED), jnp.float32)
    fc1w = w(ks[5], (DEPTH, EMBED, MLP_HIDDEN))
    fc1b = jnp.zeros((DEPTH, MLP_HIDDEN), jnp.float32)
    fc2w = w(ks[6], (DEPTH, MLP_HIDDEN, EMBED))
    fc2b = jnp.zeros((DEPTH, EMBED), jnp.float32)
    lnfw = jnp.ones((1, EMBED), jnp.float32)
    lnfb = jnp.zeros((1, EMBED), jnp.float32)
    return (wp, bp, cls, pos, ln1w, ln1b, qkvw, qkvb, projw, projb,
            ln2w, ln2b, fc1w, fc1b, fc2w, fc2b, lnfw, lnfb)


if __name__ == "__main__":
    key = jax.random.PRNGKey(0)
    kx, kp = jax.random.split(key)
    x = jax.random.normal(kx, (BATCH, IN_CH, IMG, IMG), jnp.float32)
    params = init_params(kp)
    packed = prepare_params(params)   # one-time parameter packing (2 slabs + patches = 3 DMAs)

    out = protonet_vit_forward(x, packed)
    out = jax.block_until_ready(out)

    ref = vit_reference(x, params)
    assert out.shape == (BATCH, SEQ, EMBED)
    np.testing.assert_allclose(np.asarray(out), np.asarray(ref), rtol=2e-3, atol=2e-3)
    print("KERNEL_OK")
</pallas_src>

<mosaic_0001>
module attributes {stable_mosaic.version = 11 : i64} {
  func.func @vit_forward_kernel(%arg0: i32, %arg1: memref<48x64xf32, #tpu.memory_space<vmem>>, %arg2: memref<512x128xf32, #tpu.memory_space<vmem>>, %arg3: memref<120x128xf32, #tpu.memory_space<vmem>>, %arg4: memref<48x32xf32, #tpu.memory_space<vmem>>) attributes {dimension_semantics = [#tpu.dimension_semantics<arbitrary>], iteration_bounds = array<i64: 1>, scalar_prefetch = 0 : i64, scratch_operands = 0 : i64, tpu.core_type = #tpu.core_type<tc>, window_params = [{pipeline_mode = #tpu.pipeline_mode<synchronous>, transform_indices = @transform_0, window_bounds = array<i64: 48, 64>}, {pipeline_mode = #tpu.pipeline_mode<synchronous>, transform_indices = @transform_1, window_bounds = array<i64: 512, 128>}, {pipeline_mode = #tpu.pipeline_mode<synchronous>, transform_indices = @transform_2, window_bounds = array<i64: 120, 128>}, {pipeline_mode = #tpu.pipeline_mode<synchronous>, transform_indices = @transform_3, window_bounds = array<i64: 48, 32>}]} {
    %c0 = arith.constant 0 : index
    %c0_0 = arith.constant 0 : index
    %0 = vector.load %arg1[%c0, %c0_0] : memref<48x64xf32, #tpu.memory_space<vmem>>, vector<48x64xf32>
    %c0_1 = arith.constant 0 : index
    %c0_2 = arith.constant 0 : index
    %1 = vector.load %arg2[%c0_1, %c0_2] : memref<512x128xf32, #tpu.memory_space<vmem>>, vector<64x32xf32>
    %cst = arith.constant dense<0.000000e+00> : vector<48x32xf32>
    %2 = tpu.matmul %0, %1, %cst {dimension_numbers = #tpu.dot_dimension_numbers<[1], [0], [0], [1], [0, 0, 1, 1], [], []>} : vector<48x64xf32>, vector<64x32xf32>, vector<48x32xf32> -> vector<48x32xf32>
    %c0_3 = arith.constant 0 : index
    %c0_4 = arith.constant 0 : index
    %3 = vector.load %arg3[%c0_3, %c0_4] : memref<120x128xf32, #tpu.memory_space<vmem>>, vector<48x32xf32>
    %4 = arith.addf %2, %3 : vector<48x32xf32>
    %c48 = arith.constant 48 : index
    %c0_5 = arith.constant 0 : index
    %5 = vector.load %arg3[%c48, %c0_5] : memref<120x128xf32, #tpu.memory_space<vmem>>, vector<48x48xf32>
    %c96 = arith.constant 96 : index
    %c0_6 = arith.constant 0 : index
    %6 = vector.load %arg3[%c96, %c0_6] : memref<120x128xf32, #tpu.memory_space<vmem>>, vector<1x32xf32>
    %c97 = arith.constant 97 : index
    %c0_7 = arith.constant 0 : index
    %7 = vector.load %arg3[%c97, %c0_7] : memref<120x128xf32, #tpu.memory_space<vmem>>, vector<1x32xf32>
    %cst_8 = arith.constant dense<0.000000e+00> : vector<48xf32>
    %8 = vector.multi_reduction <add>, %4, %cst_8 [1] : vector<48x32xf32> to vector<48xf32>
    %9 = vector.shape_cast %8 : vector<48xf32> to vector<48x1xf32>
    %cst_9 = arith.constant 3.200000e+01 : f32
    %10 = vector.broadcast %cst_9 : f32 to vector<48x1xf32>
    %11 = arith.divf %9, %10 : vector<48x1xf32>
    %12 = vector.broadcast %11 : vector<48x1xf32> to vector<48x32xf32>
    %13 = arith.subf %4, %12 : vector<48x32xf32>
    %14 = arith.mulf %13, %13 : vector<48x32xf32>
    %cst_10 = arith.constant dense<0.000000e+00> : vector<48xf32>
    %15 = vector.multi_reduction <add>, %14, %cst_10 [1] : vector<48x32xf32> to vector<48xf32>
    %16 = vector.shape_cast %15 : vector<48xf32> to vector<48x1xf32>
    %cst_11 = arith.constant 3.200000e+01 : f32
    %17 = vector.broadcast %cst_11 : f32 to vector<48x1xf32>
    %18 = arith.divf %16, %17 : vector<48x1xf32>
    %19 = vector.broadcast %11 : vector<48x1xf32> to vector<48x32xf32>
    %20 = arith.subf %4, %19 : vector<48x32xf32>
    %cst_12 = arith.constant 9.99999997E-7 : f32
    %21 = vector.broadcast %cst_12 : f32 to vector<48x1xf32>
    %22 = arith.addf %18, %21 : vector<48x1xf32>
    %23 = math.rsqrt %22 : vector<48x1xf32>
    %24 = vector.broadcast %23 : vector<48x1xf32> to vector<48x32xf32>
    %25 = arith.mulf %20, %24 : vector<48x32xf32>
    %26 = vector.broadcast %6 : vector<1x32xf32> to vector<48x32xf32>
    %27 = arith.mulf %25, %26 : vector<48x32xf32>
    %28 = vector.broadcast %7 : vector<1x32xf32> to vector<48x32xf32>
    %29 = arith.addf %27, %28 : vector<48x32xf32>
    %c64 = arith.constant 64 : index
    %c0_13 = arith.constant 0 : index
    %30 = vector.load %arg2[%c64, %c0_13] : memref<512x128xf32, #tpu.memory_space<vmem>>, vector<32x96xf32>
    %cst_14 = arith.constant dense<0.000000e+00> : vector<48x96xf32>
    %31 = tpu.matmul %29, %30, %cst_14 {dimension_numbers = #tpu.dot_dimension_numbers<[1], [0], [0], [1], [0, 0, 1, 1], [], []>} : vector<48x32xf32>, vector<32x96xf32>, vector<48x96xf32> -> vector<48x96xf32>
    %c98 = arith.constant 98 : index
    %c0_15 = arith.constant 0 : index
    %32 = vector.load %arg3[%c98, %c0_15] : memref<120x128xf32, #tpu.memory_space<vmem>>, vector<1x96xf32>
    %33 = vector.broadcast %32 : vector<1x96xf32> to vector<48x96xf32>
    %34 = arith.addf %31, %33 : vector<48x96xf32>
    %35 = vector.extract_strided_slice %34 {offsets = [0, 0], sizes = [48, 32], strides = [1, 1]} : vector<48x96xf32> to vector<48x32xf32>
    %cst_16 = arith.constant 0.353553385 : f32
    %36 = vector.broadcast %cst_16 : f32 to vector<48x32xf32>
    %37 = arith.mulf %35, %36 : vector<48x32xf32>
    %38 = vector.extract_strided_slice %34 {offsets = [0, 32], sizes = [48, 32], strides = [1, 1]} : vector<48x96xf32> to vector<48x32xf32>
    %39 = vector.extract_strided_slice %34 {offsets = [0, 64], sizes = [48, 32], strides = [1, 1]} : vector<48x96xf32> to vector<48x32xf32>
    %40 = tpu.transpose %38, [1, 0] : vector<48x32xf32> -> vector<32x48xf32>
    %41 = vector.extract_strided_slice %37 {offsets = [0, 0], sizes = [48, 8], strides = [1, 1]} : vector<48x32xf32> to vector<48x8xf32>
    %42 = vector.extract_strided_slice %40 {offsets = [0, 0], sizes = [8, 48], strides = [1, 1]} : vector<32x48xf32> to vector<8x48xf32>
    %cst_17 = arith.constant dense<0.000000e+00> : vector<48x48xf32>
    %43 = tpu.matmul %41, %42, %cst_17 {dimension_numbers = #tpu.dot_dimension_numbers<[1], [0], [0], [1], [0, 0, 1, 1], [], []>} : vector<48x8xf32>, vector<8x48xf32>, vector<48x48xf32> -> vector<48x48xf32>
    %44 = arith.addf %43, %5 : vector<48x48xf32>
    %cst_18 = arith.constant dense<0xFF800000> : vector<48xf32>
    %45 = vector.multi_reduction <maximumf>, %44, %cst_18 [1] : vector<48x48xf32> to vector<48xf32>
    %46 = vector.shape_cast %45 : vector<48xf32> to vector<48x1xf32>
    %47 = vector.broadcast %46 : vector<48x1xf32> to vector<48x48xf32>
    %48 = arith.subf %44, %47 : vector<48x48xf32>
    %49 = math.exp %48 : vector<48x48xf32>
    %cst_19 = arith.constant dense<0.000000e+00> : vector<48xf32>
    %50 = vector.multi_reduction <add>, %49, %cst_19 [1] : vector<48x48xf32> to vector<48xf32>
    %51 = vector.shape_cast %50 : vector<48xf32> to vector<48x1xf32>
    %52 = vector.broadcast %51 : vector<48x1xf32> to vector<48x48xf32>
    %53 = arith.divf %49, %52 : vector<48x48xf32>
    %54 = vector.extract_strided_slice %39 {offsets = [0, 0], sizes = [48, 8], strides = [1, 1]} : vector<48x32xf32> to vector<48x8xf32>
    %cst_20 = arith.constant dense<0.000000e+00> : vector<48x8xf32>
    %55 = tpu.matmul %53, %54, %cst_20 {dimension_numbers = #tpu.dot_dimension_numbers<[1], [0], [0], [1], [0, 0, 1, 1], [], []>} : vector<48x48xf32>, vector<48x8xf32>, vector<48x8xf32> -> vector<48x8xf32>
    %56 = vector.extract_strided_slice %37 {offsets = [0, 8], sizes = [48, 8], strides = [1, 1]} : vector<48x32xf32> to vector<48x8xf32>
    %57 = vector.extract_strided_slice %40 {offsets = [8, 0], sizes = [8, 48], strides = [1, 1]} : vector<32x48xf32> to vector<8x48xf32>
    %cst_21 = arith.constant dense<0.000000e+00> : vector<48x48xf32>
    %58 = tpu.matmul %56, %57, %cst_21 {dimension_numbers = #tpu.dot_dimension_numbers<[1], [0], [0], [1], [0, 0, 1, 1], [], []>} : vector<48x8xf32>, vector<8x48xf32>, vector<48x48xf32> -> vector<48x48xf32>
    %59 = arith.addf %58, %5 : vector<48x48xf32>
    %cst_22 = arith.constant dense<0xFF800000> : vector<48xf32>
    %60 = vector.multi_reduction <maximumf>, %59, %cst_22 [1] : vector<48x48xf32> to vector<48xf32>
    %61 = vector.shape_cast %60 : vector<48xf32> to vector<48x1xf32>
    %62 = vector.broadcast %61 : vector<48x1xf32> to vector<48x48xf32>
    %63 = arith.subf %59, %62 : vector<48x48xf32>
    %64 = math.exp %63 : vector<48x48xf32>
    %cst_23 = arith.constant dense<0.000000e+00> : vector<48xf32>
    %65 = vector.multi_reduction <add>, %64, %cst_23 [1] : vector<48x48xf32> to vector<48xf32>
    %66 = vector.shape_cast %65 : vector<48xf32> to vector<48x1xf32>
    %67 = vector.broadcast %66 : vector<48x1xf32> to vector<48x48xf32>
    %68 = arith.divf %64, %67 : vector<48x48xf32>
    %69 = vector.extract_strided_slice %39 {offsets = [0, 8], sizes = [48, 8], strides = [1, 1]} : vector<48x32xf32> to vector<48x8xf32>
    %cst_24 = arith.constant dense<0.000000e+00> : vector<48x8xf32>
    %70 = tpu.matmul %68, %69, %cst_24 {dimension_numbers = #tpu.dot_dimension_numbers<[1], [0], [0], [1], [0, 0, 1, 1], [], []>} : vector<48x48xf32>, vector<48x8xf32>, vector<48x8xf32> -> vector<48x8xf32>
    %71 = vector.extract_strided_slice %37 {offsets = [0, 16], sizes = [48, 8], strides = [1, 1]} : vector<48x32xf32> to vector<48x8xf32>
    %72 = vector.extract_strided_slice %40 {offsets = [16, 0], sizes = [8, 48], strides = [1, 1]} : vector<32x48xf32> to vector<8x48xf32>
    %cst_25 = arith.constant dense<0.000000e+00> : vector<48x48xf32>
    %73 = tpu.matmul %71, %72, %cst_25 {dimension_numbers = #tpu.dot_dimension_numbers<[1], [0], [0], [1], [0, 0, 1, 1], [], []>} : vector<48x8xf32>, vector<8x48xf32>, vector<48x48xf32> -> vector<48x48xf32>
    %74 = arith.addf %73, %5 : vector<48x48xf32>
    %cst_26 = arith.constant dense<0xFF800000> : vector<48xf32>
    %75 = vector.multi_reduction <maximumf>, %74, %cst_26 [1] : vector<48x48xf32> to vector<48xf32>
    %76 = vector.shape_cast %75 : vector<48xf32> to vector<48x1xf32>
    %77 = vector.broadcast %76 : vector<48x1xf32> to vector<48x48xf32>
    %78 = arith.subf %74, %77 : vector<48x48xf32>
    %79 = math.exp %78 : vector<48x48xf32>
    %cst_27 = arith.constant dense<0.000000e+00> : vector<48xf32>
    %80 = vector.multi_reduction <add>, %79, %cst_27 [1] : vector<48x48xf32> to vector<48xf32>
    %81 = vector.shape_cast %80 : vector<48xf32> to vector<48x1xf32>
    %82 = vector.broadcast %81 : vector<48x1xf32> to vector<48x48xf32>
    %83 = arith.divf %79, %82 : vector<48x48xf32>
    %84 = vector.extract_strided_slice %39 {offsets = [0, 16], sizes = [48, 8], strides = [1, 1]} : vector<48x32xf32> to vector<48x8xf32>
    %cst_28 = arith.constant dense<0.000000e+00> : vector<48x8xf32>
    %85 = tpu.matmul %83, %84, %cst_28 {dimension_numbers = #tpu.dot_dimension_numbers<[1], [0], [0], [1], [0, 0, 1, 1], [], []>} : vector<48x48xf32>, vector<48x8xf32>, vector<48x8xf32> -> vector<48x8xf32>
    %86 = vector.extract_strided_slice %37 {offsets = [0, 24], sizes = [48, 8], strides = [1, 1]} : vector<48x32xf32> to vector<48x8xf32>
    %87 = vector.extract_strided_slice %40 {offsets = [24, 0], sizes = [8, 48], strides = [1, 1]} : vector<32x48xf32> to vector<8x48xf32>
    %cst_29 = arith.constant dense<0.000000e+00> : vector<48x48xf32>
    %88 = tpu.matmul %86, %87, %cst_29 {dimension_numbers = #tpu.dot_dimension_numbers<[1], [0], [0], [1], [0, 0, 1, 1], [], []>} : vector<48x8xf32>, vector<8x48xf32>, vector<48x48xf32> -> vector<48x48xf32>
    %89 = arith.addf %88, %5 : vector<48x48xf32>
    %cst_30 = arith.constant dense<0xFF800000> : vector<48xf32>
    %90 = vector.multi_reduction <maximumf>, %89, %cst_30 [1] : vector<48x48xf32> to vector<48xf32>
    %91 = vector.shape_cast %90 : vector<48xf32> to vector<48x1xf32>
    %92 = vector.broadcast %91 : vector<48x1xf32> to vector<48x48xf32>
    %93 = arith.subf %89, %92 : vector<48x48xf32>
    %94 = math.exp %93 : vector<48x48xf32>
    %cst_31 = arith.constant dense<0.000000e+00> : vector<48xf32>
    %95 = vector.multi_reduction <add>, %94, %cst_31 [1] : vector<48x48xf32> to vector<48xf32>
    %96 = vector.shape_cast %95 : vector<48xf32> to vector<48x1xf32>
    %97 = vector.broadcast %96 : vector<48x1xf32> to vector<48x48xf32>
    %98 = arith.divf %94, %97 : vector<48x48xf32>
    %99 = vector.extract_strided_slice %39 {offsets = [0, 24], sizes = [48, 8], strides = [1, 1]} : vector<48x32xf32> to vector<48x8xf32>
    %cst_32 = arith.constant dense<0.000000e+00> : vector<48x8xf32>
    %100 = tpu.matmul %98, %99, %cst_32 {dimension_numbers = #tpu.dot_dimension_numbers<[1], [0], [0], [1], [0, 0, 1, 1], [], []>} : vector<48x48xf32>, vector<48x8xf32>, vector<48x8xf32> -> vector<48x8xf32>
    %101 = tpu.concatenate %55, %70, %85, %100 in 1 : vector<48x8xf32>, vector<48x8xf32>, vector<48x8xf32>, vector<48x8xf32> -> vector<48x32xf32>
    %c96_33 = arith.constant 96 : index
    %c0_34 = arith.constant 0 : index
    %102 = vector.load %arg2[%c96_33, %c0_34] : memref<512x128xf32, #tpu.memory_space<vmem>>, vector<32x32xf32>
    %cst_35 = arith.constant dense<0.000000e+00> : vector<48x32xf32>
    %103 = tpu.matmul %101, %102, %cst_35 {dimension_numbers = #tpu.dot_dimension_numbers<[1], [0], [0], [1], [0, 0, 1, 1], [], []>} : vector<48x32xf32>, vector<32x32xf32>, vector<48x32xf32> -> vector<48x32xf32>
    %c99 = arith.constant 99 : index
    %c0_36 = arith.constant 0 : index
    %104 = vector.load %arg3[%c99, %c0_36] : memref<120x128xf32, #tpu.memory_space<vmem>>, vector<1x32xf32>
    %105 = vector.broadcast %104 : vector<1x32xf32> to vector<48x32xf32>
    %106 = arith.addf %103, %105 : vector<48x32xf32>
    %107 = arith.addf %4, %106 : vector<48x32xf32>
    %c100 = arith.constant 100 : index
    %c0_37 = arith.constant 0 : index
    %108 = vector.load %arg3[%c100, %c0_37] : memref<120x128xf32, #tpu.memory_space<vmem>>, vector<1x32xf32>
    %c101 = arith.constant 101 : index
    %c0_38 = arith.constant 0 : index
    %109 = vector.load %arg3[%c101, %c0_38] : memref<120x128xf32, #tpu.memory_space<vmem>>, vector<1x32xf32>
    %cst_39 = arith.constant dense<0.000000e+00> : vector<48xf32>
    %110 = vector.multi_reduction <add>, %107, %cst_39 [1] : vector<48x32xf32> to vector<48xf32>
    %111 = vector.shape_cast %110 : vector<48xf32> to vector<48x1xf32>
    %cst_40 = arith.constant 3.200000e+01 : f32
    %112 = vector.broadcast %cst_40 : f32 to vector<48x1xf32>
    %113 = arith.divf %111, %112 : vector<48x1xf32>
    %114 = vector.broadcast %113 : vector<48x1xf32> to vector<48x32xf32>
    %115 = arith.subf %107, %114 : vector<48x32xf32>
    %116 = arith.mulf %115, %115 : vector<48x32xf32>
    %cst_41 = arith.constant dense<0.000000e+00> : vector<48xf32>
    %117 = vector.multi_reduction <add>, %116, %cst_41 [1] : vector<48x32xf32> to vector<48xf32>
    %118 = vector.shape_cast %117 : vector<48xf32> to vector<48x1xf32>
    %cst_42 = arith.constant 3.200000e+01 : f32
    %119 = vector.broadcast %cst_42 : f32 to vector<48x1xf32>
    %120 = arith.divf %118, %119 : vector<48x1xf32>
    %121 = vector.broadcast %113 : vector<48x1xf32> to vector<48x32xf32>
    %122 = arith.subf %107, %121 : vector<48x32xf32>
    %cst_43 = arith.constant 9.99999997E-7 : f32
    %123 = vector.broadcast %cst_43 : f32 to vector<48x1xf32>
    %124 = arith.addf %120, %123 : vector<48x1xf32>
    %125 = math.rsqrt %124 : vector<48x1xf32>
    %126 = vector.broadcast %125 : vector<48x1xf32> to vector<48x32xf32>
    %127 = arith.mulf %122, %126 : vector<48x32xf32>
    %128 = vector.broadcast %108 : vector<1x32xf32> to vector<48x32xf32>
    %129 = arith.mulf %127, %128 : vector<48x32xf32>
    %130 = vector.broadcast %109 : vector<1x32xf32> to vector<48x32xf32>
    %131 = arith.addf %129, %130 : vector<48x32xf32>
    %c128 = arith.constant 128 : index
    %c0_44 = arith.constant 0 : index
    %132 = vector.load %arg2[%c128, %c0_44] : memref<512x128xf32, #tpu.memory_space<vmem>>, vector<32x128xf32>
    %cst_45 = arith.constant dense<0.000000e+00> : vector<48x128xf32>
    %133 = tpu.matmul %131, %132, %cst_45 {dimension_numbers = #tpu.dot_dimension_numbers<[1], [0], [0], [1], [0, 0, 1, 1], [], []>} : vector<48x32xf32>, vector<32x128xf32>, vector<48x128xf32> -> vector<48x128xf32>
    %c102 = arith.constant 102 : index
    %c0_46 = arith.constant 0 : index
    %134 = vector.load %arg3[%c102, %c0_46] : memref<120x128xf32, #tpu.memory_space<vmem>>, vector<1x128xf32>
    %135 = vector.broadcast %134 : vector<1x128xf32> to vector<48x128xf32>
    %136 = arith.addf %133, %135 : vector<48x128xf32>
    %cst_47 = arith.constant 5.000000e-01 : f32
    %137 = vector.broadcast %cst_47 : f32 to vector<48x128xf32>
    %138 = arith.mulf %137, %136 : vector<48x128xf32>
    %cst_48 = arith.constant 4.471500e-02 : f32
    %139 = vector.broadcast %cst_48 : f32 to vector<48x128xf32>
    %140 = arith.mulf %139, %136 : vector<48x128xf32>
    %141 = arith.mulf %140, %136 : vector<48x128xf32>
    %142 = arith.mulf %141, %136 : vector<48x128xf32>
    %143 = arith.addf %136, %142 : vector<48x128xf32>
    %cst_49 = arith.constant 0.797884583 : f32
    %144 = vector.broadcast %cst_49 : f32 to vector<48x128xf32>
    %145 = arith.mulf %144, %143 : vector<48x128xf32>
    %146 = math.tanh %145 : vector<48x128xf32>
    %cst_50 = arith.constant 1.000000e+00 : f32
    %147 = vector.broadcast %cst_50 : f32 to vector<48x128xf32>
    %148 = arith.addf %147, %146 : vector<48x128xf32>
    %149 = arith.mulf %138, %148 : vector<48x128xf32>
    %c160 = arith.constant 160 : index
    %c0_51 = arith.constant 0 : index
    %150 = vector.load %arg2[%c160, %c0_51] : memref<512x128xf32, #tpu.memory_space<vmem>>, vector<128x32xf32>
    %cst_52 = arith.constant dense<0.000000e+00> : vector<48x32xf32>
    %151 = tpu.matmul %149, %150, %cst_52 {dimension_numbers = #tpu.dot_dimension_numbers<[1], [0], [0], [1], [0, 0, 1, 1], [], []>} : vector<48x128xf32>, vector<128x32xf32>, vector<48x32xf32> -> vector<48x32xf32>
    %c103 = arith.constant 103 : index
    %c0_53 = arith.constant 0 : index
    %152 = vector.load %arg3[%c103, %c0_53] : memref<120x128xf32, #tpu.memory_space<vmem>>, vector<1x32xf32>
    %153 = vector.broadcast %152 : vector<1x32xf32> to vector<48x32xf32>
    %154 = arith.addf %151, %153 : vector<48x32xf32>
    %155 = arith.addf %107, %154 : vector<48x32xf32>
    %c104 = arith.constant 104 : index
    %c0_54 = arith.constant 0 : index
    %156 = vector.load %arg3[%c104, %c0_54] : memref<120x128xf32, #tpu.memory_space<vmem>>, vector<1x32xf32>
    %c105 = arith.constant 105 : index
    %c0_55 = arith.constant 0 : index
    %157 = vector.load %arg3[%c105, %c0_55] : memref<120x128xf32, #tpu.memory_space<vmem>>, vector<1x32xf32>
    %cst_56 = arith.constant dense<0.000000e+00> : vector<48xf32>
    %158 = vector.multi_reduction <add>, %155, %cst_56 [1] : vector<48x32xf32> to vector<48xf32>
    %159 = vector.shape_cast %158 : vector<48xf32> to vector<48x1xf32>
    %cst_57 = arith.constant 3.200000e+01 : f32
    %160 = vector.broadcast %cst_57 : f32 to vector<48x1xf32>
    %161 = arith.divf %159, %160 : vector<48x1xf32>
    %162 = vector.broadcast %161 : vector<48x1xf32> to vector<48x32xf32>
    %163 = arith.subf %155, %162 : vector<48x32xf32>
    %164 = arith.mulf %163, %163 : vector<48x32xf32>
    %cst_58 = arith.constant dense<0.000000e+00> : vector<48xf32>
    %165 = vector.multi_reduction <add>, %164, %cst_58 [1] : vector<48x32xf32> to vector<48xf32>
    %166 = vector.shape_cast %165 : vector<48xf32> to vector<48x1xf32>
    %cst_59 = arith.constant 3.200000e+01 : f32
    %167 = vector.broadcast %cst_59 : f32 to vector<48x1xf32>
    %168 = arith.divf %166, %167 : vector<48x1xf32>
    %169 = vector.broadcast %161 : vector<48x1xf32> to vector<48x32xf32>
    %170 = arith.subf %155, %169 : vector<48x32xf32>
    %cst_60 = arith.constant 9.99999997E-7 : f32
    %171 = vector.broadcast %cst_60 : f32 to vector<48x1xf32>
    %172 = arith.addf %168, %171 : vector<48x1xf32>
    %173 = math.rsqrt %172 : vector<48x1xf32>
    %174 = vector.broadcast %173 : vector<48x1xf32> to vector<48x32xf32>
    %175 = arith.mulf %170, %174 : vector<48x32xf32>
    %176 = vector.broadcast %156 : vector<1x32xf32> to vector<48x32xf32>
    %177 = arith.mulf %175, %176 : vector<48x32xf32>
    %178 = vector.broadcast %157 : vector<1x32xf32> to vector<48x32xf32>
    %179 = arith.addf %177, %178 : vector<48x32xf32>
    %c288 = arith.constant 288 : index
    %c0_61 = arith.constant 0 : index
    %180 = vector.load %arg2[%c288, %c0_61] : memref<512x128xf32, #tpu.memory_space<vmem>>, vector<32x96xf32>
    %cst_62 = arith.constant dense<0.000000e+00> : vector<48x96xf32>
    %181 = tpu.matmul %179, %180, %cst_62 {dimension_numbers = #tpu.dot_dimension_numbers<[1], [0], [0], [1], [0, 0, 1, 1], [], []>} : vector<48x32xf32>, vector<32x96xf32>, vector<48x96xf32> -> vector<48x96xf32>
    %c106 = arith.constant 106 : index
    %c0_63 = arith.constant 0 : index
    %182 = vector.load %arg3[%c106, %c0_63] : memref<120x128xf32, #tpu.memory_space<vmem>>, vector<1x96xf32>
    %183 = vector.broadcast %182 : vector<1x96xf32> to vector<48x96xf32>
    %184 = arith.addf %181, %183 : vector<48x96xf32>
    %185 = vector.extract_strided_slice %184 {offsets = [0, 0], sizes = [48, 32], strides = [1, 1]} : vector<48x96xf32> to vector<48x32xf32>
    %cst_64 = arith.constant 0.353553385 : f32
    %186 = vector.broadcast %cst_64 : f32 to vector<48x32xf32>
    %187 = arith.mulf %185, %186 : vector<48x32xf32>
    %188 = vector.extract_strided_slice %184 {offsets = [0, 32], sizes = [48, 32], strides = [1, 1]} : vector<48x96xf32> to vector<48x32xf32>
    %189 = vector.extract_strided_slice %184 {offsets = [0, 64], sizes = [48, 32], strides = [1, 1]} : vector<48x96xf32> to vector<48x32xf32>
    %190 = tpu.transpose %188, [1, 0] : vector<48x32xf32> -> vector<32x48xf32>
    %191 = vector.extract_strided_slice %187 {offsets = [0, 0], sizes = [48, 8], strides = [1, 1]} : vector<48x32xf32> to vector<48x8xf32>
    %192 = vector.extract_strided_slice %190 {offsets = [0, 0], sizes = [8, 48], strides = [1, 1]} : vector<32x48xf32> to vector<8x48xf32>
    %cst_65 = arith.constant dense<0.000000e+00> : vector<48x48xf32>
    %193 = tpu.matmul %191, %192, %cst_65 {dimension_numbers = #tpu.dot_dimension_numbers<[1], [0], [0], [1], [0, 0, 1, 1], [], []>} : vector<48x8xf32>, vector<8x48xf32>, vector<48x48xf32> -> vector<48x48xf32>
    %194 = arith.addf %193, %5 : vector<48x48xf32>
    %cst_66 = arith.constant dense<0xFF800000> : vector<48xf32>
    %195 = vector.multi_reduction <maximumf>, %194, %cst_66 [1] : vector<48x48xf32> to vector<48xf32>
    %196 = vector.shape_cast %195 : vector<48xf32> to vector<48x1xf32>
    %197 = vector.broadcast %196 : vector<48x1xf32> to vector<48x48xf32>
    %198 = arith.subf %194, %197 : vector<48x48xf32>
    %199 = math.exp %198 : vector<48x48xf32>
    %cst_67 = arith.constant dense<0.000000e+00> : vector<48xf32>
    %200 = vector.multi_reduction <add>, %199, %cst_67 [1] : vector<48x48xf32> to vector<48xf32>
    %201 = vector.shape_cast %200 : vector<48xf32> to vector<48x1xf32>
    %202 = vector.broadcast %201 : vector<48x1xf32> to vector<48x48xf32>
    %203 = arith.divf %199, %202 : vector<48x48xf32>
    %204 = vector.extract_strided_slice %189 {offsets = [0, 0], sizes = [48, 8], strides = [1, 1]} : vector<48x32xf32> to vector<48x8xf32>
    %cst_68 = arith.constant dense<0.000000e+00> : vector<48x8xf32>
    %205 = tpu.matmul %203, %204, %cst_68 {dimension_numbers = #tpu.dot_dimension_numbers<[1], [0], [0], [1], [0, 0, 1, 1], [], []>} : vector<48x48xf32>, vector<48x8xf32>, vector<48x8xf32> -> vector<48x8xf32>
    %206 = vector.extract_strided_slice %187 {offsets = [0, 8], sizes = [48, 8], strides = [1, 1]} : vector<48x32xf32> to vector<48x8xf32>
    %207 = vector.extract_strided_slice %190 {offsets = [8, 0], sizes = [8, 48], strides = [1, 1]} : vector<32x48xf32> to vector<8x48xf32>
    %cst_69 = arith.constant dense<0.000000e+00> : vector<48x48xf32>
    %208 = tpu.matmul %206, %207, %cst_69 {dimension_numbers = #tpu.dot_dimension_numbers<[1], [0], [0], [1], [0, 0, 1, 1], [], []>} : vector<48x8xf32>, vector<8x48xf32>, vector<48x48xf32> -> vector<48x48xf32>
    %209 = arith.addf %208, %5 : vector<48x48xf32>
    %cst_70 = arith.constant dense<0xFF800000> : vector<48xf32>
    %210 = vector.multi_reduction <maximumf>, %209, %cst_70 [1] : vector<48x48xf32> to vector<48xf32>
    %211 = vector.shape_cast %210 : vector<48xf32> to vector<48x1xf32>
    %212 = vector.broadcast %211 : vector<48x1xf32> to vector<48x48xf32>
    %213 = arith.subf %209, %212 : vector<48x48xf32>
    %214 = math.exp %213 : vector<48x48xf32>
    %cst_71 = arith.constant dense<0.000000e+00> : vector<48xf32>
    %215 = vector.multi_reduction <add>, %214, %cst_71 [1] : vector<48x48xf32> to vector<48xf32>
    %216 = vector.shape_cast %215 : vector<48xf32> to vector<48x1xf32>
    %217 = vector.broadcast %216 : vector<48x1xf32> to vector<48x48xf32>
    %218 = arith.divf %214, %217 : vector<48x48xf32>
    %219 = vector.extract_strided_slice %189 {offsets = [0, 8], sizes = [48, 8], strides = [1, 1]} : vector<48x32xf32> to vector<48x8xf32>
    %cst_72 = arith.constant dense<0.000000e+00> : vector<48x8xf32>
    %220 = tpu.matmul %218, %219, %cst_72 {dimension_numbers = #tpu.dot_dimension_numbers<[1], [0], [0], [1], [0, 0, 1, 1], [], []>} : vector<48x48xf32>, vector<48x8xf32>, vector<48x8xf32> -> vector<48x8xf32>
    %221 = vector.extract_strided_slice %187 {offsets = [0, 16], sizes = [48, 8], strides = [1, 1]} : vector<48x32xf32> to vector<48x8xf32>
    %222 = vector.extract_strided_slice %190 {offsets = [16, 0], sizes = [8, 48], strides = [1, 1]} : vector<32x48xf32> to vector<8x48xf32>
    %cst_73 = arith.constant dense<0.000000e+00> : vector<48x48xf32>
    %223 = tpu.matmul %221, %222, %cst_73 {dimension_numbers = #tpu.dot_dimension_numbers<[1], [0], [0], [1], [0, 0, 1, 1], [], []>} : vector<48x8xf32>, vector<8x48xf32>, vector<48x48xf32> -> vector<48x48xf32>
    %224 = arith.addf %223, %5 : vector<48x48xf32>
    %cst_74 = arith.constant dense<0xFF800000> : vector<48xf32>
    %225 = vector.multi_reduction <maximumf>, %224, %cst_74 [1] : vector<48x48xf32> to vector<48xf32>
    %226 = vector.shape_cast %225 : vector<48xf32> to vector<48x1xf32>
    %227 = vector.broadcast %226 : vector<48x1xf32> to vector<48x48xf32>
    %228 = arith.subf %224, %227 : vector<48x48xf32>
    %229 = math.exp %228 : vector<48x48xf32>
    %cst_75 = arith.constant dense<0.000000e+00> : vector<48xf32>
    %230 = vector.multi_reduction <add>, %229, %cst_75 [1] : vector<48x48xf32> to vector<48xf32>
    %231 = vector.shape_cast %230 : vector<48xf32> to vector<48x1xf32>
    %232 = vector.broadcast %231 : vector<48x1xf32> to vector<48x48xf32>
    %233 = arith.divf %229, %232 : vector<48x48xf32>
    %234 = vector.extract_strided_slice %189 {offsets = [0, 16], sizes = [48, 8], strides = [1, 1]} : vector<48x32xf32> to vector<48x8xf32>
    %cst_76 = arith.constant dense<0.000000e+00> : vector<48x8xf32>
    %235 = tpu.matmul %233, %234, %cst_76 {dimension_numbers = #tpu.dot_dimension_numbers<[1], [0], [0], [1], [0, 0, 1, 1], [], []>} : vector<48x48xf32>, vector<48x8xf32>, vector<48x8xf32> -> vector<48x8xf32>
    %236 = vector.extract_strided_slice %187 {offsets = [0, 24], sizes = [48, 8], strides = [1, 1]} : vector<48x32xf32> to vector<48x8xf32>
    %237 = vector.extract_strided_slice %190 {offsets = [24, 0], sizes = [8, 48], strides = [1, 1]} : vector<32x48xf32> to vector<8x48xf32>
    %cst_77 = arith.constant dense<0.000000e+00> : vector<48x48xf32>
    %238 = tpu.matmul %236, %237, %cst_77 {dimension_numbers = #tpu.dot_dimension_numbers<[1], [0], [0], [1], [0, 0, 1, 1], [], []>} : vector<48x8xf32>, vector<8x48xf32>, vector<48x48xf32> -> vector<48x48xf32>
    %239 = arith.addf %238, %5 : vector<48x48xf32>
    %cst_78 = arith.constant dense<0xFF800000> : vector<48xf32>
    %240 = vector.multi_reduction <maximumf>, %239, %cst_78 [1] : vector<48x48xf32> to vector<48xf32>
    %241 = vector.shape_cast %240 : vector<48xf32> to vector<48x1xf32>
    %242 = vector.broadcast %241 : vector<48x1xf32> to vector<48x48xf32>
    %243 = arith.subf %239, %242 : vector<48x48xf32>
    %244 = math.exp %243 : vector<48x48xf32>
    %cst_79 = arith.constant dense<0.000000e+00> : vector<48xf32>
    %245 = vector.multi_reduction <add>, %244, %cst_79 [1] : vector<48x48xf32> to vector<48xf32>
    %246 = vector.shape_cast %245 : vector<48xf32> to vector<48x1xf32>
    %247 = vector.broadcast %246 : vector<48x1xf32> to vector<48x48xf32>
    %248 = arith.divf %244, %247 : vector<48x48xf32>
    %249 = vector.extract_strided_slice %189 {offsets = [0, 24], sizes = [48, 8], strides = [1, 1]} : vector<48x32xf32> to vector<48x8xf32>
    %cst_80 = arith.constant dense<0.000000e+00> : vector<48x8xf32>
    %250 = tpu.matmul %248, %249, %cst_80 {dimension_numbers = #tpu.dot_dimension_numbers<[1], [0], [0], [1], [0, 0, 1, 1], [], []>} : vector<48x48xf32>, vector<48x8xf32>, vector<48x8xf32> -> vector<48x8xf32>
    %251 = tpu.concatenate %205, %220, %235, %250 in 1 : vector<48x8xf32>, vector<48x8xf32>, vector<48x8xf32>, vector<48x8xf32> -> vector<48x32xf32>
    %c320 = arith.constant 320 : index
    %c0_81 = arith.constant 0 : index
    %252 = vector.load %arg2[%c320, %c0_81] : memref<512x128xf32, #tpu.memory_space<vmem>>, vector<32x32xf32>
    %cst_82 = arith.constant dense<0.000000e+00> : vector<48x32xf32>
    %253 = tpu.matmul %251, %252, %cst_82 {dimension_numbers = #tpu.dot_dimension_numbers<[1], [0], [0], [1], [0, 0, 1, 1], [], []>} : vector<48x32xf32>, vector<32x32xf32>, vector<48x32xf32> -> vector<48x32xf32>
    %c107 = arith.constant 107 : index
    %c0_83 = arith.constant 0 : index
    %254 = vector.load %arg3[%c107, %c0_83] : memref<120x128xf32, #tpu.memory_space<vmem>>, vector<1x32xf32>
    %255 = vector.broadcast %254 : vector<1x32xf32> to vector<48x32xf32>
    %256 = arith.addf %253, %255 : vector<48x32xf32>
    %257 = arith.addf %155, %256 : vector<48x32xf32>
    %c108 = arith.constant 108 : index
    %c0_84 = arith.constant 0 : index
    %258 = vector.load %arg3[%c108, %c0_84] : memref<120x128xf32, #tpu.memory_space<vmem>>, vector<1x32xf32>
    %c109 = arith.constant 109 : index
    %c0_85 = arith.constant 0 : index
    %259 = vector.load %arg3[%c109, %c0_85] : memref<120x128xf32, #tpu.memory_space<vmem>>, vector<1x32xf32>
    %cst_86 = arith.constant dense<0.000000e+00> : vector<48xf32>
    %260 = vector.multi_reduction <add>, %257, %cst_86 [1] : vector<48x32xf32> to vector<48xf32>
    %261 = vector.shape_cast %260 : vector<48xf32> to vector<48x1xf32>
    %cst_87 = arith.constant 3.200000e+01 : f32
    %262 = vector.broadcast %cst_87 : f32 to vector<48x1xf32>
    %263 = arith.divf %261, %262 : vector<48x1xf32>
    %264 = vector.broadcast %263 : vector<48x1xf32> to vector<48x32xf32>
    %265 = arith.subf %257, %264 : vector<48x32xf32>
    %266 = arith.mulf %265, %265 : vector<48x32xf32>
    %cst_88 = arith.constant dense<0.000000e+00> : vector<48xf32>
    %267 = vector.multi_reduction <add>, %266, %cst_88 [1] : vector<48x32xf32> to vector<48xf32>
    %268 = vector.shape_cast %267 : vector<48xf32> to vector<48x1xf32>
    %cst_89 = arith.constant 3.200000e+01 : f32
    %269 = vector.broadcast %cst_89 : f32 to vector<48x1xf32>
    %270 = arith.divf %268, %269 : vector<48x1xf32>
    %271 = vector.broadcast %263 : vector<48x1xf32> to vector<48x32xf32>
    %272 = arith.subf %257, %271 : vector<48x32xf32>
    %cst_90 = arith.constant 9.99999997E-7 : f32
    %273 = vector.broadcast %cst_90 : f32 to vector<48x1xf32>
    %274 = arith.addf %270, %273 : vector<48x1xf32>
    %275 = math.rsqrt %274 : vector<48x1xf32>
    %276 = vector.broadcast %275 : vector<48x1xf32> to vector<48x32xf32>
    %277 = arith.mulf %272, %276 : vector<48x32xf32>
    %278 = vector.broadcast %258 : vector<1x32xf32> to vector<48x32xf32>
    %279 = arith.mulf %277, %278 : vector<48x32xf32>
    %280 = vector.broadcast %259 : vector<1x32xf32> to vector<48x32xf32>
    %281 = arith.addf %279, %280 : vector<48x32xf32>
    %c352 = arith.constant 352 : index
    %c0_91 = arith.constant 0 : index
    %282 = vector.load %arg2[%c352, %c0_91] : memref<512x128xf32, #tpu.memory_space<vmem>>, vector<32x128xf32>
    %cst_92 = arith.constant dense<0.000000e+00> : vector<48x128xf32>
    %283 = tpu.matmul %281, %282, %cst_92 {dimension_numbers = #tpu.dot_dimension_numbers<[1], [0], [0], [1], [0, 0, 1, 1], [], []>} : vector<48x32xf32>, vector<32x128xf32>, vector<48x128xf32> -> vector<48x128xf32>
    %c110 = arith.constant 110 : index
    %c0_93 = arith.constant 0 : index
    %284 = vector.load %arg3[%c110, %c0_93] : memref<120x128xf32, #tpu.memory_space<vmem>>, vector<1x128xf32>
    %285 = vector.broadcast %284 : vector<1x128xf32> to vector<48x128xf32>
    %286 = arith.addf %283, %285 : vector<48x128xf32>
    %cst_94 = arith.constant 5.000000e-01 : f32
    %287 = vector.broadcast %cst_94 : f32 to vector<48x128xf32>
    %288 = arith.mulf %287, %286 : vector<48x128xf32>
    %cst_95 = arith.constant 4.471500e-02 : f32
    %289 = vector.broadcast %cst_95 : f32 to vector<48x128xf32>
    %290 = arith.mulf %289, %286 : vector<48x128xf32>
    %291 = arith.mulf %290, %286 : vector<48x128xf32>
    %292 = arith.mulf %291, %286 : vector<48x128xf32>
    %293 = arith.addf %286, %292 : vector<48x128xf32>
    %cst_96 = arith.constant 0.797884583 : f32
    %294 = vector.broadcast %cst_96 : f32 to vector<48x128xf32>
    %295 = arith.mulf %294, %293 : vector<48x128xf32>
    %296 = math.tanh %295 : vector<48x128xf32>
    %cst_97 = arith.constant 1.000000e+00 : f32
    %297 = vector.broadcast %cst_97 : f32 to vector<48x128xf32>
    %298 = arith.addf %297, %296 : vector<48x128xf32>
    %299 = arith.mulf %288, %298 : vector<48x128xf32>
    %c384 = arith.constant 384 : index
    %c0_98 = arith.constant 0 : index
    %300 = vector.load %arg2[%c384, %c0_98] : memref<512x128xf32, #tpu.memory_space<vmem>>, vector<128x32xf32>
    %cst_99 = arith.constant dense<0.000000e+00> : vector<48x32xf32>
    %301 = tpu.matmul %299, %300, %cst_99 {dimension_numbers = #tpu.dot_dimension_numbers<[1], [0], [0], [1], [0, 0, 1, 1], [], []>} : vector<48x128xf32>, vector<128x32xf32>, vector<48x32xf32> -> vector<48x32xf32>
    %c111 = arith.constant 111 : index
    %c0_100 = arith.constant 0 : index
    %302 = vector.load %arg3[%c111, %c0_100] : memref<120x128xf32, #tpu.memory_space<vmem>>, vector<1x32xf32>
    %303 = vector.broadcast %302 : vector<1x32xf32> to vector<48x32xf32>
    %304 = arith.addf %301, %303 : vector<48x32xf32>
    %305 = arith.addf %257, %304 : vector<48x32xf32>
    %c112 = arith.constant 112 : index
    %c0_101 = arith.constant 0 : index
    %306 = vector.load %arg3[%c112, %c0_101] : memref<120x128xf32, #tpu.memory_space<vmem>>, vector<1x32xf32>
    %c113 = arith.constant 113 : index
    %c0_102 = arith.constant 0 : index
    %307 = vector.load %arg3[%c113, %c0_102] : memref<120x128xf32, #tpu.memory_space<vmem>>, vector<1x32xf32>
    %cst_103 = arith.constant dense<0.000000e+00> : vector<48xf32>
    %308 = vector.multi_reduction <add>, %305, %cst_103 [1] : vector<48x32xf32> to vector<48xf32>
    %309 = vector.shape_cast %308 : vector<48xf32> to vector<48x1xf32>
    %cst_104 = arith.constant 3.200000e+01 : f32
    %310 = vector.broadcast %cst_104 : f32 to vector<48x1xf32>
    %311 = arith.divf %309, %310 : vector<48x1xf32>
    %312 = vector.broadcast %311 : vector<48x1xf32> to vector<48x32xf32>
    %313 = arith.subf %305, %312 : vector<48x32xf32>
    %314 = arith.mulf %313, %313 : vector<48x32xf32>
    %cst_105 = arith.constant dense<0.000000e+00> : vector<48xf32>
    %315 = vector.multi_reduction <add>, %314, %cst_105 [1] : vector<48x32xf32> to vector<48xf32>
    %316 = vector.shape_cast %315 : vector<48xf32> to vector<48x1xf32>
    %cst_106 = arith.constant 3.200000e+01 : f32
    %317 = vector.broadcast %cst_106 : f32 to vector<48x1xf32>
    %318 = arith.divf %316, %317 : vector<48x1xf32>
    %319 = vector.broadcast %311 : vector<48x1xf32> to vector<48x32xf32>
    %320 = arith.subf %305, %319 : vector<48x32xf32>
    %cst_107 = arith.constant 9.99999997E-7 : f32
    %321 = vector.broadcast %cst_107 : f32 to vector<48x1xf32>
    %322 = arith.addf %318, %321 : vector<48x1xf32>
    %323 = math.rsqrt %322 : vector<48x1xf32>
    %324 = vector.broadcast %323 : vector<48x1xf32> to vector<48x32xf32>
    %325 = arith.mulf %320, %324 : vector<48x32xf32>
    %326 = vector.broadcast %306 : vector<1x32xf32> to vector<48x32xf32>
    %327 = arith.mulf %325, %326 : vector<48x32xf32>
    %328 = vector.broadcast %307 : vector<1x32xf32> to vector<48x32xf32>
    %329 = arith.addf %327, %328 : vector<48x32xf32>
    %c0_108 = arith.constant 0 : index
    %c0_109 = arith.constant 0 : index
    %330 = vector.load %arg4[%c0_108, %c0_109] : memref<48x32xf32, #tpu.memory_space<vmem>>, vector<48x32xf32>
    tpu.vector_store %arg4[%c0_108, %c0_109], %329 {strides = array<i32>} : memref<48x32xf32, #tpu.memory_space<vmem>>, vector<48x32xf32>,
    return
  }
  func.func @transform_0(%arg0: i32) -> (i32, i32) {
    %c0_i32 = arith.constant 0 : i32
    %c0_i32_0 = arith.constant 0 : i32
    %c0_i32_1 = arith.constant 0 : i32
    return %c0_i32, %c0_i32_0 : i32, i32
  }
  func.func @transform_1(%arg0: i32) -> (i32, i32) {
    %c0_i32 = arith.constant 0 : i32
    %c0_i32_0 = arith.constant 0 : i32
    %c0_i32_1 = arith.constant 0 : i32
    return %c0_i32, %c0_i32_0 : i32, i32
  }
  func.func @transform_2(%arg0: i32) -> (i32, i32) {
    %c0_i32 = arith.constant 0 : i32
    %c0_i32_0 = arith.constant 0 : i32
    %c0_i32_1 = arith.constant 0 : i32
    return %c0_i32, %c0_i32_0 : i32, i32
  }
  func.func @transform_3(%arg0: i32) -> (i32, i32) {
    %c0_i32 = arith.constant 0 : i32
    %c0_i32_0 = arith.constant 0 : i32
    %c0_i32_1 = arith.constant 0 : i32
    return %c0_i32, %c0_i32_0 : i32, i32
  }
}

</mosaic_0001>

<bundles_post_ra>
// kernel: tpu_custom_call.1
= control target key start
LH: loop header
LB: loop body
LE: loop exit
PB: predicated region body
PF: predicated region fallthrough
CT: control target
= control target key end

     0   :  { %8 = vsyncpa [#allocation3], 0  ;;  %s6782_s0 = inlined_call_operand.hbm [shape: f32[48,64], index: 0, kind: input, shape index: {}]   ;;  %s6783_s1 = inlined_call_operand.hbm [shape: f32[512,128], index: 1, kind: input, shape index: {}]   ;;  %s6784_s2 = inlined_call_operand.hbm [shape: f32[120,128], index: 2, kind: input, shape index: {}]   ;;  %s6785_s3 = inlined_call_operand.vmem [shape: f32[48,32], index: 3, kind: output, shape index: {}]  }
   0x1   :  { %9 = vsyncpa [#allocation5], 0  ;;  %s27_s14 = sshll.u32 %s6783_s1, 4  ;;  %s4780_s15 = smov [#allocation4]   ;;  %s28_s14 = int_to_ptr.hbm [resolvable:$true] %s27_s14 }
   0x2   :  { %s29_s16 = sshll.u32 %s4780_s15, 4  ;;  %s14_s19 = sshll.u32 %s6782_s0, 4  ;;  %s30_s16 = int_to_ptr.vmem [resolvable:$true] %s29_s16  ;;  %s15_s19 = int_to_ptr.hbm [resolvable:$true] %s14_s19 }
   0x3   :  { %s4781_s20 = smov 128   ;;  %s4782_s21 = smov 8  }
   0x4   :  { %35 = dma.hbm_to_vmem [thread:$0]  %s28_s14, 8192, %s30_s16, [#allocation5], %s4781_s20, %s4781_s20, %s4782_s21  }
   0x5   :  { %s4783_s22 = smov [#allocation2]   ;;  %s40_s26 = sshll.u32 %s6784_s2, 4  ;;  %s41_s26 = int_to_ptr.hbm [resolvable:$true] %s40_s26 }
   0x6   :  { %s16_s23 = sshll.u32 %s4783_s22, 4  ;;  %s4784_s1 = smov [#allocation6]   ;;  %s17_s23 = int_to_ptr.vmem [resolvable:$true] %s16_s23 }
   0x7   :  { %22 = dma.hbm_to_vmem [thread:$0]  %s15_s19, 768, %s17_s23, [#allocation3], %s4781_s20, %s4781_s20, %s4782_s21  }
   0x8   :  { %s42_s27 = sshll.u32 %s4784_s1, 4  ;;  %s43_s27 = int_to_ptr.vmem [resolvable:$true] %s42_s27 }
   0x9   :  { %48 = dma.hbm_to_vmem [thread:$0]  %s41_s26, 1920, %s43_s27, [#allocation5], %s4781_s20, %s4781_s20, %s4782_s21  }
   0xa   :  { %4776 = dma.done.wait [#allocation3], 768  }
   0xb   :  { %4777 = vsyncadd [#allocation3], 4294966528 }
   0xc   :  { %4778 = dma.done.wait [#allocation5], 10112  }
   0xd   :  { %4779 = vsyncadd [#allocation5], 4294957184  ;;  %v74_v0 = vld [vmem:[#allocation4 + $0x38] sm:$0xff]  ;;  %v73_v1 = vld [vmem:[#allocation4 + $0x30] sm:$0xff]  ;;  %vm81_vm0 = vcmask 523264   ;;  %vm143_vm1 = vcmask 261120  }
   0xe   :  { %108 = vmatpush.msra.mxu0 %v74_v0  ;;  %v72_v2 = vld [vmem:[#allocation4 + $0x28] sm:$0xff]  ;;  %v71_v3 = vld [vmem:[#allocation4 + $0x20] sm:$0xff]  ;;  %v70_v4 = vld [vmem:[#allocation4 + $0x18] sm:$0xff]  ;;  %v4785_v38 = vmov 32.0   ;;  %s4786_s0 = smov 96   ;;  %s4787_s2 = smov 88  }
   0xf   :  { %v69_v5 = vld [vmem:[#allocation4 + $0x10] sm:$0xff]  ;;  %v68_v6 = vld [vmem:[#allocation4 + $0x8] sm:$0xff]  ;;  %v67_v7 = vld [vmem:[#allocation4] sm:$0xff]  ;;  %4420 = vrcp.f32 %v4785_v38  ;;  %s4788_s28 = smov 120   ;;  %s4789_s29 = smov 80  }
  0x10   :  { %109 = vmatpush.msra.mxu0 %v73_v1  ;;  %v61_v8 = vld [vmem:[#allocation2] sm:$0xff]  ;;  %v62_v9 = vld [vmem:[#allocation2 + $0x8] sm:$0xff]  ;;  %v63_v10 = vld [vmem:[#allocation2 + $0x10] sm:$0xff]  ;;  %s4790_s30 = smov 72   ;;  %s4791_s4 = smov 112  }
  0x11   :  { %v64_v11 = vld [vmem:[#allocation2 + $0x18] sm:$0xff]  ;;  %v65_v12 = vld [vmem:[#allocation2 + $0x20] sm:$0xff]  ;;  %v66_v13 = vld [vmem:[#allocation2 + $0x28] sm:$0xff]  ;;  %s4792_s5 = smov 104   ;;  %s4793_s6 = smov 64  }
  0x12   :  { %110 = vmatpush.msra.mxu0 %v72_v2  ;;  %v76_v15 = vld [vmem:[#allocation6 + $0x8] sm:$0xff]  ;;  %v77_v19 = vld [vmem:[#allocation6 + $0x10] sm:$0xff]  ;;  %v78_v23 = vld [vmem:[#allocation6 + $0x18] sm:$0xff]  ;;  %s4794_s7 = smov 56   ;;  %s4795_s8 = smov 48  }
  0x13   :  { %v79_v27 = vld [vmem:[#allocation6 + $0x20] sm:$0xff]  ;;  %v80_v31 = vld [vmem:[#allocation6 + $0x28] sm:$0xff]  ;;  %s4796_s9 = smov 40   ;;  %s4797_s10 = smov 16  }
  0x14   :  { %111 = vmatpush.msra.mxu0 %v71_v3  ;;  %v75_v35 = vld [vmem:[#allocation6] sm:$0xff]  ;;  %s4798_s11 = smov 24  }
  0x15   :  { %v4421_v39 = vpop.eup %4420 }
  0x16   :  { %112 = vmatpush.msra.mxu0 %v70_v4  ;;  %v163_v40 = vmul.f32 32.0, %v4421_v39  ;;  %vm167_vm2 = vweird.f32 %v4421_v39 }
  0x18   :  { %113 = vmatpush.msra.mxu0 %v69_v5  ;;  %v164_v41 = vsub.f32 1.0, %v163_v40 }
  0x1a   :  { %114 = vmatpush.msra.mxu0 %v68_v6  ;;  %v165_v42 = vmul.f32 %v4421_v39, %v164_v41  ;;  %v4905_v41 = vld [vmem:[#allocation6 + $0x60] ss:$0 sm:$0xff] }
  0x1c   :  { %115 = vmatpush.msra.mxu0 %v67_v7  ;;  %v166_v43 = vadd.f32 %v4421_v39, %v165_v42 }
  0x1d   :  { %4073 = vmatmul.msk.f32.vlgmr.msra.gmra.mxu0 %vm81_vm0, %v61_v8 }
  0x1e   :  { %v4855_v44 = vsel %vm167_vm2, %v4421_v39, %v166_v43 }
  0x25   :  { %4074 = vmatmul.msk.f32.gmra.mxu0 %vm81_vm0, %v62_v9 }
  0x2d   :  { %4075 = vmatmul.msk.f32.gmra.mxu0 %vm81_vm0, %v63_v10 }
  0x35   :  { %4076 = vmatmul.msk.f32.gmra.mxu0 %vm81_vm0, %v64_v11  ;;  %v300_v11 = vld [vmem:[#allocation4 + $0x58] sm:$0xff] }
  0x36   :  { %4259 = vmatpush.msra.mxu3 %v300_v11  ;;  %333 = vmatpush.msra.mxu1 %v300_v11 }
  0x3d   :  { %4077 = vmatmul.msk.f32.gmra.mxu0 %vm81_vm0, %v65_v12  ;;  %v299_v12 = vld [vmem:[#allocation4 + $0x50] sm:$0xff] }
  0x3e   :  { %4260 = vmatpush.msra.mxu3 %v299_v12  ;;  %334 = vmatpush.msra.mxu1 %v299_v12 }
  0x45   :  { %4078 = vmatmul.msk.f32.gmra.mxu0 %vm81_vm0, %v66_v13  ;;  %v298_v13 = vld [vmem:[#allocation4 + $0x48] sm:$0xff] }
  0x46   :  { %4261 = vmatpush.msra.mxu3 %v298_v13  ;;  %335 = vmatpush.msra.mxu1 %v298_v13 }
  0x9a   :  { %v117_v14 = vpop.f32.mrf.mxu0 }
  0x9b   :  { %v4851_v36 = vadd.f32 %v117_v14, %v75_v35  ;;  %v297_v14 = vld [vmem:[#allocation4 + $0x40] sm:$0xff] }
  0x9c   :  { %4262 = vmatpush.msra.mxu3 %v297_v14  ;;  %336 = vmatpush.msra.mxu1 %v297_v14 }
  0x9d   :  { %v144_v37 = vsel %vm143_vm1, %v4851_v36, 0.0 }
  0xa2   :  { %v120_v16 = vpop.f32.mrf.mxu0 }
  0xa3   :  { %v4831_v17 = vadd.f32 %v120_v16, %v76_v15 }
  0xa5   :  { %v147_v18 = vsel %vm143_vm1, %v4831_v17, 0.0 }
  0xa6   :  { %148 = vadd.xlane.f32.xlu2 %v147_v18 }
  0xaa   :  { %v123_v20 = vpop.f32.mrf.mxu0 }
  0xab   :  { %v4835_v21 = vadd.f32 %v123_v20, %v77_v19 }
  0xad   :  { %v150_v22 = vsel %vm143_vm1, %v4835_v21, 0.0 }
  0xae   :  { %151 = vadd.xlane.f32.xlu2 %v150_v22 }
  0xb2   :  { %v126_v24 = vpop.f32.mrf.mxu0 }
  0xb3   :  { %v4839_v25 = vadd.f32 %v126_v24, %v78_v23 }
  0xb5   :  { %v153_v26 = vsel %vm143_vm1, %v4839_v25, 0.0 }
  0xb6   :  { %154 = vadd.xlane.f32.xlu0 %v153_v26 }
  0xba   :  { %v129_v28 = vpop.f32.mrf.mxu0 }
  0xbb   :  { %v4843_v29 = vadd.f32 %v129_v28, %v79_v27 }
  0xbd   :  { %v156_v30 = vsel %vm143_vm1, %v4843_v29, 0.0 }
  0xbe   :  { %157 = vadd.xlane.f32.xlu0 %v156_v30 }
  0xc2   :  { %v132_v32 = vpop.f32.mrf.mxu0 }
  0xc3   :  { %v4847_v33 = vadd.f32 %v132_v32, %v80_v31 }
  0xc5   :  { %v159_v34 = vsel %vm143_vm1, %v4847_v33, 0.0 }
  0xc6   :  { %160 = vadd.xlane.f32.xlu1 %v159_v34 }
  0xce   :  { %145 = vadd.xlane.f32.xlu1 %v144_v37 }
 0x119   :  { %v149_v49 = vpop.xlane.xlu2 %148 }
 0x11a   :  { %v170_v53 = vmul.f32 %v4855_v44, %v149_v49 }
 0x11c   :  { %v4872_v56 = vsub.f32 %v4831_v17, %v170_v53 }
 0x11e   :  { %v182_v63 = vmul.f32 %v4872_v56, %v4872_v56 }
 0x120   :  { %v190_v3 = vsel %vm143_vm1, %v182_v63, 0.0 }
 0x121   :  { %v152_v58 = vpop.xlane.xlu2 %151 }
 0x122   :  { %v171_v61 = vmul.f32 %v4855_v44, %v152_v58 }
 0x124   :  { %v4885_v1 = vsub.f32 %v4835_v21, %v171_v61 }
 0x126   :  { %v183_v7 = vmul.f32 %v4885_v1, %v4885_v1 }
 0x128   :  { %v193_v9 = vsel %vm143_vm1, %v183_v7, 0.0 }
 0x129   :  { %v155_v45 = vpop.xlane.xlu0 %154 }
 0x12a   :  { %v172_v46 = vmul.f32 %v4855_v44, %v155_v45 }
 0x12c   :  { %v4859_v47 = vsub.f32 %v4839_v25, %v172_v46  ;;  %v4909_v46 = vld [vmem:[#allocation6 + $0x61] ss:$0 sm:$0xff] }
 0x12e   :  { %v184_v48 = vmul.f32 %v4859_v47, %v4859_v47 }
 0x130   :  { %v196_v50 = vsel %vm143_vm1, %v184_v48, 0.0 }
 0x131   :  { %197 = vadd.xlane.f32.xlu0 %v196_v50  ;;  %v158_v51 = vpop.xlane.xlu0 %157 }
 0x132   :  { %v173_v52 = vmul.f32 %v4855_v44, %v158_v51 }
 0x134   :  { %v4867_v54 = vsub.f32 %v4843_v29, %v173_v52 }
 0x136   :  { %v185_v55 = vmul.f32 %v4867_v54, %v4867_v54 }
 0x138   :  { %v199_v57 = vsel %vm143_vm1, %v185_v55, 0.0 }
 0x139   :  { %v161_v59 = vpop.xlane.xlu1 %160  ;;  %200 = vadd.xlane.f32.xlu1 %v199_v57 }
 0x13a   :  { %v174_v60 = vmul.f32 %v4855_v44, %v161_v59 }
 0x13c   :  { %v4878_v62 = vsub.f32 %v4847_v33, %v174_v60 }
 0x13e   :  { %v186_v0 = vmul.f32 %v4878_v62, %v4878_v62 }
 0x140   :  { %v202_v2 = vsel %vm143_vm1, %v186_v0, 0.0 }
 0x141   :  { %203 = vadd.xlane.f32.xlu2 %v202_v2  ;;  %191 = vadd.xlane.f32.xlu1 %v190_v3  ;;  %v146_v4 = vpop.xlane.xlu1 %145 }
 0x142   :  { %v169_v5 = vmul.f32 %v4855_v44, %v146_v4 }
 0x144   :  { %v4891_v6 = vsub.f32 %v4851_v36, %v169_v5 }
 0x146   :  { %v181_v8 = vmul.f32 %v4891_v6, %v4891_v6 }
 0x148   :  { %v187_v10 = vsel %vm143_vm1, %v181_v8, 0.0 }
 0x149   :  { %194 = vadd.xlane.f32.xlu2 %v193_v9  ;;  %188 = vadd.xlane.f32.xlu0 %v187_v10 }
 0x1a4   :  { %v198_v15 = vpop.xlane.xlu0 %197 }
 0x1a5   :  { %v208_v16 = vmul.f32 %v198_v15, %v4855_v44 }
 0x1a7   :  { %v214_v18 = vadd.f32 1e-06, %v208_v16 }
 0x1a9   :  { %4422 = vrsqrt.f32 %v214_v18  ;;  %vm253_vm4 = vweird.f32 %v214_v18 }
 0x1ac   :  { %v201_v19 = vpop.xlane.xlu1 %200 }
 0x1ad   :  { %v209_v20 = vmul.f32 %v201_v19, %v4855_v44 }
 0x1af   :  { %v4423_v22 = vpop.eup %4422  ;;  %v215_v23 = vadd.f32 1e-06, %v209_v20 }
 0x1b0   :  { %v248_v24 = vmul.f32 %v4423_v22, %v214_v18  ;;  %vm254_vm3 = vweird.f32 %v4423_v22 }
 0x1b1   :  { %4424 = vrsqrt.f32 %v215_v23  ;;  %vm255_vm5 = vmor %vm253_vm4, %vm254_vm3  ;;  %vm263_vm7 = vweird.f32 %v215_v23 }
 0x1b2   :  { %v249_v26 = vmul.f32 %v4423_v22, %v248_v24 }
 0x1b4   :  { %v250_v27 = vmul.f32 0.5, %v249_v26  ;;  %v204_v28 = vpop.xlane.xlu2 %203  ;;  %v192_v30 = vpop.xlane.xlu1 %191 }
 0x1b5   :  { %v210_v31 = vmul.f32 %v204_v28, %v4855_v44  ;;  %v206_v32 = vmul.f32 %v192_v30, %v4855_v44 }
 0x1b6   :  { %v251_v34 = vsub.f32 1.5, %v250_v27 }
 0x1b7   :  { %v4425_v35 = vpop.eup %4424  ;;  %v216_v37 = vadd.f32 1e-06, %v210_v31  ;;  %v4903_v38 = vadd.f32 1e-06, %v206_v32 }
 0x1b8   :  { %v252_v39 = vmul.f32 %v4423_v22, %v251_v34  ;;  %v258_v40 = vmul.f32 %v4425_v35, %v215_v23  ;;  %vm264_vm6 = vweird.f32 %v4425_v35 }
 0x1b9   :  { %4426 = vrsqrt.f32 %v216_v37  ;;  %vm265_vm8 = vmor %vm263_vm7, %vm264_vm6  ;;  %vm273_vm10 = vweird.f32 %v216_v37  ;;  %vm233_vm0 = vweird.f32 %v4903_v38  ;;  %vm380_vm6 = vcmask 64512  }
 0x1ba   :  { %v259_v42 = vmul.f32 %v4425_v35, %v258_v40  ;;  %4428 = vrsqrt.f32 %v4903_v38  ;;  %v256_v43 = vsel %vm255_vm5, %v4423_v22, %v252_v39  ;;  %vm446_vm7 = vcmask 392192  }
 0x1bb   :  { %v280_v45 = vmul.f32 %v256_v43, %v4859_v47 }
 0x1bc   :  { %v260_v48 = vmul.f32 0.5, %v259_v42  ;;  %v195_v49 = vpop.xlane.xlu2 %194  ;;  %v189_v50 = vpop.xlane.xlu0 %188 }
 0x1bd   :  { %v207_v51 = vmul.f32 %v195_v49, %v4855_v44  ;;  %v205_v52 = vmul.f32 %v189_v50, %v4855_v44  ;;  %v287_v53 = vmul.f32 %v4905_v41, %v280_v45 }
 0x1be   :  { %v261_v55 = vsub.f32 1.5, %v260_v48 }
 0x1bf   :  { %v4427_v57 = vpop.eup %4426  ;;  %v213_v58 = vadd.f32 1e-06, %v207_v51  ;;  %v211_v59 = vadd.f32 1e-06, %v205_v52  ;;  %v294_v60 = vadd.f32 %v4909_v46, %v287_v53 }
 0x1c0   :  { %v4429_v61 = vpop.eup %4428  ;;  %v262_v47 = vmul.f32 %v4425_v35, %v261_v55  ;;  %v268_v63 = vmul.f32 %v4427_v57, %v216_v37  ;;  %vm274_vm9 = vweird.f32 %v4427_v57 }
 0x1c1   :  { %v228_v0 = vmul.f32 %v4429_v61, %v4903_v38  ;;  %4430 = vrsqrt.f32 %v213_v58  ;;  %4082 = vmatmul.msk.f32.vlgmr.msra.gmra.mxu3 %vm143_vm1, %v294_v60  ;;  %vm275_vm11 = vmor %vm273_vm10, %vm274_vm9  ;;  %vm234_vm13 = vweird.f32 %v4429_v61  ;;  %vm223_vm14 = vweird.f32 %v211_v59 }
 0x1c2   :  { %v269_v2 = vmul.f32 %v4427_v57, %v268_v63  ;;  %4432 = vrsqrt.f32 %v211_v59  ;;  %v266_v3 = vsel %vm265_vm8, %v4425_v35, %v262_v47  ;;  %vm235_vm2 = vmor %vm233_vm0, %vm234_vm13  ;;  %vm243_vm4 = vweird.f32 %v213_v58 }
 0x1c3   :  { %v281_v4 = vmul.f32 %v266_v3, %v4867_v54  ;;  %v229_v7 = vmul.f32 %v4429_v61, %v228_v0 }
 0x1c4   :  { %v270_v5 = vmul.f32 0.5, %v269_v2 }
 0x1c5   :  { %v288_v8 = vmul.f32 %v4905_v41, %v281_v4  ;;  %v230_v14 = vmul.f32 0.5, %v229_v7 }
 0x1c6   :  { %v271_v9 = vsub.f32 1.5, %v270_v5 }
 0x1c7   :  { %v4431_v10 = vpop.eup %4430  ;;  %v295_v11 = vadd.f32 %v4909_v46, %v288_v8  ;;  %v231_v20 = vsub.f32 1.5, %v230_v14 }
 0x1c8   :  { %v4433_v12 = vpop.eup %4432  ;;  %v272_v13 = vmul.f32 %v4427_v57, %v271_v9  ;;  %v238_v15 = vmul.f32 %v4431_v10, %v213_v58  ;;  %vm244_vm3 = vweird.f32 %v4431_v10 }
 0x1c9   :  { %v218_v16 = vmul.f32 %v4433_v12, %v211_v59  ;;  %4083 = vmatmul.msk.f32.gmra.mxu3 %vm143_vm1, %v295_v11  ;;  %vm224_vm12 = vweird.f32 %v4433_v12  ;;  %v232_v28 = vmul.f32 %v4429_v61, %v231_v20  ;;  %vm245_vm5 = vmor %vm243_vm4, %vm244_vm3 }
 0x1ca   :  { %v276_v18 = vsel %vm275_vm11, %v4427_v57, %v272_v13  ;;  %v239_v22 = vmul.f32 %v4431_v10, %v238_v15  ;;  %vm225_vm15 = vmor %vm223_vm14, %vm224_vm12 }
 0x1cb   :  { %v219_v54 = vmul.f32 %v4433_v12, %v218_v16  ;;  %v282_v19 = vmul.f32 %v276_v18, %v4878_v62  ;;  %v236_v35 = vsel %vm235_vm2, %v4429_v61, %v232_v28 }
 0x1cc   :  { %v240_v30 = vmul.f32 0.5, %v239_v22  ;;  %v278_v40 = vmul.f32 %v236_v35, %v4872_v56  ;;  %v4404_v56 = vld [vmem:[#allocation6 + $0x62] ss:$0 sm:$0xff] }
 0x1cd   :  { %v220_v23 = vmul.f32 0.5, %v219_v54  ;;  %v289_v24 = vmul.f32 %v4905_v41, %v282_v19 }
 0x1ce   :  { %v241_v34 = vsub.f32 1.5, %v240_v30  ;;  %v285_v38 = vmul.f32 %v4905_v41, %v278_v40 }
 0x1cf   :  { %v221_v26 = vsub.f32 1.5, %v220_v23  ;;  %v296_v27 = vadd.f32 %v4909_v46, %v289_v24 }
 0x1d0   :  { %v242_v42 = vmul.f32 %v4431_v10, %v241_v34  ;;  %v292_v45 = vadd.f32 %v4909_v46, %v285_v38 }
 0x1d1   :  { %v222_v31 = vmul.f32 %v4433_v12, %v221_v26  ;;  %4084 = vmatmul.msk.f32.gmra.mxu3 %vm143_vm1, %v296_v27 }
 0x1d2   :  { %v246_v43 = vsel %vm245_vm5, %v4431_v10, %v242_v42 }
 0x1d3   :  { %v226_v62 = vsel %vm225_vm15, %v4433_v12, %v222_v31 }
 0x1d4   :  { %v277_v32 = vmul.f32 %v226_v62, %v4891_v6  ;;  %v279_v6 = vmul.f32 %v246_v43, %v4885_v1 }
 0x1d6   :  { %v284_v37 = vmul.f32 %v4905_v41, %v277_v32  ;;  %v286_v48 = vmul.f32 %v4905_v41, %v279_v6 }
 0x1d8   :  { %v291_v39 = vadd.f32 %v4909_v46, %v284_v37  ;;  %v293_v49 = vadd.f32 %v4909_v46, %v286_v48 }
 0x1da   :  { %4079 = vmatmul.msk.f32.vlgmr.msra.gmra.mxu1 %vm143_vm1, %v291_v39 }
 0x1e2   :  { %4080 = vmatmul.msk.f32.gmra.mxu1 %vm143_vm1, %v292_v45 }
 0x1ea   :  { %4081 = vmatmul.msk.f32.gmra.mxu1 %vm143_vm1, %v293_v49 }
 0x244   :  { %v347_v50 = vpop.f32.mrf.mxu3 }
 0x245   :  { %v4938_v51 = vadd.f32 %v4404_v56, %v347_v50 }
 0x247   :  { %374 = vrot.lane.b32.xlu2 %v4938_v51, %s4786_s0  ;;  %v4973_v47 = vmul.f32 0.35355338, %v4938_v51 }
 0x24c   :  { %v350_v52 = vpop.f32.mrf.mxu3 }
 0x24d   :  { %v351_v53 = vadd.f32 %v4404_v56, %v350_v52 }
 0x24f   :  { %376 = vrot.lane.b32.xlu1 %v351_v53, %s4786_s0  ;;  %v4975_v63 = vmul.f32 0.35355338, %v351_v53 }
 0x254   :  { %v353_v0 = vpop.f32.mrf.mxu3 }
 0x255   :  { %v354_v2 = vadd.f32 %v4404_v56, %v353_v0  ;;  %v5130_v0 = vld [vmem:[#allocation6 + $0x38] sm:$0xff] }
 0x257   :  { %v338_v1 = vpop.f32.mrf.mxu1  ;;  %v5011_v5 = vpack.i.bf16 %v351_v53, %v354_v2  ;;  %v5019_v8 = vmul.f32 0.35355338, %v354_v2 }
 0x258   :  { %v339_v55 = vadd.f32 %v4404_v56, %v338_v1 }
 0x25a   :  { %368 = vrot.lane.b32.xlu1 %v339_v55, %s4786_s0  ;;  %v4964_v61 = vmul.f32 0.35355338, %v339_v55 }
 0x25f   :  { %v341_v41 = vpop.f32.mrf.mxu1 }
 0x260   :  { %v342_v46 = vadd.f32 %v4404_v56, %v341_v41 }
 0x262   :  { %680 = vrot.lane.b32.xlu1 %v4938_v51, %s4787_s2  ;;  %370 = vrot.lane.b32.xlu2 %v342_v46, %s4786_s0  ;;  %v4956_v60 = vmul.f32 0.35355338, %v342_v46  ;;  %v5009_v4 = vpack.i.bf16 %v339_v55, %v342_v46 }
 0x267   :  { %v344_v57 = vpop.f32.mrf.mxu1 }
 0x268   :  { %v4947_v58 = vadd.f32 %v4404_v56, %v344_v57 }
 0x26a   :  { %674 = vrot.lane.b32.xlu1 %v339_v55, %s4787_s2  ;;  %372 = vrot.lane.b32.xlu0 %v4947_v58, %s4786_s0  ;;  %v4954_v59 = vmul.f32 0.35355338, %v4947_v58  ;;  %v5040_v14 = vpack.i.bf16 %v4947_v58, %v4938_v51 }
 0x26b   :  { %676 = vrot.lane.b32.xlu2 %v342_v46, %s4787_s2 }
 0x272   :  { %678 = vrot.lane.b32.xlu0 %v4947_v58, %s4787_s2  ;;  %666 = vrot.lane.b32.xlu1 %v4954_v59, %s4788_s28 }
 0x273   :  { %664 = vrot.lane.b32.xlu2 %v4956_v60, %s4788_s28 }
 0x27a   :  { %662 = vrot.lane.b32.xlu0 %v4964_v61, %s4788_s28  ;;  %976 = vrot.lane.b32.xlu1 %v4947_v58, %s4789_s29 }
 0x27b   :  { %1276 = vrot.lane.b32.xlu2 %v4938_v51, %s4790_s30 }
 0x282   :  { %668 = vrot.lane.b32.xlu0 %v4973_v47, %s4788_s28  ;;  %670 = vrot.lane.b32.xlu1 %v4975_v63, %s4788_s28 }
 0x283   :  { %682 = vrot.lane.b32.xlu2 %v351_v53, %s4787_s2 }
 0x28a   :  { %978 = vrot.lane.b32.xlu0 %v4938_v51, %s4789_s29  ;;  %974 = vrot.lane.b32.xlu1 %v342_v46, %s4789_s29 }
 0x28b   :  { %1278 = vrot.lane.b32.xlu2 %v351_v53, %s4790_s30 }
 0x292   :  { %980 = vrot.lane.b32.xlu0 %v351_v53, %s4789_s29  ;;  %1270 = vrot.lane.b32.xlu1 %v339_v55, %s4790_s30 }
 0x293   :  { %972 = vrot.lane.b32.xlu2 %v339_v55, %s4789_s29 }
 0x29a   :  { %378 = vrot.lane.b32.xlu0 %v354_v2, %s4786_s0  ;;  %962 = vrot.lane.b32.xlu1 %v4956_v60, %s4791_s4 }
 0x29b   :  { %1258 = vrot.lane.b32.xlu2 %v4964_v61, %s4792_s5 }
 0x2a1   :  { %v375_v3 = vpop.permute.xlu2 %374 }
 0x2a2   :  { %1274 = vrot.lane.b32.xlu0 %v4947_v58, %s4790_s30  ;;  %1262 = vrot.lane.b32.xlu1 %v4954_v59, %s4792_s5 }
 0x2a3   :  { %964 = vrot.lane.b32.xlu2 %v4954_v59, %s4791_s4 }
 0x2aa   :  { %1272 = vrot.lane.b32.xlu0 %v342_v46, %s4790_s30  ;;  %968 = vrot.lane.b32.xlu1 %v4975_v63, %s4791_s4 }
 0x2ab   :  { %1264 = vrot.lane.b32.xlu2 %v4973_v47, %s4792_s5 }
 0x2b2   :  { %960 = vrot.lane.b32.xlu0 %v4964_v61, %s4791_s4  ;;  %1280 = vrot.lane.b32.xlu1 %v354_v2, %s4790_s30 }
 0x2b3   :  { %982 = vrot.lane.b32.xlu2 %v354_v2, %s4789_s29 }
 0x2ba   :  { %1260 = vrot.lane.b32.xlu0 %v4956_v60, %s4792_s5  ;;  %4288 = vrot.lane.b32.xlu1 %v5009_v4, %s4793_s6 }
 0x2bb   :  { %4293 = vrot.lane.b32.xlu2 %v5011_v5, %s4793_s6 }
 0x2bc   :  { %v371_v7 = vpop.permute.xlu2 %370 }
 0x2c1   :  { %v377_v11 = vpop.permute.xlu1 %376 }
 0x2c2   :  { %966 = vrot.lane.b32.xlu0 %v4973_v47, %s4791_s4  ;;  %1268 = vrot.lane.b32.xlu1 %v5019_v8, %s4792_s5 }
 0x2c3   :  { %672 = vrot.lane.b32.xlu2 %v5019_v8, %s4788_s28 }
 0x2c5   :  { %v5027_v9 = vpop.permute.xlu2 %676 }
 0x2ca   :  { %1266 = vrot.lane.b32.xlu0 %v4975_v63, %s4792_s5 }
 0x2cb   :  { %970 = vrot.lane.b32.xlu2 %v5019_v8, %s4791_s4 }
 0x2cc   :  { %v369_v13 = vpop.permute.xlu1 %368 }
 0x2cd   :  { %v5033_v10 = vpop.permute.xlu2 %664 }
 0x2d2   :  { %684 = vrot.lane.b32.xlu0 %v354_v2, %s4787_s2 }
 0x2d4   :  { %v5044_v18 = vpop.permute.xlu1 %680 }
 0x2d5   :  { %v5036_v12 = vpop.permute.xlu2 %1276 }
 0x2da   :  { %4283 = vrot.lane.b32.xlu0 %v5040_v14, %s4793_s6 }
 0x2dc   :  { %v373_v15 = vpop.permute.xlu0 %372  ;;  %v5050_v20 = vpop.permute.xlu1 %674 }
 0x2dd   :  { %v683_v16 = vpop.permute.xlu2 %682 }
 0x2e4   :  { %v5046_v54 = vpop.permute.xlu0 %678  ;;  %v5054_v24 = vpop.permute.xlu1 %666 }
 0x2e5   :  { %v5048_v19 = vpop.permute.xlu2 %1278 }
 0x2ec   :  { %v5052_v22 = vpop.permute.xlu0 %662  ;;  %v977_v31 = vpop.permute.xlu1 %976 }
 0x2ed   :  { %v973_v23 = vpop.permute.xlu2 %972 }
 0x2f4   :  { %v5056_v26 = vpop.permute.xlu0 %668  ;;  %v5062_v34 = vpop.permute.xlu1 %670 }
 0x2f5   :  { %v5058_v27 = vpop.permute.xlu2 %1258 }
 0x2fc   :  { %v979_v28 = vpop.permute.xlu0 %978  ;;  %v975_v39 = vpop.permute.xlu1 %974 }
 0x2fd   :  { %v965_v30 = vpop.permute.xlu2 %964 }
 0x304   :  { %v981_v62 = vpop.permute.xlu0 %980  ;;  %v1271_v45 = vpop.permute.xlu1 %1270 }
 0x305   :  { %v5060_v32 = vpop.permute.xlu2 %1264 }
 0x30c   :  { %v379_v35 = vpop.permute.xlu0 %378  ;;  %v963_v49 = vpop.permute.xlu1 %962 }
 0x30d   :  { %v983_v37 = vpop.permute.xlu2 %982  ;;  %4085 = vmatpush.xpose.msk.msra.mxu2 %vm380_vm6, %v379_v35 }
 0x30e   :  { %4121 = vmatpush.xpose.msk.msrb.mxu0 %vm380_vm6, %v983_v37 }
 0x311   :  { %4086 = vmatpush.xpose.msk.msra.mxu2 %vm380_vm6, %v377_v11 }
 0x312   :  { %4122 = vmatpush.xpose.msk.msrb.mxu0 %vm380_vm6, %v981_v62  ;;  %v137_v62 = vld [vmem:[#allocation6 + $0x40] sm:$0xff] }
 0x314   :  { %v1275_v40 = vpop.permute.xlu0 %1274  ;;  %v1263_v50 = vpop.permute.xlu1 %1262 }
 0x315   :  { %v4294_v42 = vpop.permute.xlu2 %4293  ;;  %4087 = vmatpush.xpose.msk.msra.mxu2 %vm380_vm6, %v375_v3 }
 0x316   :  { %4123 = vmatpush.xpose.msk.msrb.mxu0 %vm380_vm6, %v979_v28  ;;  %v4295_v38 = vunpack.i.l.bf16 %v4294_v42  ;;  %v4296_v43 = vunpack.i.h.bf16 %v4294_v42 }
 0x318   :  { %637 = vmatpush.msrb.mxu3 %v4295_v38 }
 0x319   :  { %4088 = vmatpush.xpose.msk.msra.mxu2 %vm380_vm6, %v373_v15 }
 0x31a   :  { %638 = vmatpush.msrb.mxu3 %v4296_v43  ;;  %4124 = vmatpush.xpose.msk.msrb.mxu0 %vm380_vm6, %v977_v31  ;;  %v5165_v31 = vld [vmem:[#allocation6 + $0x48] sm:$0xff]  ;;  %v5181_v43 = vld [vmem:[#allocation6 + $0x50] sm:$0xff] }
 0x31c   :  { %v1273_v6 = vpop.permute.xlu0 %1272  ;;  %v969_v52 = vpop.permute.xlu1 %968 }
 0x31d   :  { %4089 = vmatpush.xpose.msk.msra.mxu2 %vm380_vm6, %v371_v7  ;;  %v673_v1 = vpop.permute.xlu2 %672 }
 0x31e   :  { %4125 = vmatpush.xpose.msk.msrb.mxu0 %vm380_vm6, %v975_v39 }
 0x321   :  { %4090 = vmatpush.xpose.msk.msra.mxu2 %vm380_vm6, %v369_v13 }
 0x322   :  { %4126 = vmatpush.xpose.msk.msrb.mxu0 %vm380_vm6, %v973_v23 }
 0x324   :  { %v961_v48 = vpop.permute.xlu0 %960  ;;  %4091 = vmatmul.msk.f32.vlgmr.msra.gmra.mxu2 %vm380_vm6, %v4964_v61  ;;  %v1281_v55 = vpop.permute.xlu1 %1280 }
 0x325   :  { %4127 = vmatmul.msk.f32.vlgmr.msrb.gmra.mxu0 %vm380_vm6, %v961_v48  ;;  %v971_v46 = vpop.permute.xlu2 %970 }
 0x32c   :  { %v1261_v56 = vpop.permute.xlu0 %1260  ;;  %4092 = vmatmul.msk.f32.gmra.mxu2 %vm380_vm6, %v4956_v60 }
 0x32d   :  { %4128 = vmatmul.msk.f32.gmra.mxu0 %vm380_vm6, %v963_v49 }
 0x334   :  { %v967_v51 = vpop.permute.xlu0 %966  ;;  %4093 = vmatmul.msk.f32.gmra.mxu2 %vm380_vm6, %v4954_v59  ;;  %v4289_v59 = vpop.permute.xlu1 %4288 }
 0x335   :  { %4129 = vmatmul.msk.f32.gmra.mxu0 %vm380_vm6, %v965_v30  ;;  %v4290_v61 = vunpack.i.l.bf16 %v4289_v59 }
 0x33c   :  { %v1267_v53 = vpop.permute.xlu0 %1266  ;;  %4094 = vmatmul.msk.f32.gmra.mxu2 %vm380_vm6, %v4973_v47  ;;  %v4291_v47 = vunpack.i.h.bf16 %v4289_v59 }
 0x33d   :  { %4130 = vmatmul.msk.f32.gmra.mxu0 %vm380_vm6, %v967_v51 }
 0x344   :  { %v685_v41 = vpop.permute.xlu0 %684  ;;  %4095 = vmatmul.msk.f32.gmra.mxu2 %vm380_vm6, %v4975_v63 }
 0x345   :  { %4103 = vmatpush.xpose.msk.msrb.mxu1 %vm380_vm6, %v685_v41  ;;  %4131 = vmatmul.msk.f32.gmra.mxu0 %vm380_vm6, %v969_v52  ;;  %v5194_v52 = vld [vmem:[#allocation6 + $0x58] sm:$0xff] }
 0x349   :  { %4104 = vmatpush.xpose.msk.msrb.mxu1 %vm380_vm6, %v683_v16 }
 0x34c   :  { %v4284_v57 = vpop.permute.xlu0 %4283  ;;  %4096 = vmatmul.msk.f32.gmra.mxu2 %vm380_vm6, %v5019_v8  ;;  %v1269_v8 = vpop.permute.xlu1 %1268 }
 0x34d   :  { %4105 = vmatpush.xpose.msk.msrb.mxu1 %vm380_vm6, %v5044_v18  ;;  %4132 = vmatmul.msk.f32.gmra.mxu0 %vm380_vm6, %v971_v46  ;;  %v4285_v58 = vunpack.i.l.bf16 %v4284_v57  ;;  %v4286_v60 = vunpack.i.h.bf16 %v4284_v57 }
 0x34f   :  { %639 = vmatpush.msrb.mxu3 %v4285_v58 }
 0x351   :  { %640 = vmatpush.msrb.mxu3 %v4286_v60  ;;  %4106 = vmatpush.xpose.msk.msrb.mxu1 %vm380_vm6, %v5046_v54 }
 0x353   :  { %641 = vmatpush.msrb.mxu3 %v4290_v61 }
 0x355   :  { %642 = vmatpush.msrb.mxu3 %v4291_v47  ;;  %4107 = vmatpush.xpose.msk.msrb.mxu1 %vm380_vm6, %v5027_v9  ;;  %v5138_v9 = vld [vmem:[#allocation6 + $0x30] sm:$0xff] }
 0x359   :  { %4108 = vmatpush.xpose.msk.msrb.mxu1 %vm380_vm6, %v5050_v20 }
 0x35c   :  { %4109 = vmatmul.msk.f32.vlgmr.msrb.gmra.mxu1 %vm380_vm6, %v5052_v22 }
 0x35d   :  { %4139 = vmatpush.xpose.msk.msra.mxu1 %vm380_vm6, %v1281_v55 }
 0x361   :  { %4140 = vmatpush.xpose.msk.msra.mxu1 %vm380_vm6, %v5048_v19 }
 0x364   :  { %4110 = vmatmul.msk.f32.gmra.mxu1 %vm380_vm6, %v5033_v10 }
 0x365   :  { %4141 = vmatpush.xpose.msk.msra.mxu1 %vm380_vm6, %v5036_v12 }
 0x369   :  { %4142 = vmatpush.xpose.msk.msra.mxu1 %vm380_vm6, %v1275_v40 }
 0x36c   :  { %4111 = vmatmul.msk.f32.gmra.mxu1 %vm380_vm6, %v5054_v24 }
 0x36d   :  { %4143 = vmatpush.xpose.msk.msra.mxu1 %vm380_vm6, %v1273_v6 }
 0x371   :  { %4144 = vmatpush.xpose.msk.msra.mxu1 %vm380_vm6, %v1271_v45 }
 0x374   :  { %4112 = vmatmul.msk.f32.gmra.mxu1 %vm380_vm6, %v5056_v26 }
 0x37c   :  { %4113 = vmatmul.msk.f32.gmra.mxu1 %vm380_vm6, %v5062_v34 }
 0x384   :  { %4114 = vmatmul.msk.f32.gmra.mxu1 %vm380_vm6, %v673_v1 }
 0x38c   :  { %4145 = vmatmul.msk.f32.vlgmr.msra.gmra.mxu1 %vm380_vm6, %v5058_v27 }
 0x394   :  { %4146 = vmatmul.msk.f32.gmra.mxu1 %vm380_vm6, %v1261_v56 }
 0x39c   :  { %4147 = vmatmul.msk.f32.gmra.mxu1 %vm380_vm6, %v1263_v50 }
 0x3a2   :  { %v1025_v12 = vpop.f32.mrf.mxu0 }
 0x3a3   :  { %v5146_v15 = vadd.f32 %v1025_v12, %v5138_v9 }
 0x3a4   :  { %4148 = vmatmul.msk.f32.gmra.mxu1 %vm380_vm6, %v5060_v32 }
 0x3a5   :  { %v1043_v20 = vsel %vm446_vm7, %v5146_v15, -inf }
 0x3a7   :  { %v428_v63 = vpop.f32.mrf.mxu2 }
 0x3a8   :  { %v5156_v23 = vadd.f32 %v428_v63, %v5138_v9 }
 0x3aa   :  { %v1028_v22 = vpop.f32.mrf.mxu0  ;;  %v447_v28 = vsel %vm446_vm7, %v5156_v23, -inf }
 0x3ab   :  { %v5159_v24 = vadd.f32 %v1028_v22, %v5130_v0 }
 0x3ac   :  { %4149 = vmatmul.msk.f32.gmra.mxu1 %vm380_vm6, %v1267_v53 }
 0x3ad   :  { %v1046_v30 = vsel %vm446_vm7, %v5159_v24, -inf }
 0x3af   :  { %v431_v2 = vpop.f32.mrf.mxu2 }
 0x3b0   :  { %v5133_v3 = vadd.f32 %v431_v2, %v5130_v0 }
 0x3b2   :  { %v450_v7 = vsel %vm446_vm7, %v5133_v3, -inf  ;;  %v1031_v56 = vpop.f32.mrf.mxu0 }
 0x3b3   :  { %451 = vmax.xlane.f32.xlu2 %v450_v7  ;;  %v5192_v51 = vadd.f32 %v1031_v56, %v137_v62 }
 0x3b4   :  { %4150 = vmatmul.msk.f32.gmra.mxu1 %vm380_vm6, %v1269_v8 }
 0x3b5   :  { %v1049_v46 = vsel %vm446_vm7, %v5192_v51, -inf }
 0x3b7   :  { %v434_v16 = vpop.f32.mrf.mxu2 }
 0x3b8   :  { %v5186_v6 = vadd.f32 %v434_v16, %v137_v62 }
 0x3ba   :  { %v453_v50 = vsel %vm446_vm7, %v5186_v6, -inf  ;;  %v1034_v12 = vpop.f32.mrf.mxu0 }
 0x3bb   :  { %v5232_v16 = vadd.f32 %v1034_v12, %v5165_v31 }
 0x3bf   :  { %v437_v27 = vpop.f32.mrf.mxu2 }
 0x3c0   :  { %v5168_v32 = vadd.f32 %v437_v27, %v5165_v31 }
 0x3c2   :  { %v456_v40 = vsel %vm446_vm7, %v5168_v32, -inf }
 0x3c7   :  { %v440_v42 = vpop.f32.mrf.mxu2 }
 0x3c8   :  { %v5184_v45 = vadd.f32 %v440_v42, %v5181_v43 }
 0x3ca   :  { %v459_v49 = vsel %vm446_vm7, %v5184_v45, -inf }
 0x3cf   :  { %v443_v58 = vpop.f32.mrf.mxu2 }
 0x3d0   :  { %v5209_v59 = vadd.f32 %v443_v58, %v5194_v52 }
 0x3d2   :  { %v462_v60 = vsel %vm446_vm7, %v5209_v59, -inf }
 0x3d9   :  { %v727_v10 = vpop.f32.mrf.mxu1 }
 0x3da   :  { %v5141_v11 = vadd.f32 %v727_v10, %v5138_v9 }
 0x3dc   :  { %v745_v13 = vsel %vm446_vm7, %v5141_v11, -inf }
 0x3dd   :  { %746 = vmax.xlane.f32.xlu0 %v745_v13 }
 0x3e1   :  { %v730_v18 = vpop.f32.mrf.mxu1 }
 0x3e2   :  { %v5149_v54 = vadd.f32 %v730_v18, %v5130_v0 }
 0x3e4   :  { %v748_v19 = vsel %vm446_vm7, %v5149_v54, -inf }
 0x3e5   :  { %749 = vmax.xlane.f32.xlu1 %v748_v19  ;;  %1044 = vmax.xlane.f32.xlu0 %v1043_v20  ;;  %v1052_v19 = vsel %vm446_vm7, %v5232_v16, -inf  ;;  %v1037_v20 = vpop.f32.mrf.mxu0 }
 0x3e6   :  { %v5240_v27 = vadd.f32 %v1037_v20, %v5181_v43 }
 0x3e9   :  { %v733_v26 = vpop.f32.mrf.mxu1 }
 0x3ea   :  { %v5170_v34 = vadd.f32 %v733_v26, %v137_v62 }
 0x3ec   :  { %v751_v38 = vsel %vm446_vm7, %v5170_v34, -inf }
 0x3ed   :  { %448 = vmax.xlane.f32.xlu0 %v447_v28  ;;  %1047 = vmax.xlane.f32.xlu1 %v1046_v30  ;;  %v1055_v28 = vsel %vm446_vm7, %v5240_v27, -inf }
 0x3f1   :  { %v736_v35 = vpop.f32.mrf.mxu1 }
 0x3f2   :  { %v5173_v37 = vadd.f32 %v736_v35, %v5165_v31 }
 0x3f4   :  { %v754_v39 = vsel %vm446_vm7, %v5173_v37, -inf }
 0x3f5   :  { %755 = vmax.xlane.f32.xlu2 %v754_v39  ;;  %457 = vmax.xlane.f32.xlu0 %v456_v40 }
 0x3f6   :  { %752 = vmax.xlane.f32.xlu1 %v751_v38 }
 0x3f9   :  { %v739_v48 = vpop.f32.mrf.mxu1 }
 0x3fa   :  { %v5197_v53 = vadd.f32 %v739_v48, %v5181_v43 }
 0x3fc   :  { %v757_v57 = vsel %vm446_vm7, %v5197_v53, -inf }
 0x3fd   :  { %460 = vmax.xlane.f32.xlu2 %v459_v49 }
 0x3fe   :  { %454 = vmax.xlane.f32.xlu1 %v453_v50 }
 0x401   :  { %v742_v1 = vpop.f32.mrf.mxu1 }
 0x402   :  { %v5200_v55 = vadd.f32 %v742_v1, %v5194_v52 }
 0x404   :  { %v760_v41 = vsel %vm446_vm7, %v5200_v55, -inf }
 0x405   :  { %761 = vmax.xlane.f32.xlu0 %v760_v41  ;;  %1050 = vmax.xlane.f32.xlu2 %v1049_v46 }
 0x406   :  { %758 = vmax.xlane.f32.xlu1 %v757_v57 }
 0x409   :  { %v1323_v61 = vpop.f32.mrf.mxu1 }
 0x40a   :  { %v5222_v7 = vadd.f32 %v1323_v61, %v5138_v9 }
 0x40c   :  { %v1341_v10 = vsel %vm446_vm7, %v5222_v7, -inf }
 0x40e   :  { %463 = vmax.xlane.f32.xlu1 %v462_v60 }
 0x411   :  { %v1326_v47 = vpop.f32.mrf.mxu1 }
 0x412   :  { %v5229_v13 = vadd.f32 %v1326_v47, %v5130_v0 }
 0x414   :  { %v1344_v18 = vsel %vm446_vm7, %v5229_v13, -inf }
 0x419   :  { %4308 = vrot.lane.b32.xlu0 %v5009_v4, %s4794_s7  ;;  %v1329_v63 = vpop.f32.mrf.mxu1 }
 0x41a   :  { %v5219_v2 = vadd.f32 %v1329_v63, %v137_v62 }
 0x41c   :  { %v1347_v8 = vsel %vm446_vm7, %v5219_v2, -inf }
 0x41d   :  { %4303 = vrot.lane.b32.xlu2 %v5040_v14, %s4794_s7 }
 0x421   :  { %v1332_v50 = vpop.f32.mrf.mxu1 }
 0x422   :  { %v5269_v63 = vadd.f32 %v1332_v50, %v5165_v31 }
 0x426   :  { %v452_v62 = vpop.xlane.xlu2 %451 }
 0x427   :  { %4298 = vrot.lane.b32.xlu1 %v5011_v5, %s4794_s7 }
 0x429   :  { %v1335_v61 = vpop.f32.mrf.mxu1 }
 0x443   :  { %1348 = vmax.xlane.f32.xlu0 %v1347_v8 }
 0x446   :  { %1342 = vmax.xlane.f32.xlu2 %v1341_v10 }
 0x44e   :  { %1345 = vmax.xlane.f32.xlu2 %v1344_v18  ;;  %v1350_v18 = vsel %vm446_vm7, %v5269_v63, -inf }
 0x450   :  { %v747_v9 = vpop.xlane.xlu0 %746 }
 0x451   :  { %v763_v22 = vsub.f32 %v5141_v11, %v747_v9  ;;  %1053 = vmax.xlane.f32.xlu1 %v1052_v19  ;;  %v466_v11 = vsub.f32 %v5133_v3, %v452_v62 }
 0x453   :  { %v769_v26 = vmul.f32 1.442695, %v763_v22  ;;  %v473_v38 = vmul.f32 1.442695, %v466_v11  ;;  %v1338_v22 = vpop.f32.mrf.mxu1 }
 0x455   :  { %4434 = vpow2.f32 %v769_v26 }
 0x458   :  { %v5242_v0 = vpop.xlane.xlu0 %1044  ;;  %v750_v30 = vpop.xlane.xlu1 %749 }
 0x459   :  { %1056 = vmax.xlane.f32.xlu1 %v1055_v28  ;;  %v764_v35 = vsub.f32 %v5149_v54, %v750_v30 }
 0x45b   :  { %v5247_v39 = vpop.eup %4434  ;;  %v771_v40 = vmul.f32 1.442695, %v764_v35 }
 0x45c   :  { %v781_v42 = vsel %vm446_vm7, %v5247_v39, 0.0 }
 0x45d   :  { %782 = vadd.xlane.f32.xlu0 %v781_v42  ;;  %4436 = vpow2.f32 %v771_v40 }
 0x45e   :  { %4438 = vpow2.f32 %v473_v38 }
 0x460   :  { %v449_v48 = vpop.xlane.xlu0 %448  ;;  %v5252_v49 = vpop.xlane.xlu1 %1047 }
 0x461   :  { %v465_v56 = vsub.f32 %v5156_v23, %v449_v48 }
 0x463   :  { %v471_v1 = vmul.f32 1.442695, %v465_v56  ;;  %v5255_v41 = vpop.eup %4436 }
 0x464   :  { %v784_v3 = vsel %vm446_vm7, %v5255_v41, 0.0  ;;  %v5259_v46 = vpop.eup %4438 }
 0x465   :  { %4440 = vpow2.f32 %v471_v1  ;;  %785 = vadd.xlane.f32.xlu0 %v784_v3  ;;  %v486_v47 = vsel %vm446_vm7, %v5259_v46, 0.0 }
 0x468   :  { %v756_v8 = vpop.xlane.xlu2 %755  ;;  %v458_v26 = vpop.xlane.xlu0 %457 }
 0x469   :  { %v753_v54 = vpop.xlane.xlu1 %752  ;;  %v766_v19 = vsub.f32 %v5173_v37, %v756_v8  ;;  %v468_v37 = vsub.f32 %v5168_v32, %v458_v26 }
 0x46a   :  { %v765_v57 = vsub.f32 %v5170_v34, %v753_v54 }
 0x46b   :  { %v5262_v58 = vpop.eup %4440  ;;  %v775_v31 = vmul.f32 1.442695, %v766_v19  ;;  %v477_v48 = vmul.f32 1.442695, %v468_v37 }
 0x46c   :  { %v773_v60 = vmul.f32 1.442695, %v765_v57  ;;  %v483_v23 = vsel %vm446_vm7, %v5262_v58, 0.0  ;;  %v1040_v57 = vpop.f32.mrf.mxu0 }
 0x46d   :  { %484 = vadd.xlane.f32.xlu2 %v483_v23  ;;  %487 = vadd.xlane.f32.xlu0 %v486_v47 }
 0x46e   :  { %4442 = vpow2.f32 %v773_v60 }
 0x470   :  { %v461_v30 = vpop.xlane.xlu2 %460 }
 0x471   :  { %v455_v10 = vpop.xlane.xlu1 %454  ;;  %v469_v11 = vsub.f32 %v5184_v45, %v461_v30  ;;  %v1061_v45 = vsub.f32 %v5146_v15, %v5242_v0  ;;  %v5308_v0 = vadd.f32 %v1040_v57, %v5194_v52 }
 0x472   :  { %v467_v34 = vsub.f32 %v5186_v6, %v455_v10  ;;  %v5280_v6 = vadd.f32 %v1338_v22, %v5194_v52 }
 0x473   :  { %v479_v56 = vmul.f32 1.442695, %v469_v11  ;;  %v1067_v15 = vmul.f32 1.442695, %v1061_v45  ;;  %v1058_v10 = vsel %vm446_vm7, %v5308_v0, -inf }
 0x474   :  { %v475_v12 = vmul.f32 1.442695, %v467_v34  ;;  %v5274_v9 = vpop.eup %4442  ;;  %v1356_v38 = vsel %vm446_vm7, %v5280_v6, -inf }
 0x475   :  { %1351 = vmax.xlane.f32.xlu2 %v1350_v18  ;;  %v787_v20 = vsel %vm446_vm7, %v5274_v9, 0.0 }
 0x476   :  { %4444 = vpow2.f32 %v475_v12  ;;  %788 = vadd.xlane.f32.xlu0 %v787_v20 }
 0x477   :  { %4446 = vpow2.f32 %v775_v31 }
 0x478   :  { %v762_v50 = vpop.xlane.xlu0 %761  ;;  %v1051_v12 = vpop.xlane.xlu2 %1050 }
 0x479   :  { %v759_v28 = vpop.xlane.xlu1 %758  ;;  %v768_v3 = vsub.f32 %v5200_v55, %v762_v50 }
 0x47a   :  { %v767_v62 = vsub.f32 %v5197_v53, %v759_v28  ;;  %v5292_v53 = vadd.f32 %v1335_v61, %v5181_v43 }
 0x47b   :  { %v779_v23 = vmul.f32 1.442695, %v768_v3 }
 0x47c   :  { %v5283_v35 = vpop.eup %4444  ;;  %v777_v40 = vmul.f32 1.442695, %v767_v62  ;;  %v1353_v54 = vsel %vm446_vm7, %v5292_v53, -inf }
 0x47d   :  { %v489_v42 = vsel %vm446_vm7, %v5283_v35, 0.0  ;;  %v5294_v32 = vpop.eup %4446 }
 0x47e   :  { %490 = vadd.xlane.f32.xlu1 %v489_v42  ;;  %4448 = vpow2.f32 %v777_v40  ;;  %1357 = vmax.xlane.f32.xlu0 %v1356_v38  ;;  %v790_v43 = vsel %vm446_vm7, %v5294_v32, 0.0 }
 0x47f   :  { %4450 = vpow2.f32 %v477_v48 }
 0x480   :  { %4452 = vpow2.f32 %v479_v56  ;;  %v4304_v37 = vpop.permute.xlu2 %4303 }
 0x481   :  { %v464_v55 = vpop.xlane.xlu1 %463  ;;  %4454 = vpow2.f32 %v1067_v15  ;;  %v4305_v11 = vunpack.i.l.bf16 %v4304_v37  ;;  %v4306_v42 = vunpack.i.h.bf16 %v4304_v37 }
 0x482   :  { %4456 = vpow2.f32 %v779_v23  ;;  %v470_v8 = vsub.f32 %v5209_v59, %v464_v55  ;;  %v1062_v59 = vsub.f32 %v5159_v24, %v5252_v49 }
 0x484   :  { %v5298_v1 = vpop.eup %4448  ;;  %v481_v18 = vmul.f32 1.442695, %v470_v8  ;;  %v1069_v26 = vmul.f32 1.442695, %v1062_v59 }
 0x485   :  { %v793_v60 = vsel %vm446_vm7, %v5298_v1, 0.0  ;;  %v5310_v61 = vpop.eup %4450 }
 0x486   :  { %1354 = vmax.xlane.f32.xlu1 %v1353_v54  ;;  %791 = vadd.xlane.f32.xlu0 %v790_v43  ;;  %v5312_v47 = vpop.eup %4452  ;;  %v492_v34 = vsel %vm446_vm7, %v5310_v61, 0.0  ;;  %4458 = vpow2.f32 %v481_v18 }
 0x487   :  { %794 = vadd.xlane.f32.xlu2 %v793_v60  ;;  %v495_v52 = vsel %vm446_vm7, %v5312_v47, 0.0  ;;  %v5321_v19 = vpop.eup %4454  ;;  %4460 = vpow2.f32 %v1069_v26 }
 0x488   :  { %v5323_v20 = vpop.eup %4456  ;;  %v1079_v22 = vsel %vm446_vm7, %v5321_v19, 0.0 }
 0x489   :  { %v796_v31 = vsel %vm446_vm7, %v5323_v20, 0.0 }
 0x48b   :  { %v4309_v49 = vpop.permute.xlu0 %4308 }
 0x48c   :  { %v5331_v62 = vpop.eup %4458  ;;  %v4310_v38 = vunpack.i.l.bf16 %v4309_v49  ;;  %v4311_v56 = vunpack.i.h.bf16 %v4309_v49 }
 0x48d   :  { %v498_v24 = vsel %vm446_vm7, %v5331_v62, 0.0  ;;  %v5335_v48 = vpop.eup %4460 }
 0x48e   :  { %1059 = vmax.xlane.f32.xlu1 %v1058_v10  ;;  %493 = vadd.xlane.f32.xlu0 %v492_v34  ;;  %v1082_v50 = vsel %vm446_vm7, %v5335_v48, 0.0  ;;  %v1063_v34 = vsub.f32 %v5192_v51, %v1051_v12 }
 0x48f   :  { %496 = vadd.xlane.f32.xlu2 %v495_v52 }
 0x490   :  { %v1071_v18 = vmul.f32 1.442695, %v1063_v34 }
 0x496   :  { %1080 = vadd.xlane.f32.xlu1 %v1079_v22 }
 0x497   :  { %797 = vadd.xlane.f32.xlu2 %v796_v31 }
 0x499   :  { %v4299_v28 = vpop.permute.xlu1 %4298 }
 0x49a   :  { %v4300_v30 = vunpack.i.l.bf16 %v4299_v28  ;;  %v4301_v40 = vunpack.i.h.bf16 %v4299_v28 }
 0x49c   :  { %935 = vmatpush.msra.mxu3 %v4300_v30 }
 0x49e   :  { %936 = vmatpush.msra.mxu3 %v4301_v40 }
 0x49f   :  { %499 = vadd.xlane.f32.xlu2 %v498_v24 }
 0x4a0   :  { %937 = vmatpush.msra.mxu3 %v4305_v11 }
 0x4a2   :  { %938 = vmatpush.msra.mxu3 %v4306_v42  ;;  %4323 = vrot.lane.b32.xlu0 %v5040_v14, %s4795_s8 }
 0x4a4   :  { %939 = vmatpush.msra.mxu3 %v4310_v38 }
 0x4a6   :  { %940 = vmatpush.msra.mxu3 %v4311_v56 }
 0x4a7   :  { %1083 = vadd.xlane.f32.xlu2 %v1082_v50 }
 0x4aa   :  { %4333 = vrot.lane.b32.xlu0 %v5009_v4, %s4795_s8 }
 0x4af   :  { %4313 = vrot.lane.b32.xlu1 %v5011_v5, %s4795_s8 }
 0x4b6   :  { %v1349_v57 = vpop.xlane.xlu0 %1348 }
 0x4b7   :  { %4328 = vrot.lane.b32.xlu1 %v5040_v14, %s4796_s9  ;;  %v1361_v23 = vsub.f32 %v5219_v2, %v1349_v57 }
 0x4b9   :  { %v1343_v45 = vpop.xlane.xlu2 %1342  ;;  %v1369_v10 = vmul.f32 1.442695, %v1361_v23 }
 0x4ba   :  { %v1359_v3 = vsub.f32 %v5222_v7, %v1343_v45 }
 0x4bc   :  { %v1365_v54 = vmul.f32 1.442695, %v1359_v3 }
 0x4be   :  { %4462 = vpow2.f32 %v1365_v54 }
 0x4bf   :  { %4318 = vrot.lane.b32.xlu2 %v5011_v5, %s4796_s9 }
 0x4c1   :  { %v1346_v43 = vpop.xlane.xlu2 %1345 }
 0x4c2   :  { %v1360_v15 = vsub.f32 %v5229_v13, %v1346_v43 }
 0x4c4   :  { %v5350_v60 = vpop.xlane.xlu1 %1053  ;;  %v1367_v55 = vmul.f32 1.442695, %v1360_v15  ;;  %v5356_v14 = vpop.eup %4462 }
 0x4c5   :  { %v1377_v7 = vsel %vm446_vm7, %v5356_v14, 0.0 }
 0x4c6   :  { %4464 = vpow2.f32 %v1367_v55 }
 0x4c7   :  { %4466 = vpow2.f32 %v1369_v10 }
 0x4c8   :  { %4468 = vpow2.f32 %v1071_v18 }
 0x4cc   :  { %v1057_v5 = vpop.xlane.xlu1 %1056  ;;  %v5362_v13 = vpop.eup %4464 }
 0x4cd   :  { %v1065_v52 = vsub.f32 %v5240_v27, %v1057_v5  ;;  %v1380_v22 = vsel %vm446_vm7, %v5362_v13, 0.0  ;;  %v5368_v31 = vpop.eup %4466 }
 0x4ce   :  { %v1383_v51 = vsel %vm446_vm7, %v5368_v31, 0.0  ;;  %v5372_v12 = vpop.eup %4468 }
 0x4cf   :  { %v1075_v59 = vmul.f32 1.442695, %v1065_v52  ;;  %v1085_v37 = vsel %vm446_vm7, %v5372_v12, 0.0 }
 0x4d0   :  { %v5354_v8 = vpop.xlane.xlu0 %782 }
 0x4d1   :  { %4470 = vpow2.f32 %v1075_v59 }
 0x4d4   :  { %1378 = vadd.xlane.f32.xlu0 %v1377_v7 }
 0x4d7   :  { %v5374_v28 = vpop.eup %4470 }
 0x4d8   :  { %v5364_v2 = vpop.xlane.xlu0 %785  ;;  %v1091_v49 = vsel %vm446_vm7, %v5374_v28, 0.0 }
 0x4dc   :  { %1381 = vadd.xlane.f32.xlu0 %v1380_v22 }
 0x4e0   :  { %v485_v26 = vpop.xlane.xlu2 %484  ;;  %v488_v27 = vpop.xlane.xlu0 %487 }
 0x4e1   :  { %4472 = vrcp.f32 %v485_v26  ;;  %1384 = vadd.xlane.f32.xlu1 %v1383_v51  ;;  %v512_v45 = vand.u32 2147483648, %v485_v26  ;;  %v510_v43 = vand.u32 2147483647, %v485_v26  ;;  %vm506_vm9 = vweird.f32 %v485_v26 }
 0x4e2   :  { %4474 = vrcp.f32 %v488_v27  ;;  %v527_v34 = vand.u32 2147483648, %v488_v27  ;;  %vm521_vm13 = vweird.f32 %v488_v27  ;;  %v525_v59 = vand.u32 2147483647, %v488_v27 }
 0x4e3   :  { %v513_v55 = vor.u32 1.1754944e-38, %v512_v45  ;;  %vm511_vm11 = vcmp.eq.f32.partialorder %v510_v43, 8.507059e+37 }
 0x4e4   :  { %vm526_vm15 = vcmp.eq.f32.partialorder %v525_v59, 8.507059e+37 }
 0x4e7   :  { %v4473_v30 = vpop.eup %4472 }
 0x4e8   :  { %v4475_v40 = vpop.eup %4474  ;;  %v502_v11 = vmul.f32 %v4473_v30, %v485_v26  ;;  %1086 = vadd.xlane.f32.xlu2 %v1085_v37  ;;  %v1352_v24 = vpop.xlane.xlu2 %1351  ;;  %vm507_vm8 = vweird.f32 %v4473_v30 }
 0x4e9   :  { %v517_v42 = vmul.f32 %v4475_v40, %v488_v27  ;;  %v1362_v38 = vsub.f32 %v5269_v63, %v1352_v24  ;;  %1092 = vadd.xlane.f32.xlu1 %v1091_v49  ;;  %v5381_v50 = vpop.xlane.xlu0 %788  ;;  %vm508_vm10 = vmor %vm506_vm9, %vm507_vm8  ;;  %vm522_vm12 = vweird.f32 %v4475_v40 }
 0x4ea   :  { %v503_v56 = vsub.f32 1.0, %v502_v11  ;;  %vm523_vm14 = vmor %vm521_vm13, %vm522_vm12 }
 0x4eb   :  { %v518_v3 = vsub.f32 1.0, %v517_v42  ;;  %v1371_v54 = vmul.f32 1.442695, %v1362_v38 }
 0x4ec   :  { %v504_v57 = vmul.f32 %v4473_v30, %v503_v56 }
 0x4ed   :  { %4476 = vpow2.f32 %v1371_v54  ;;  %v519_v15 = vmul.f32 %v4475_v40, %v518_v3 }
 0x4ee   :  { %v505_v23 = vadd.f32 %v4473_v30, %v504_v57 }
 0x4ef   :  { %v520_v5 = vadd.f32 %v4475_v40, %v519_v15 }
 0x4f0   :  { %v509_v10 = vsel %vm508_vm10, %v4473_v30, %v505_v23  ;;  %4338 = vrot.lane.b32.xlu0 %v5009_v4, %s4796_s9  ;;  %v528_v4 = vor.u32 1.1754944e-38, %v527_v34 }
 0x4f1   :  { %v491_v63 = vpop.xlane.xlu1 %490  ;;  %v514_v7 = vsel %vm511_vm11, %v513_v55, %v509_v10  ;;  %v1358_v52 = vpop.xlane.xlu0 %1357  ;;  %v524_v51 = vsel %vm523_vm14, %v4475_v40, %v520_v5 }
 0x4f2   :  { %4478 = vrcp.f32 %v491_v63  ;;  %v515_v18 = vmul.f32 %v5262_v58, %v514_v7  ;;  %v529_v30 = vsel %vm526_vm15, %v528_v4, %v524_v51  ;;  %v1364_v58 = vsub.f32 %v5280_v6, %v1358_v52 }
 0x4f3   :  { %v5386_v22 = vpop.eup %4476  ;;  %v530_v38 = vmul.f32 %v5259_v46, %v529_v30  ;;  %v542_v40 = vand.u32 2147483648, %v491_v63  ;;  %v540_v54 = vand.u32 2147483647, %v491_v63  ;;  %vm536_vm2 = vweird.f32 %v491_v63 }
 0x4f4   :  { %4097 = vmatmul.msk.f32.vlgmr.msrb.gmra.mxu3 %vm446_vm7, %v515_v18  ;;  %v1386_v26 = vsel %vm446_vm7, %v5386_v22, 0.0  ;;  %v1375_v57 = vmul.f32 1.442695, %v1364_v58 }
 0x4f5   :  { %1387 = vadd.xlane.f32.xlu2 %v1386_v26  ;;  %v543_v6 = vor.u32 1.1754944e-38, %v542_v40  ;;  %vm541_vm4 = vcmp.eq.f32.partialorder %v540_v54, 8.507059e+37 }
 0x4f8   :  { %v4479_v37 = vpop.eup %4478 }
 0x4f9   :  { %v532_v11 = vmul.f32 %v4479_v37, %v491_v63  ;;  %v1355_v24 = vpop.xlane.xlu1 %1354  ;;  %v5392_v49 = vpop.xlane.xlu0 %791  ;;  %vm537_vm0 = vweird.f32 %v4479_v37 }
 0x4fa   :  { %v5394_v27 = vpop.xlane.xlu2 %794  ;;  %v1363_v42 = vsub.f32 %v5292_v53, %v1355_v24  ;;  %vm538_vm3 = vmor %vm536_vm2, %vm537_vm0  ;;  %vm804_vm0 = vweird.f32 %v5354_v8 }
 0x4fb   :  { %v533_v56 = vsub.f32 1.0, %v532_v11 }
 0x4fc   :  { %v1373_v45 = vmul.f32 1.442695, %v1363_v42  ;;  %4098 = vmatmul.msk.f32.gmra.mxu3 %vm446_vm7, %v530_v38 }
 0x4fd   :  { %v534_v3 = vmul.f32 %v4479_v37, %v533_v56 }
 0x4fe   :  { %4480 = vpow2.f32 %v1373_v45 }
 0x4ff   :  { %v535_v43 = vadd.f32 %v4479_v37, %v534_v3  ;;  %4482 = vpow2.f32 %v1375_v57 }
 0x501   :  { %v1060_v15 = vpop.xlane.xlu1 %1059  ;;  %v539_v23 = vsel %vm538_vm3, %v4479_v37, %v535_v43  ;;  %v494_v53 = vpop.xlane.xlu0 %493 }
 0x502   :  { %v497_v46 = vpop.xlane.xlu2 %496  ;;  %v1066_v55 = vsub.f32 %v5308_v0, %v1060_v15  ;;  %v544_v10 = vsel %vm541_vm4, %v543_v6, %v539_v23  ;;  %4484 = vrcp.f32 %v494_v53  ;;  %v1064_v0 = vsub.f32 %v5232_v16, %v5350_v60 }
 0x503   :  { %v545_v5 = vmul.f32 %v5283_v35, %v544_v10  ;;  %4486 = vrcp.f32 %v497_v46  ;;  %v557_v60 = vand.u32 2147483648, %v494_v53  ;;  %v555_v38 = vand.u32 2147483647, %v494_v53 }
 0x504   :  { %v5401_v7 = vpop.eup %4480  ;;  %v1077_v34 = vmul.f32 1.442695, %v1066_v55  ;;  %v1073_v37 = vmul.f32 1.442695, %v1064_v0  ;;  %vm551_vm8 = vweird.f32 %v494_v53  ;;  %v572_v15 = vand.u32 2147483648, %v497_v46 }
 0x505   :  { %4099 = vmatmul.msk.f32.gmra.mxu3 %vm446_vm7, %v545_v5  ;;  %v1389_v63 = vsel %vm446_vm7, %v5401_v7, 0.0  ;;  %v5406_v52 = vpop.eup %4482  ;;  %v558_v40 = vor.u32 1.1754944e-38, %v557_v60  ;;  %vm556_vm10 = vcmp.eq.f32.partialorder %v555_v38, 8.507059e+37  ;;  %vm566_vm12 = vweird.f32 %v497_v46 }
 0x506   :  { %4488 = vpow2.f32 %v1077_v34  ;;  %1390 = vadd.xlane.f32.xlu2 %v1389_v63  ;;  %v1392_v58 = vsel %vm446_vm7, %v5406_v52, 0.0  ;;  %v570_v10 = vand.u32 2147483647, %v497_v46 }
 0x507   :  { %4490 = vrcp.f32 %v5354_v8 }
 0x508   :  { %v4485_v18 = vpop.eup %4484  ;;  %vm571_vm14 = vcmp.eq.f32.partialorder %v570_v10, 8.507059e+37 }
 0x509   :  { %v4487_v59 = vpop.eup %4486  ;;  %v547_v26 = vmul.f32 %v4485_v18, %v494_v53  ;;  %v5412_v4 = vpop.xlane.xlu1 %1080  ;;  %vm552_vm5 = vweird.f32 %v4485_v18 }
 0x50a   :  { %v5410_v35 = vpop.xlane.xlu2 %797  ;;  %v562_v51 = vmul.f32 %v4487_v59, %v497_v46  ;;  %4492 = vrcp.f32 %v5412_v4  ;;  %vm553_vm9 = vmor %vm551_vm8, %vm552_vm5  ;;  %vm567_vm11 = vweird.f32 %v4487_v59 }
 0x50b   :  { %v548_v11 = vsub.f32 1.0, %v547_v26  ;;  %4494 = vrcp.f32 %v5364_v2  ;;  %vm568_vm13 = vmor %vm566_vm12, %vm567_vm11 }
 0x50c   :  { %v5414_v30 = vpop.eup %4488  ;;  %v563_v24 = vsub.f32 1.0, %v562_v51  ;;  %4496 = vpow2.f32 %v1073_v37 }
 0x50d   :  { %v1094_v16 = vsel %vm446_vm7, %v5414_v30, 0.0  ;;  %v549_v42 = vmul.f32 %v4485_v18, %v548_v11  ;;  %v5423_v3 = vpop.eup %4490 }
 0x50e   :  { %1393 = vadd.xlane.f32.xlu2 %v1392_v58  ;;  %1095 = vadd.xlane.f32.xlu1 %v1094_v16  ;;  %v564_v56 = vmul.f32 %v4487_v59, %v563_v24  ;;  %v800_v53 = vmul.f32 %v5423_v3, %v5354_v8  ;;  %vm805_vm3 = vweird.f32 %v5423_v3 }
 0x50f   :  { %v550_v45 = vadd.f32 %v4485_v18, %v549_v42 }
 0x510   :  { %v565_v43 = vadd.f32 %v4487_v59, %v564_v56  ;;  %v5425_v23 = vpop.eup %4492 }
 0x511   :  { %v554_v57 = vsel %vm553_vm9, %v4485_v18, %v550_v45  ;;  %v5430_v5 = vpop.eup %4494  ;;  %v1098_v0 = vmul.f32 %v5425_v23, %v5412_v4  ;;  %v573_v18 = vor.u32 1.1754944e-38, %v572_v15  ;;  %vm1103_vm8 = vweird.f32 %v5425_v23  ;;  %vm5471_vm9 = vmor %vm804_vm0, %vm805_vm3 }
 0x512   :  { %v500_v54 = vpop.xlane.xlu2 %499  ;;  %v559_v6 = vsel %vm556_vm10, %v558_v40, %v554_v57  ;;  %v569_v34 = vsel %vm568_vm13, %v4487_v59, %v565_v43  ;;  %v5433_v63 = vpop.eup %4496  ;;  %v815_v46 = vmul.f32 %v5430_v5, %v5364_v2  ;;  %v808_v43 = vand.u32 2147483647, %v5354_v8 }
 0x513   :  { %4498 = vrcp.f32 %v500_v54  ;;  %v560_v55 = vmul.f32 %v5310_v61, %v559_v6  ;;  %v801_v61 = vsub.f32 1.0, %v800_v53  ;;  %v574_v51 = vsel %vm571_vm14, %v573_v18, %v569_v34 }
 0x514   :  { %v1088_v24 = vsel %vm446_vm7, %v5433_v63, 0.0  ;;  %v1099_v59 = vsub.f32 1.0, %v1098_v0  ;;  %v575_v16 = vmul.f32 %v5312_v47, %v574_v51  ;;  %v816_v42 = vsub.f32 1.0, %v815_v46  ;;  %v5447_v38 = vpop.permute.xlu0 %4323 }
 0x515   :  { %4100 = vmatmul.msk.f32.gmra.mxu3 %vm446_vm7, %v560_v55  ;;  %v802_v60 = vmul.f32 %v5423_v3, %v801_v61  ;;  %v587_v56 = vand.u32 2147483648, %v500_v54  ;;  %v585_v40 = vand.u32 2147483647, %v500_v54  ;;  %v810_v47 = vand.u32 2147483648, %v5354_v8 }
 0x516   :  { %v1100_v57 = vmul.f32 %v5425_v23, %v1099_v59  ;;  %vm581_vm2 = vweird.f32 %v500_v54  ;;  %v817_v34 = vmul.f32 %v5430_v5, %v816_v42  ;;  %v1108_v59 = vand.u32 2147483648, %v5412_v4 }
 0x517   :  { %v803_v55 = vadd.f32 %v5423_v3, %v802_v60  ;;  %v588_v53 = vor.u32 1.1754944e-38, %v587_v56  ;;  %vm586_vm5 = vcmp.eq.f32.partialorder %v585_v40, 8.507059e+37  ;;  %vm1102_vm10 = vweird.f32 %v5412_v4 }
 0x518   :  { %v1106_v56 = vand.u32 2147483647, %v5412_v4  ;;  %vm5485_vm11 = vmor %vm1102_vm10, %vm1103_vm8  ;;  %v4325_v40 = vunpack.i.l.bf16 %v5447_v38  ;;  %vm809_vm12 = vcmp.eq.f32.partialorder %v808_v43, 8.507059e+37  ;;  %vm819_vm13 = vweird.f32 %v5364_v2 }
 0x519   :  { %v4499_v26 = vpop.eup %4498  ;;  %v823_v43 = vand.u32 2147483647, %v5364_v2  ;;  %vm834_vm10 = vweird.f32 %v5381_v50 }
 0x51a   :  { %v577_v37 = vmul.f32 %v4499_v26, %v500_v54  ;;  %v5439_v11 = vpop.xlane.xlu2 %1083  ;;  %1089 = vadd.xlane.f32.xlu0 %v1088_v24  ;;  %vm582_vm15 = vweird.f32 %v4499_v26  ;;  %v1101_v24 = vadd.f32 %v5425_v23, %v1100_v57  ;;  %v811_v57 = vor.u32 1.1754944e-38, %v810_v47 }
 0x51b   :  { %4500 = vrcp.f32 %v5439_v11  ;;  %vm583_vm4 = vmor %vm581_vm2, %vm582_vm15  ;;  %vm1107_vm14 = vcmp.eq.f32.partialorder %v1106_v56, 8.507059e+37  ;;  %v818_v47 = vadd.f32 %v5430_v5, %v817_v34  ;;  %vm820_vm15 = vweird.f32 %v5430_v5 }
 0x51c   :  { %v578_v58 = vsub.f32 1.0, %v577_v37  ;;  %4502 = vrcp.f32 %v5381_v50  ;;  %v4334_v4 = vpop.permute.xlu0 %4333  ;;  %vm5513_vm2 = vmor %vm819_vm13, %vm820_vm15  ;;  %vm1117_vm3 = vweird.f32 %v5439_v11 }
 0x51d   :  { %4101 = vmatmul.msk.f32.gmra.mxu3 %vm446_vm7, %v575_v16  ;;  %4504 = vrcp.f32 %v5392_v49 }
 0x51e   :  { %v579_v45 = vmul.f32 %v4499_v26, %v578_v58  ;;  %4506 = vrcp.f32 %v5394_v27 }
 0x51f   :  { %4508 = vrcp.f32 %v5410_v35 }
 0x520   :  { %v580_v6 = vadd.f32 %v4499_v26, %v579_v45 }
 0x521   :  { %v5454_v15 = vpop.eup %4500  ;;  %v4314_v10 = vpop.permute.xlu1 %4313 }
 0x522   :  { %v1113_v0 = vmul.f32 %v5454_v15, %v5439_v11  ;;  %v4319_v18 = vpop.permute.xlu2 %4318  ;;  %v4315_v61 = vunpack.i.l.bf16 %v4314_v10  ;;  %v584_v46 = vsel %vm583_vm4, %v4499_v26, %v580_v6  ;;  %v5461_v51 = vpop.eup %4502  ;;  %v4316_v60 = vunpack.i.h.bf16 %v4314_v10 }
 0x523   :  { %v4320_v54 = vunpack.i.l.bf16 %v4319_v18  ;;  %v589_v37 = vsel %vm586_vm5, %v588_v53, %v584_v46  ;;  %v4321_v42 = vunpack.i.h.bf16 %v4319_v18  ;;  %v830_v45 = vmul.f32 %v5461_v51, %v5381_v50 }
 0x524   :  { %v1114_v58 = vsub.f32 1.0, %v1113_v0  ;;  %1233 = vmatpush.msrb.mxu2 %v4315_v61  ;;  %v590_v16 = vmul.f32 %v5331_v62, %v589_v37  ;;  %v807_v62 = vsel %vm5471_vm9, %v5423_v3, %v803_v55  ;;  %v1105_v3 = vsel %vm5485_vm11, %v5425_v23, %v1101_v24 }
 0x525   :  { %1531 = vmatpush.msrb.mxu3 %v4320_v54  ;;  %v1109_v55 = vor.u32 1.1754944e-38, %v1108_v59  ;;  %v4326_v10 = vunpack.i.h.bf16 %v5447_v38  ;;  %v812_v0 = vsel %vm809_vm12, %v811_v57, %v807_v62  ;;  %v831_v18 = vsub.f32 1.0, %v830_v45  ;;  %v5499_v54 = vpop.eup %4504 }
 0x526   :  { %4102 = vmatmul.msk.f32.gmra.mxu3 %vm446_vm7, %v590_v16  ;;  %1234 = vmatpush.msrb.mxu2 %v4316_v60  ;;  %v1115_v6 = vmul.f32 %v5454_v15, %v1114_v58  ;;  %v4335_v23 = vunpack.i.l.bf16 %v4334_v4  ;;  %v825_v38 = vand.u32 2147483648, %v5364_v2  ;;  %vm1118_vm0 = vweird.f32 %v5454_v15  ;;  %v4507_v45 = vpop.eup %4506 }
 0x527   :  { %1532 = vmatpush.msrb.mxu3 %v4321_v42  ;;  %v1110_v46 = vsel %vm1107_vm14, %v1109_v55, %v1105_v3  ;;  %v813_v34 = vmul.f32 %v5247_v39, %v812_v0  ;;  %v4336_v24 = vunpack.i.h.bf16 %v4334_v4  ;;  %v1123_v59 = vand.u32 2147483648, %v5439_v11  ;;  %vm1119_vm4 = vmor %vm1117_vm3, %vm1118_vm0 }
 0x528   :  { %1235 = vmatpush.msrb.mxu2 %v4325_v40  ;;  %v1116_v37 = vadd.f32 %v5454_v15, %v1115_v6  ;;  %v1111_v16 = vmul.f32 %v5321_v19, %v1110_v46  ;;  %v1121_v26 = vand.u32 2147483647, %v5439_v11  ;;  %v845_v39 = vmul.f32 %v5499_v54, %v5392_v49 }
 0x529   :  { %v4329_v53 = vpop.permute.xlu1 %4328  ;;  %v822_v19 = vsel %vm5513_vm2, %v5430_v5, %v818_v47  ;;  %v832_v2 = vmul.f32 %v5461_v51, %v831_v18  ;;  %v826_v42 = vor.u32 1.1754944e-38, %v825_v38  ;;  %vm824_vm5 = vcmp.eq.f32.partialorder %v823_v43, 8.507059e+37 }
 0x52a   :  { %v4330_v61 = vunpack.i.l.bf16 %v4329_v53  ;;  %1236 = vmatpush.msrb.mxu2 %v4326_v10  ;;  %v4331_v58 = vunpack.i.h.bf16 %v4329_v53  ;;  %v1120_v11 = vsel %vm1119_vm4, %v5454_v15, %v1116_v37  ;;  %v1124_v56 = vor.u32 1.1754944e-38, %v1123_v59 }
 0x52b   :  { %v827_v62 = vsel %vm824_vm5, %v826_v42, %v822_v19  ;;  %vm1122_vm8 = vcmp.eq.f32.partialorder %v1121_v26, 8.507059e+37  ;;  %v846_v8 = vsub.f32 1.0, %v845_v39  ;;  %v833_v5 = vadd.f32 %v5461_v51, %v832_v2 }
 0x52c   :  { %1237 = vmatpush.msrb.mxu2 %v4335_v23  ;;  %1533 = vmatpush.msrb.mxu3 %v4330_v61  ;;  %v1125_v40 = vsel %vm1122_vm8, %v1124_v56, %v1120_v11  ;;  %vm835_vm9 = vweird.f32 %v5461_v51  ;;  %v840_v57 = vand.u32 2147483648, %v5381_v50  ;;  %v828_v4 = vmul.f32 %v5255_v41, %v827_v62 }
 0x52d   :  { %v838_v3 = vand.u32 2147483647, %v5381_v50  ;;  %v1126_v15 = vmul.f32 %v5335_v48, %v1125_v40  ;;  %vm836_vm11 = vmor %vm834_vm10, %vm835_vm9  ;;  %v860_v6 = vmul.f32 %v4507_v45, %v5394_v27  ;;  %v847_v10 = vmul.f32 %v5499_v54, %v846_v8  ;;  %v4509_v48 = vpop.eup %4508 }
 0x52e   :  { %4115 = vmatmul.msk.f32.vlgmr.msra.gmra.mxu3 %vm446_vm7, %v813_v34  ;;  %1238 = vmatpush.msrb.mxu2 %v4336_v24  ;;  %v837_v55 = vsel %vm836_vm11, %v5461_v51, %v833_v5  ;;  %v841_v41 = vor.u32 1.1754944e-38, %v840_v57  ;;  %vm850_vm13 = vweird.f32 %v5499_v54  ;;  %v855_v47 = vand.u32 2147483648, %v5392_v49 }
 0x52f   :  { %1534 = vmatpush.msrb.mxu3 %v4331_v58  ;;  %4133 = vmatmul.msk.f32.vlgmr.msrb.gmra.mxu2 %vm446_vm7, %v1111_v16  ;;  %vm839_vm12 = vcmp.eq.f32.partialorder %v838_v3, 8.507059e+37  ;;  %v861_v0 = vsub.f32 1.0, %v860_v6  ;;  %v848_v50 = vadd.f32 %v5499_v54, %v847_v10  ;;  %vm849_vm14 = vweird.f32 %v5392_v49 }
 0x530   :  { %v842_v53 = vsel %vm839_vm12, %v841_v41, %v837_v55  ;;  %v853_v51 = vand.u32 2147483647, %v5392_v49  ;;  %vm851_vm15 = vmor %vm849_vm14, %vm850_vm13  ;;  %v875_v61 = vmul.f32 %v4509_v48, %v5410_v35  ;;  %v856_v43 = vor.u32 1.1754944e-38, %v855_v47 }
 0x531   :  { %v843_v18 = vmul.f32 %v5274_v9, %v842_v53  ;;  %v852_v23 = vsel %vm851_vm15, %v5499_v54, %v848_v50  ;;  %v862_v46 = vmul.f32 %v4507_v45, %v861_v0  ;;  %vm865_vm2 = vweird.f32 %v4507_v45 }
 0x532   :  { %vm854_vm0 = vcmp.eq.f32.partialorder %v853_v51, 8.507059e+37  ;;  %v876_v37 = vsub.f32 1.0, %v875_v61  ;;  %v870_v9 = vand.u32 2147483648, %v5394_v27  ;;  %vm864_vm3 = vweird.f32 %v5394_v27 }
 0x533   :  { %v857_v38 = vsel %vm854_vm0, %v856_v43, %v852_v23  ;;  %v863_v34 = vadd.f32 %v4507_v45, %v862_v46  ;;  %v868_v49 = vand.u32 2147483647, %v5394_v27  ;;  %vm866_vm4 = vmor %vm864_vm3, %vm865_vm2  ;;  %vm880_vm8 = vweird.f32 %v4509_v48 }
 0x534   :  { %v858_v24 = vmul.f32 %v5294_v32, %v857_v38  ;;  %v877_v54 = vmul.f32 %v4509_v48, %v876_v37  ;;  %v871_v58 = vor.u32 1.1754944e-38, %v870_v9  ;;  %v885_v39 = vand.u32 2147483648, %v5410_v35 }
 0x535   :  { %v867_v59 = vsel %vm866_vm4, %v4507_v45, %v863_v34  ;;  %vm869_vm5 = vcmp.eq.f32.partialorder %v868_v49, 8.507059e+37  ;;  %vm879_vm9 = vweird.f32 %v5410_v35  ;;  %v883_v27 = vand.u32 2147483647, %v5410_v35 }
 0x536   :  { %4116 = vmatmul.msk.f32.gmra.mxu3 %vm446_vm7, %v828_v4  ;;  %v872_v60 = vsel %vm869_vm5, %v871_v58, %v867_v59  ;;  %v878_v26 = vadd.f32 %v4509_v48, %v877_v54  ;;  %vm881_vm10 = vmor %vm879_vm9, %vm880_vm8  ;;  %v886_v42 = vor.u32 1.1754944e-38, %v885_v39 }
 0x537   :  { %4134 = vmatmul.msk.f32.gmra.mxu2 %vm446_vm7, %v1126_v15  ;;  %v873_v32 = vmul.f32 %v5298_v1, %v872_v60  ;;  %vm884_vm11 = vcmp.eq.f32.partialorder %v883_v27, 8.507059e+37 }
 0x538   :  { %v882_v19 = vsel %vm881_vm10, %v4509_v48, %v878_v26 }
 0x539   :  { %v887_v62 = vsel %vm884_vm11, %v886_v42, %v882_v19 }
 0x53a   :  { %v888_v45 = vmul.f32 %v5323_v20, %v887_v62 }
 0x53e   :  { %4117 = vmatmul.msk.f32.gmra.mxu3 %vm446_vm7, %v843_v18 }
 0x546   :  { %4118 = vmatmul.msk.f32.gmra.mxu3 %vm446_vm7, %v858_v24 }
 0x547   :  { %v1379_v16 = vpop.xlane.xlu0 %1378 }
 0x548   :  { %4510 = vrcp.f32 %v1379_v16  ;;  %v1406_v6 = vand.u32 2147483648, %v1379_v16  ;;  %vm1400_vm13 = vweird.f32 %v1379_v16  ;;  %v1404_v20 = vand.u32 2147483647, %v1379_v16 }
 0x54a   :  { %v1407_v0 = vor.u32 1.1754944e-38, %v1406_v6  ;;  %vm1405_vm15 = vcmp.eq.f32.partialorder %v1404_v20, 8.507059e+37 }
 0x54e   :  { %4119 = vmatmul.msk.f32.gmra.mxu3 %vm446_vm7, %v873_v32  ;;  %v4511_v2 = vpop.eup %4510 }
 0x54f   :  { %v1382_v11 = vpop.xlane.xlu0 %1381  ;;  %v1396_v56 = vmul.f32 %v4511_v2, %v1379_v16  ;;  %vm1401_vm12 = vweird.f32 %v4511_v2 }
 0x550   :  { %4512 = vrcp.f32 %v1382_v11  ;;  %vm1402_vm14 = vmor %vm1400_vm13, %vm1401_vm12  ;;  %vm1415_vm0 = vweird.f32 %v1382_v11  ;;  %v1419_v38 = vand.u32 2147483647, %v1382_v11  ;;  %v1421_v37 = vand.u32 2147483648, %v1382_v11 }
 0x551   :  { %v1397_v8 = vsub.f32 1.0, %v1396_v56 }
 0x552   :  { %v1422_v60 = vor.u32 1.1754944e-38, %v1421_v37  ;;  %vm1420_vm10 = vcmp.eq.f32.partialorder %v1419_v38, 8.507059e+37 }
 0x553   :  { %v1398_v35 = vmul.f32 %v4511_v2, %v1397_v8 }
 0x554   :  { %v5563_v40 = vpop.xlane.xlu1 %1384 }
 0x555   :  { %4514 = vrcp.f32 %v5563_v40  ;;  %v1399_v4 = vadd.f32 %v4511_v2, %v1398_v35  ;;  %v1436_v19 = vand.u32 2147483648, %v5563_v40  ;;  %vm1430_vm12 = vweird.f32 %v5563_v40 }
 0x556   :  { %4120 = vmatmul.msk.f32.gmra.mxu3 %vm446_vm7, %v888_v45  ;;  %v4513_v1 = vpop.eup %4512 }
 0x557   :  { %v1411_v5 = vmul.f32 %v4513_v1, %v1382_v11  ;;  %v1403_v55 = vsel %vm1402_vm14, %v4511_v2, %v1399_v4  ;;  %vm1416_vm2 = vweird.f32 %v4513_v1  ;;  %v1434_v11 = vand.u32 2147483647, %v5563_v40 }
 0x558   :  { %v1408_v18 = vsel %vm1405_vm15, %v1407_v0, %v1403_v55  ;;  %vm1417_vm5 = vmor %vm1415_vm0, %vm1416_vm2  ;;  %v1437_v45 = vor.u32 1.1754944e-38, %v1436_v19 }
 0x559   :  { %v1412_v3 = vsub.f32 1.0, %v1411_v5  ;;  %v1409_v34 = vmul.f32 %v5356_v14, %v1408_v18  ;;  %vm1435_vm14 = vcmp.eq.f32.partialorder %v1434_v11, 8.507059e+37 }
 0x55b   :  { %v1087_v57 = vpop.xlane.xlu2 %1086  ;;  %v5567_v15 = vpop.eup %4514  ;;  %v1413_v41 = vmul.f32 %v4513_v1, %v1412_v3 }
 0x55c   :  { %4516 = vrcp.f32 %v1087_v57  ;;  %v1426_v10 = vmul.f32 %v5567_v15, %v5563_v40  ;;  %v1138_v43 = vand.u32 2147483648, %v1087_v57  ;;  %v1136_v24 = vand.u32 2147483647, %v1087_v57  ;;  %v5591_v0 = vpop.xlane.xlu1 %1092 }
 0x55d   :  { %v1414_v23 = vadd.f32 %v4513_v1, %v1413_v41  ;;  %vm1132_vm4 = vweird.f32 %v1087_v57  ;;  %vm1431_vm11 = vweird.f32 %v5567_v15 }
 0x55e   :  { %v1427_v51 = vsub.f32 1.0, %v1426_v10  ;;  %v1139_v16 = vor.u32 1.1754944e-38, %v1138_v43  ;;  %vm1137_vm9 = vcmp.eq.f32.partialorder %v1136_v24, 8.507059e+37  ;;  %vm1432_vm13 = vmor %vm1430_vm12, %vm1431_vm11 }
 0x55f   :  { %v1418_v54 = vsel %vm1417_vm5, %v4513_v1, %v1414_v23 }
 0x560   :  { %v1428_v58 = vmul.f32 %v5567_v15, %v1427_v51  ;;  %v1423_v39 = vsel %vm1420_vm10, %v1422_v60, %v1418_v54 }
 0x561   :  { %v1424_v42 = vmul.f32 %v5362_v13, %v1423_v39 }
 0x562   :  { %v4517_v53 = vpop.eup %4516  ;;  %v4339_v48 = vpop.permute.xlu0 %4338  ;;  %v1429_v27 = vadd.f32 %v5567_v15, %v1428_v58 }
 0x563   :  { %v1128_v50 = vmul.f32 %v4517_v53, %v1087_v57  ;;  %v4340_v47 = vunpack.i.l.bf16 %v4339_v48  ;;  %v4341_v46 = vunpack.i.h.bf16 %v4339_v48  ;;  %vm1133_vm3 = vweird.f32 %v4517_v53 }
 0x564   :  { %vm1134_vm8 = vmor %vm1132_vm4, %vm1133_vm3 }
 0x565   :  { %v1129_v61 = vsub.f32 1.0, %v1128_v50  ;;  %1535 = vmatpush.msrb.mxu3 %v4340_v47 }
 0x567   :  { %v1130_v9 = vmul.f32 %v4517_v53, %v1129_v61  ;;  %1536 = vmatpush.msrb.mxu3 %v4341_v46 }
 0x568   :  { %v1388_v49 = vpop.xlane.xlu2 %1387  ;;  %4151 = vmatmul.msk.f32.vlgmr.msrb.gmra.mxu3 %vm446_vm7, %v1409_v34 }
 0x569   :  { %4518 = vrcp.f32 %v1388_v49  ;;  %v1131_v59 = vadd.f32 %v4517_v53, %v1130_v9  ;;  %v1451_v5 = vand.u32 2147483648, %v1388_v49  ;;  %vm1445_vm0 = vweird.f32 %v1388_v49 }
 0x56a   :  { %v1449_v57 = vand.u32 2147483647, %v1388_v49 }
 0x56b   :  { %v1135_v26 = vsel %vm1134_vm8, %v4517_v53, %v1131_v59  ;;  %v1452_v3 = vor.u32 1.1754944e-38, %v1451_v5 }
 0x56c   :  { %v1140_v14 = vsel %vm1137_vm9, %v1139_v16, %v1135_v26  ;;  %vm1450_vm3 = vcmp.eq.f32.partialorder %v1449_v57, 8.507059e+37  ;;  %v1168_v57 = vand.u32 2147483648, %v5591_v0 }
 0x56d   :  { %v1141_v32 = vmul.f32 %v5372_v12, %v1140_v14  ;;  %v1433_v12 = vsel %vm1432_vm13, %v5567_v15, %v1429_v27 }
 0x56e   :  { %v1438_v8 = vsel %vm1435_vm14, %v1437_v45, %v1433_v12 }
 0x56f   :  { %v4519_v2 = vpop.eup %4518  ;;  %4135 = vmatmul.msk.f32.gmra.mxu2 %vm446_vm7, %v1141_v32  ;;  %v1439_v13 = vmul.f32 %v5368_v31, %v1438_v8 }
 0x570   :  { %v1441_v56 = vmul.f32 %v4519_v2, %v1388_v49  ;;  %4152 = vmatmul.msk.f32.gmra.mxu3 %vm446_vm7, %v1424_v42  ;;  %vm1446_vm15 = vweird.f32 %v4519_v2 }
 0x571   :  { %vm1447_vm2 = vmor %vm1445_vm0, %vm1446_vm15 }
 0x572   :  { %v1442_v62 = vsub.f32 1.0, %v1441_v56 }
 0x574   :  { %v1443_v1 = vmul.f32 %v4519_v2, %v1442_v62 }
 0x576   :  { %v1444_v35 = vadd.f32 %v4519_v2, %v1443_v1 }
 0x577   :  { %v5587_v6 = vpop.f32.mrf.mxu3 }
 0x578   :  { %4153 = vmatmul.msk.f32.gmra.mxu3 %vm446_vm7, %v1439_v13  ;;  %v1448_v4 = vsel %vm1447_vm2, %v4519_v2, %v1444_v35 }
 0x579   :  { %v1391_v40 = vpop.xlane.xlu2 %1390  ;;  %v1453_v15 = vsel %vm1450_vm3, %v1452_v3, %v1448_v4  ;;  %v1166_v4 = vand.u32 2147483647, %v5591_v0 }
 0x57a   :  { %4520 = vrcp.f32 %v1391_v40  ;;  %v1454_v20 = vmul.f32 %v5386_v22, %v1453_v15  ;;  %v1466_v53 = vand.u32 2147483648, %v1391_v40  ;;  %v1464_v48 = vand.u32 2147483647, %v1391_v40 }
 0x57b   :  { %vm1460_vm5 = vweird.f32 %v1391_v40 }
 0x57c   :  { %v1467_v22 = vor.u32 1.1754944e-38, %v1466_v53  ;;  %vm1465_vm9 = vcmp.eq.f32.partialorder %v1464_v48, 8.507059e+37 }
 0x57f   :  { %v5593_v47 = vpop.f32.mrf.mxu3 }
 0x580   :  { %v4521_v55 = vpop.eup %4520  ;;  %4154 = vmatmul.msk.f32.gmra.mxu3 %vm446_vm7, %v1454_v20 }
 0x581   :  { %v1456_v10 = vmul.f32 %v4521_v55, %v1391_v40  ;;  %v1394_v31 = vpop.xlane.xlu2 %1393  ;;  %vm1461_vm4 = vweird.f32 %v4521_v55  ;;  %v1096_v49 = vpop.xlane.xlu1 %1095 }
 0x582   :  { %4522 = vrcp.f32 %v1394_v31  ;;  %vm1462_vm8 = vmor %vm1460_vm5, %vm1461_vm4  ;;  %v1481_v37 = vand.u32 2147483648, %v1394_v31  ;;  %v1479_v9 = vand.u32 2147483647, %v1394_v31  ;;  %vm1475_vm11 = vweird.f32 %v1394_v31 }
 0x583   :  { %v1457_v41 = vsub.f32 1.0, %v1456_v10  ;;  %4524 = vrcp.f32 %v5591_v0  ;;  %vm1162_vm4 = vweird.f32 %v5591_v0 }
 0x584   :  { %v1482_v58 = vor.u32 1.1754944e-38, %v1481_v37  ;;  %vm1480_vm13 = vcmp.eq.f32.partialorder %v1479_v9, 8.507059e+37 }
 0x585   :  { %v1458_v50 = vmul.f32 %v4521_v55, %v1457_v41  ;;  %v1183_v41 = vand.u32 2147483648, %v1096_v49 }
 0x587   :  { %v1459_v18 = vadd.f32 %v4521_v55, %v1458_v50  ;;  %v1184_v48 = vor.u32 1.1754944e-38, %v1183_v41 }
 0x588   :  { %v4523_v51 = vpop.eup %4522  ;;  %v5599_v60 = vpop.f32.mrf.mxu3 }
 0x589   :  { %v1471_v61 = vmul.f32 %v4523_v51, %v1394_v31  ;;  %v1463_v23 = vsel %vm1462_vm8, %v4521_v55, %v1459_v18  ;;  %vm1476_vm10 = vweird.f32 %v4523_v51  ;;  %v4525_v24 = vpop.eup %4524  ;;  %v1169_v55 = vor.u32 1.1754944e-38, %v1168_v57 }
 0x58a   :  { %v1468_v46 = vsel %vm1465_vm9, %v1467_v22, %v1463_v23  ;;  %vm1477_vm12 = vmor %vm1475_vm11, %vm1476_vm10  ;;  %v1158_v16 = vmul.f32 %v4525_v24, %v5591_v0  ;;  %vm1163_vm2 = vweird.f32 %v4525_v24  ;;  %vm1167_vm8 = vcmp.eq.f32.partialorder %v1166_v4, 8.507059e+37 }
 0x58b   :  { %v1472_v43 = vsub.f32 1.0, %v1471_v61  ;;  %v1469_v38 = vmul.f32 %v5401_v7, %v1468_v46  ;;  %vm1164_vm5 = vmor %vm1162_vm4, %vm1163_vm2  ;;  %vm1177_vm10 = vweird.f32 %v1096_v49 }
 0x58c   :  { %v1159_v32 = vsub.f32 1.0, %v1158_v16  ;;  %v1650_v16 = vld [vmem:[#allocation4 + $0x70] sm:$0xff] }
 0x58d   :  { %4155 = vmatmul.msk.f32.gmra.mxu3 %vm446_vm7, %v1469_v38  ;;  %v1473_v34 = vmul.f32 %v4523_v51, %v1472_v43  ;;  %v1090_v59 = vpop.xlane.xlu0 %1089 }
 0x58e   :  { %4526 = vrcp.f32 %v1090_v59  ;;  %v1153_v11 = vand.u32 2147483648, %v1090_v59  ;;  %v1160_v56 = vmul.f32 %v4525_v24, %v1159_v32  ;;  %v1151_v45 = vand.u32 2147483647, %v1090_v59 }
 0x58f   :  { %v1474_v54 = vadd.f32 %v4523_v51, %v1473_v34  ;;  %4528 = vrcp.f32 %v1096_v49  ;;  %vm1147_vm15 = vweird.f32 %v1090_v59 }
 0x590   :  { %v1154_v1 = vor.u32 1.1754944e-38, %v1153_v11  ;;  %vm1152_vm3 = vcmp.eq.f32.partialorder %v1151_v45, 8.507059e+37  ;;  %v1161_v5 = vadd.f32 %v4525_v24, %v1160_v56 }
 0x591   :  { %v1478_v7 = vsel %vm1477_vm12, %v4523_v51, %v1474_v54 }
 0x592   :  { %v1483_v26 = vsel %vm1480_vm13, %v1482_v58, %v1478_v7  ;;  %v1165_v15 = vsel %vm1164_vm5, %v4525_v24, %v1161_v5  ;;  %v1651_v58 = vld [vmem:[#allocation4 + $0x78] sm:$0xff]  ;;  %vm1634_vm13 = vcmask 130048  }
 0x593   :  { %v1484_v14 = vmul.f32 %v5406_v52, %v1483_v26  ;;  %v1170_v10 = vsel %vm1167_vm8, %v1169_v55, %v1165_v15  ;;  %1684 = vmatpush.msra.mxu0 %v1651_v58  ;;  %v1649_v26 = vld [vmem:[#allocation4 + $0x68] sm:$0xff] }
 0x594   :  { %v4527_v39 = vpop.eup %4526  ;;  %v1171_v53 = vmul.f32 %v5374_v28, %v1170_v10 }
 0x595   :  { %4156 = vmatmul.msk.f32.gmra.mxu3 %vm446_vm7, %v1484_v14  ;;  %v1143_v27 = vmul.f32 %v4527_v39, %v1090_v59  ;;  %v4529_v19 = vpop.eup %4528  ;;  %vm1148_vm14 = vweird.f32 %v4527_v39  ;;  %1685 = vmatpush.msra.mxu0 %v1650_v16  ;;  %v1648_v14 = vld [vmem:[#allocation4 + $0x60] sm:$0xff] }
 0x596   :  { %v1173_v12 = vmul.f32 %v4529_v19, %v1096_v49  ;;  %vm1149_vm0 = vmor %vm1147_vm15, %vm1148_vm14  ;;  %vm1178_vm9 = vweird.f32 %v4529_v19  ;;  %vm1641_vm14 = vcmask 195584  }
 0x597   :  { %v1144_v2 = vsub.f32 1.0, %v1143_v27  ;;  %vm1179_vm11 = vmor %vm1177_vm10, %vm1178_vm9  ;;  %1686 = vmatpush.msra.mxu0 %v1649_v26 }
 0x598   :  { %v5603_v42 = vpop.f32.mrf.mxu3  ;;  %v1174_v52 = vsub.f32 1.0, %v1173_v12 }
 0x599   :  { %v1145_v62 = vmul.f32 %v4527_v39, %v1144_v2  ;;  %1687 = vmatpush.msra.mxu0 %v1648_v14 }
 0x59a   :  { %v1175_v20 = vmul.f32 %v4529_v19, %v1174_v52 }
 0x59b   :  { %v1146_v8 = vadd.f32 %v4527_v39, %v1145_v62 }
 0x59c   :  { %v1176_v31 = vadd.f32 %v4529_v19, %v1175_v20 }
 0x59d   :  { %v1150_v35 = vsel %vm1149_vm0, %v4527_v39, %v1146_v8 }
 0x59e   :  { %v1155_v13 = vsel %vm1152_vm3, %v1154_v1, %v1150_v35  ;;  %v1180_v0 = vsel %vm1179_vm11, %v4529_v19, %v1176_v31 }
 0x59f   :  { %v1156_v40 = vmul.f32 %v5433_v63, %v1155_v13  ;;  %v1181_v63 = vand.u32 2147483647, %v1096_v49 }
 0x5a0   :  { %v5609_v3 = vpop.f32.mrf.mxu3 }
 0x5a1   :  { %4136 = vmatmul.msk.f32.gmra.mxu2 %vm446_vm7, %v1156_v40  ;;  %vm1182_vm12 = vcmp.eq.f32.partialorder %v1181_v63, 8.507059e+37 }
 0x5a2   :  { %v1185_v18 = vsel %vm1182_vm12, %v1184_v48, %v1180_v0 }
 0x5a3   :  { %v1186_v51 = vmul.f32 %v5414_v30, %v1185_v18 }
 0x5a9   :  { %v5613_v50 = vpop.f32.mrf.mxu3  ;;  %4137 = vmatmul.msk.f32.gmra.mxu2 %vm446_vm7, %v1171_v53 }
 0x5b1   :  { %v942_v22 = vpop.f32.mrf.mxu3  ;;  %4138 = vmatmul.msk.f32.gmra.mxu2 %vm446_vm7, %v1186_v51 }
 0x5b2   :  { %1562 = vrot.lane.b32.xlu0 %v942_v22, %s4782_s21  ;;  %v1240_v61 = vpop.f32.mrf.mxu2 }
 0x5b3   :  { %1586 = vrot.lane.b32.xlu1 %v1240_v61, %s4797_s10 }
 0x5b9   :  { %v945_v28 = vpop.f32.mrf.mxu3 }
 0x5ba   :  { %1564 = vrot.lane.b32.xlu0 %v945_v28, %s4782_s21  ;;  %v1243_v23 = vpop.f32.mrf.mxu2 }
 0x5c1   :  { %v948_v46 = vpop.f32.mrf.mxu3 }
 0x5c2   :  { %1588 = vrot.lane.b32.xlu0 %v1243_v23, %s4797_s10  ;;  %1566 = vrot.lane.b32.xlu1 %v948_v46, %s4782_s21 }
 0x5c9   :  { %v951_v43 = vpop.f32.mrf.mxu3 }
 0x5ca   :  { %1568 = vrot.lane.b32.xlu1 %v951_v43, %s4782_s21 }
 0x5d1   :  { %v954_v30 = vpop.f32.mrf.mxu3 }
 0x5d2   :  { %1570 = vrot.lane.b32.xlu1 %v954_v30, %s4782_s21 }
 0x5d9   :  { %v957_v38 = vpop.f32.mrf.mxu3 }
 0x5da   :  { %1572 = vrot.lane.b32.xlu1 %v957_v38, %s4782_s21 }
 0x5eb   :  { %v1538_v37 = vpop.f32.mrf.mxu3 }
 0x5ec   :  { %1610 = vrot.lane.b32.xlu2 %v1538_v37, %s4798_s11 }
 0x5f2   :  { %v1246_v34 = vpop.f32.mrf.mxu2 }
 0x5f3   :  { %1590 = vrot.lane.b32.xlu0 %v1246_v34, %s4797_s10  ;;  %v1541_v9 = vpop.f32.mrf.mxu3 }
 0x5f4   :  { %1612 = vrot.lane.b32.xlu2 %v1541_v9, %s4798_s11 }
 0x5fb   :  { %v1544_v24 = vpop.f32.mrf.mxu3 }
 0x5fc   :  { %1614 = vrot.lane.b32.xlu2 %v1544_v24, %s4798_s11 }
 0x603   :  { %v1547_v49 = vpop.f32.mrf.mxu3 }
 0x604   :  { %1616 = vrot.lane.b32.xlu2 %v1547_v49, %s4798_s11 }
 0x610   :  { %v1550_v59 = vpop.f32.mrf.mxu3 }
 0x611   :  { %1618 = vrot.lane.b32.xlu2 %v1550_v59, %s4798_s11 }
 0x618   :  { %v1553_v54 = vpop.f32.mrf.mxu3 }
 0x619   :  { %1620 = vrot.lane.b32.xlu2 %v1553_v54, %s4798_s11 }
 0x624   :  { %v1249_v7 = vpop.f32.mrf.mxu2  ;;  %v1563_v27 = vpop.permute.xlu0 %1562 }
 0x625   :  { %1592 = vrot.lane.b32.xlu0 %v1249_v7, %s4797_s10  ;;  %v1628_v2 = vsel %vm380_vm6, %v5587_v6, %v1563_v27  ;;  %v1587_v11 = vpop.permute.xlu1 %1586 }
 0x626   :  { %v1635_v56 = vsel %vm1634_vm13, %v1628_v2, %v1587_v11 }
 0x62c   :  { %v1252_v39 = vpop.f32.mrf.mxu2  ;;  %v1565_v19 = vpop.permute.xlu0 %1564 }
 0x62d   :  { %1594 = vrot.lane.b32.xlu0 %v1252_v39, %s4797_s10  ;;  %v1629_v8 = vsel %vm380_vm6, %v5593_v47, %v1565_v19 }
 0x634   :  { %v1255_v32 = vpop.f32.mrf.mxu2  ;;  %v1589_v45 = vpop.permute.xlu0 %1588 }
 0x635   :  { %1596 = vrot.lane.b32.xlu0 %v1255_v32, %s4797_s10  ;;  %v1636_v1 = vsel %vm1634_vm13, %v1629_v8, %v1589_v45  ;;  %v1567_v6 = vpop.permute.xlu1 %1566 }
 0x636   :  { %v1630_v5 = vsel %vm380_vm6, %v5599_v60, %v1567_v6 }
 0x63d   :  { %v1569_v47 = vpop.permute.xlu1 %1568 }
 0x63e   :  { %v1631_v20 = vsel %vm380_vm6, %v5603_v42, %v1569_v47 }
 0x645   :  { %v1571_v41 = vpop.permute.xlu1 %1570 }
 0x646   :  { %v1611_v12 = vpop.permute.xlu2 %1610  ;;  %v1632_v53 = vsel %vm380_vm6, %v5609_v3, %v1571_v41  ;;  %v4405_v3 = vld [vmem:[#allocation6 + $0x63] ss:$0 sm:$0xff] }
 0x647   :  { %v1642_v62 = vsel %vm1641_vm14, %v1635_v56, %v1611_v12 }
 0x648   :  { %4157 = vmatmul.msk.f32.vlgmr.msra.gmra.mxu0 %vm143_vm1, %v1642_v62 }
 0x64d   :  { %v1573_v42 = vpop.permute.xlu1 %1572 }
 0x64e   :  { %v1613_v52 = vpop.permute.xlu2 %1612  ;;  %v1633_v18 = vsel %vm380_vm6, %v5613_v50, %v1573_v42  ;;  %v1862_v42 = vld [vmem:[#allocation4 + $0x88] sm:$0xff] }
 0x64f   :  { %v1643_v35 = vsel %vm1641_vm14, %v1636_v1, %v1613_v52 }
 0x650   :  { %4158 = vmatmul.msk.f32.gmra.mxu0 %vm143_vm1, %v1643_v35 }
 0x656   :  { %v1615_v57 = vpop.permute.xlu2 %1614 }
 0x65e   :  { %v1617_v15 = vpop.permute.xlu2 %1616 }
 0x665   :  { %v1591_v13 = vpop.permute.xlu0 %1590 }
 0x666   :  { %v1637_v40 = vsel %vm1634_vm13, %v1630_v5, %v1591_v13 }
 0x667   :  { %v1644_v4 = vsel %vm1641_vm14, %v1637_v40, %v1615_v57 }
 0x668   :  { %4159 = vmatmul.msk.f32.gmra.mxu0 %vm143_vm1, %v1644_v4 }
 0x66b   :  { %v1619_v60 = vpop.permute.xlu2 %1618 }
 0x673   :  { %v1621_v22 = vpop.permute.xlu2 %1620 }
 0x697   :  { %v1593_v55 = vpop.permute.xlu0 %1592 }
 0x698   :  { %v1638_v10 = vsel %vm1634_vm13, %v1631_v20, %v1593_v55 }
 0x699   :  { %v1645_v31 = vsel %vm1641_vm14, %v1638_v10, %v1617_v15 }
 0x69a   :  { %4160 = vmatmul.msk.f32.gmra.mxu0 %vm143_vm1, %v1645_v31 }
 0x69f   :  { %v1595_v63 = vpop.permute.xlu0 %1594 }
 0x6a0   :  { %v1639_v0 = vsel %vm1634_vm13, %v1632_v53, %v1595_v63 }
 0x6a1   :  { %v1646_v48 = vsel %vm1641_vm14, %v1639_v0, %v1619_v60  ;;  %v1864_v0 = vld [vmem:[#allocation4 + $0x98] sm:$0xff] }
 0x6a2   :  { %4161 = vmatmul.msk.f32.gmra.mxu0 %vm143_vm1, %v1646_v48  ;;  %1897 = vmatpush.msra.mxu2 %v1864_v0  ;;  %v1863_v48 = vld [vmem:[#allocation4 + $0x90] sm:$0xff]  ;;  %v1989_v0 = vld [vmem:[#allocation4 + $0x118] sm:$0xff] }
 0x6a3   :  { %1992 = vmatpush.msrb.mxu1 %v1989_v0 }
 0x6a4   :  { %1898 = vmatpush.msra.mxu2 %v1863_v48 }
 0x6a6   :  { %1899 = vmatpush.msra.mxu2 %v1862_v42  ;;  %v1987_v42 = vld [vmem:[#allocation4 + $0x108] sm:$0xff] }
 0x6a7   :  { %v1597_v51 = vpop.permute.xlu0 %1596 }
 0x6a8   :  { %v1640_v61 = vsel %vm1634_vm13, %v1633_v18, %v1597_v51  ;;  %v1861_v18 = vld [vmem:[#allocation4 + $0x80] sm:$0xff] }
 0x6a9   :  { %v1647_v28 = vsel %vm1641_vm14, %v1640_v61, %v1621_v22  ;;  %1900 = vmatpush.msra.mxu2 %v1861_v18 }
 0x6aa   :  { %4162 = vmatmul.msk.f32.gmra.mxu0 %vm143_vm1, %v1647_v28 }
 0x6c5   :  { %v1689_v23 = vpop.f32.mrf.mxu0 }
 0x6c6   :  { %v1690_v46 = vadd.f32 %v4405_v3, %v1689_v23 }
 0x6c8   :  { %v5667_v43 = vadd.f32 %v1690_v46, %v4851_v36 }
 0x6ca   :  { %v1715_v30 = vsel %vm143_vm1, %v5667_v43, 0.0 }
 0x6cb   :  { %1716 = vadd.xlane.f32.xlu1 %v1715_v30 }
 0x6cd   :  { %v1692_v38 = vpop.f32.mrf.mxu0 }
 0x6ce   :  { %v1693_v50 = vadd.f32 %v4405_v3, %v1692_v38 }
 0x6d0   :  { %v5672_v37 = vadd.f32 %v1693_v50, %v4831_v17 }
 0x6d2   :  { %v1718_v34 = vsel %vm143_vm1, %v5672_v37, 0.0 }
 0x6d3   :  { %1719 = vadd.xlane.f32.xlu0 %v1718_v34 }
 0x6e5   :  { %v1695_v9 = vpop.f32.mrf.mxu0 }
 0x6e6   :  { %v1696_v24 = vadd.f32 %v4405_v3, %v1695_v9 }
 0x6e8   :  { %v5677_v49 = vadd.f32 %v1696_v24, %v4835_v21 }
 0x6ea   :  { %v1721_v36 = vsel %vm143_vm1, %v5677_v49, 0.0 }
 0x6eb   :  { %1722 = vadd.xlane.f32.xlu2 %v1721_v36 }
 0x717   :  { %v1698_v59 = vpop.f32.mrf.mxu0 }
 0x718   :  { %v1699_v54 = vadd.f32 %v4405_v3, %v1698_v59  ;;  %v5740_v59 = vld [vmem:[#allocation6 + $0x64] ss:$0 sm:$0xff] }
 0x71a   :  { %v5682_v58 = vadd.f32 %v1699_v54, %v4839_v25 }
 0x71c   :  { %v1724_v17 = vsel %vm143_vm1, %v5682_v58, 0.0 }
 0x71d   :  { %1725 = vadd.xlane.f32.xlu1 %v1724_v17 }
 0x71f   :  { %v1701_v16 = vpop.f32.mrf.mxu0 }
 0x720   :  { %v1702_v7 = vadd.f32 %v4405_v3, %v1701_v16 }
 0x722   :  { %v5687_v26 = vadd.f32 %v1702_v7, %v4843_v29  ;;  %v5743_v7 = vld [vmem:[#allocation6 + $0x65] ss:$0 sm:$0xff] }
 0x724   :  { %v1727_v21 = vsel %vm143_vm1, %v5687_v26, 0.0 }
 0x725   :  { %1728 = vadd.xlane.f32.xlu2 %v1727_v21 }
 0x727   :  { %v1704_v14 = vpop.f32.mrf.mxu0 }
 0x728   :  { %v1705_v39 = vadd.f32 %v4405_v3, %v1704_v14 }
 0x72a   :  { %v5692_v32 = vadd.f32 %v1705_v39, %v4847_v33 }
 0x72c   :  { %v1730_v25 = vsel %vm143_vm1, %v5692_v32, 0.0 }
 0x72d   :  { %1731 = vadd.xlane.f32.xlu0 %v1730_v25 }
 0x73e   :  { %v1717_v27 = vpop.xlane.xlu1 %1716 }
 0x73f   :  { %v1733_v19 = vmul.f32 %v1717_v27, %v4855_v44 }
 0x741   :  { %v5698_v2 = vsub.f32 %v5667_v43, %v1733_v19 }
 0x743   :  { %v1745_v29 = vmul.f32 %v5698_v2, %v5698_v2 }
 0x745   :  { %v1751_v11 = vsel %vm143_vm1, %v1745_v29, 0.0 }
 0x746   :  { %v1720_v56 = vpop.xlane.xlu0 %1719  ;;  %1752 = vadd.xlane.f32.xlu1 %v1751_v11 }
 0x747   :  { %v1734_v33 = vmul.f32 %v1720_v56, %v4855_v44 }
 0x749   :  { %v5705_v12 = vsub.f32 %v5672_v37, %v1734_v33 }
 0x74b   :  { %v1746_v62 = vmul.f32 %v5705_v12, %v5705_v12 }
 0x74d   :  { %v1754_v45 = vsel %vm143_vm1, %v1746_v62, 0.0 }
 0x74e   :  { %1755 = vadd.xlane.f32.xlu2 %v1754_v45 }
 0x75e   :  { %v1723_v8 = vpop.xlane.xlu2 %1722 }
 0x75f   :  { %v1735_v1 = vmul.f32 %v1723_v8, %v4855_v44 }
 0x761   :  { %v5712_v52 = vsub.f32 %v5677_v49, %v1735_v1 }
 0x763   :  { %v1747_v35 = vmul.f32 %v5712_v52, %v5712_v52 }
 0x765   :  { %v1757_v6 = vsel %vm143_vm1, %v1747_v35, 0.0 }
 0x766   :  { %1758 = vadd.xlane.f32.xlu0 %v1757_v6 }
 0x790   :  { %v1726_v5 = vpop.xlane.xlu1 %1725 }
 0x791   :  { %v1736_v13 = vmul.f32 %v1726_v5, %v4855_v44 }
 0x793   :  { %v5719_v57 = vsub.f32 %v5682_v58, %v1736_v13 }
 0x795   :  { %v1748_v40 = vmul.f32 %v5719_v57, %v5719_v57 }
 0x797   :  { %v1760_v4 = vsel %vm143_vm1, %v1748_v40, 0.0 }
 0x798   :  { %1761 = vadd.xlane.f32.xlu1 %v1760_v4  ;;  %v1729_v47 = vpop.xlane.xlu2 %1728 }
 0x799   :  { %v1737_v15 = vmul.f32 %v1729_v47, %v4855_v44 }
 0x79b   :  { %v5726_v20 = vsub.f32 %v5687_v26, %v1737_v15 }
 0x79d   :  { %v1749_v55 = vmul.f32 %v5726_v20, %v5726_v20 }
 0x79f   :  { %v1763_v10 = vsel %vm143_vm1, %v1749_v55, 0.0 }
 0x7a0   :  { %v1732_v31 = vpop.xlane.xlu0 %1731  ;;  %1764 = vadd.xlane.f32.xlu2 %v1763_v10 }
 0x7a1   :  { %v1738_v41 = vmul.f32 %v1732_v31, %v4855_v44 }
 0x7a3   :  { %v5733_v60 = vsub.f32 %v5692_v32, %v1738_v41 }
 0x7a5   :  { %v1750_v53 = vmul.f32 %v5733_v60, %v5733_v60 }
 0x7a7   :  { %v1766_v63 = vsel %vm143_vm1, %v1750_v53, 0.0 }
 0x7a8   :  { %1767 = vadd.xlane.f32.xlu0 %v1766_v63 }
 0x7b9   :  { %v1753_v51 = vpop.xlane.xlu1 %1752 }
 0x7ba   :  { %v1769_v22 = vmul.f32 %v1753_v51, %v4855_v44 }
 0x7bc   :  { %v1775_v61 = vadd.f32 1e-06, %v1769_v22 }
 0x7be   :  { %4530 = vrsqrt.f32 %v1775_v61  ;;  %vm1787_vm0 = vweird.f32 %v1775_v61 }
 0x7c1   :  { %v1756_v28 = vpop.xlane.xlu2 %1755 }
 0x7c2   :  { %v1770_v3 = vmul.f32 %v1756_v28, %v4855_v44 }
 0x7c4   :  { %v4531_v23 = vpop.eup %4530  ;;  %v1776_v46 = vadd.f32 1e-06, %v1770_v3 }
 0x7c5   :  { %v1782_v30 = vmul.f32 %v4531_v23, %v1775_v61  ;;  %vm1788_vm15 = vweird.f32 %v4531_v23  ;;  %v1986_v61 = vld [vmem:[#allocation4 + $0x100] sm:$0xff] }
 0x7c6   :  { %4532 = vrsqrt.f32 %v1776_v46  ;;  %vm1789_vm2 = vmor %vm1787_vm0, %vm1788_vm15  ;;  %vm1797_vm4 = vweird.f32 %v1776_v46 }
 0x7c7   :  { %v1783_v38 = vmul.f32 %v4531_v23, %v1782_v30 }
 0x7c9   :  { %v1784_v50 = vmul.f32 0.5, %v1783_v38 }
 0x7cb   :  { %v1785_v34 = vsub.f32 1.5, %v1784_v50 }
 0x7cc   :  { %v4533_v9 = vpop.eup %4532 }
 0x7cd   :  { %v1786_v24 = vmul.f32 %v4531_v23, %v1785_v34  ;;  %v1792_v36 = vmul.f32 %v4533_v9, %v1776_v46  ;;  %vm1798_vm3 = vweird.f32 %v4533_v9 }
 0x7ce   :  { %vm1799_vm5 = vmor %vm1797_vm4, %vm1798_vm3 }
 0x7cf   :  { %v1790_v54 = vsel %vm1789_vm2, %v4531_v23, %v1786_v24  ;;  %v1793_v17 = vmul.f32 %v4533_v9, %v1792_v36 }
 0x7d0   :  { %v1841_v16 = vmul.f32 %v1790_v54, %v5698_v2 }
 0x7d1   :  { %v1794_v21 = vmul.f32 0.5, %v1793_v17 }
 0x7d2   :  { %v1848_v14 = vmul.f32 %v5740_v59, %v1841_v16 }
 0x7d3   :  { %v1795_v39 = vsub.f32 1.5, %v1794_v21 }
 0x7d4   :  { %v1855_v25 = vadd.f32 %v5743_v7, %v1848_v14 }
 0x7d5   :  { %v1796_v27 = vmul.f32 %v4533_v9, %v1795_v39 }
 0x7d6   :  { %4163 = vmatmul.msk.f32.vlgmr.msra.gmra.mxu2 %vm143_vm1, %v1855_v25 }
 0x7d7   :  { %v1800_v19 = vsel %vm1799_vm5, %v4533_v9, %v1796_v27 }
 0x7d8   :  { %v1842_v11 = vmul.f32 %v1800_v19, %v5705_v12 }
 0x7d9   :  { %v1759_v29 = vpop.xlane.xlu0 %1758 }
 0x7da   :  { %v1771_v2 = vmul.f32 %v1759_v29, %v4855_v44  ;;  %v1849_v56 = vmul.f32 %v5740_v59, %v1842_v11 }
 0x7dc   :  { %v1777_v33 = vadd.f32 1e-06, %v1771_v2  ;;  %v1856_v62 = vadd.f32 %v5743_v7, %v1849_v56 }
 0x7de   :  { %4534 = vrsqrt.f32 %v1777_v33  ;;  %4164 = vmatmul.msk.f32.gmra.mxu2 %vm143_vm1, %v1856_v62  ;;  %vm1807_vm9 = vweird.f32 %v1777_v33 }
 0x7e4   :  { %v4535_v45 = vpop.eup %4534 }
 0x7e5   :  { %v1802_v8 = vmul.f32 %v4535_v45, %v1777_v33  ;;  %vm1808_vm8 = vweird.f32 %v4535_v45 }
 0x7e6   :  { %vm1809_vm10 = vmor %vm1807_vm9, %vm1808_vm8 }
 0x7e7   :  { %v1803_v1 = vmul.f32 %v4535_v45, %v1802_v8  ;;  %v1983_v8 = vld [vmem:[#allocation4 + $0xe8] sm:$0xff] }
 0x7e9   :  { %v1804_v35 = vmul.f32 0.5, %v1803_v1  ;;  %v1982_v1 = vld [vmem:[#allocation4 + $0xe0] sm:$0xff] }
 0x7eb   :  { %v1805_v6 = vsub.f32 1.5, %v1804_v35  ;;  %v1981_v35 = vld [vmem:[#allocation4 + $0xd8] sm:$0xff] }
 0x7ed   :  { %v1806_v5 = vmul.f32 %v4535_v45, %v1805_v6  ;;  %v1980_v6 = vld [vmem:[#allocation4 + $0xd0] sm:$0xff] }
 0x7ef   :  { %v1810_v12 = vsel %vm1809_vm10, %v4535_v45, %v1806_v5  ;;  %v1984_v45 = vld [vmem:[#allocation4 + $0xf0] sm:$0xff]  ;;  %v1979_v5 = vld [vmem:[#allocation4 + $0xc8] sm:$0xff] }
 0x7f0   :  { %v1843_v13 = vmul.f32 %v1810_v12, %v5712_v52  ;;  %v1988_v52 = vld [vmem:[#allocation4 + $0x110] sm:$0xff]  ;;  %v1975_v12 = vld [vmem:[#allocation4 + $0xa8] sm:$0xff] }
 0x7f1   :  { %1993 = vmatpush.msrb.mxu1 %v1988_v52 }
 0x7f2   :  { %v1850_v40 = vmul.f32 %v5740_v59, %v1843_v13  ;;  %v1974_v13 = vld [vmem:[#allocation4 + $0xa0] sm:$0xff] }
 0x7f3   :  { %1994 = vmatpush.msrb.mxu1 %v1987_v42 }
 0x7f4   :  { %v1857_v4 = vadd.f32 %v5743_v7, %v1850_v40  ;;  %v4408_v40 = vld [vmem:[#allocation6 + $0x66] ss:$0 sm:$0xff] }
 0x7f5   :  { %1995 = vmatpush.msrb.mxu1 %v1986_v61 }
 0x7f6   :  { %4165 = vmatmul.msk.f32.gmra.mxu2 %vm143_vm1, %v1857_v4 }
 0x80b   :  { %v1762_v47 = vpop.xlane.xlu1 %1761 }
 0x80c   :  { %v1772_v15 = vmul.f32 %v1762_v47, %v4855_v44 }
 0x80e   :  { %v1778_v55 = vadd.f32 1e-06, %v1772_v15 }
 0x810   :  { %4536 = vrsqrt.f32 %v1778_v55  ;;  %vm1817_vm12 = vweird.f32 %v1778_v55 }
 0x813   :  { %v1765_v10 = vpop.xlane.xlu2 %1764 }
 0x814   :  { %v1773_v31 = vmul.f32 %v1765_v10, %v4855_v44 }
 0x816   :  { %v4537_v41 = vpop.eup %4536  ;;  %v1779_v53 = vadd.f32 1e-06, %v1773_v31 }
 0x817   :  { %v1812_v63 = vmul.f32 %v4537_v41, %v1778_v55  ;;  %vm1818_vm11 = vweird.f32 %v4537_v41 }
 0x818   :  { %4538 = vrsqrt.f32 %v1779_v53  ;;  %vm1819_vm15 = vmor %vm1817_vm12, %vm1818_vm11  ;;  %vm1827_vm2 = vweird.f32 %v1779_v53 }
 0x819   :  { %v1813_v48 = vmul.f32 %v4537_v41, %v1812_v63 }
 0x81b   :  { %v1814_v18 = vmul.f32 0.5, %v1813_v48  ;;  %v1768_v51 = vpop.xlane.xlu0 %1767 }
 0x81c   :  { %v1774_v22 = vmul.f32 %v1768_v51, %v4855_v44 }
 0x81d   :  { %v1815_v28 = vsub.f32 1.5, %v1814_v18 }
 0x81e   :  { %v4539_v3 = vpop.eup %4538  ;;  %v1780_v23 = vadd.f32 1e-06, %v1774_v22 }
 0x81f   :  { %v1816_v46 = vmul.f32 %v4537_v41, %v1815_v28  ;;  %v1822_v30 = vmul.f32 %v4539_v3, %v1779_v53  ;;  %vm1828_vm0 = vweird.f32 %v4539_v3 }
 0x820   :  { %4540 = vrsqrt.f32 %v1780_v23  ;;  %vm1829_vm3 = vmor %vm1827_vm2, %vm1828_vm0  ;;  %vm1837_vm5 = vweird.f32 %v1780_v23 }
 0x821   :  { %v1823_v38 = vmul.f32 %v4539_v3, %v1822_v30  ;;  %v1820_v50 = vsel %vm1819_vm15, %v4537_v41, %v1816_v46 }
 0x822   :  { %v1844_v34 = vmul.f32 %v1820_v50, %v5719_v57 }
 0x823   :  { %v1824_v9 = vmul.f32 0.5, %v1823_v38 }
 0x824   :  { %v1851_v24 = vmul.f32 %v5740_v59, %v1844_v34 }
 0x825   :  { %v1825_v36 = vsub.f32 1.5, %v1824_v9 }
 0x826   :  { %v4541_v54 = vpop.eup %4540  ;;  %v1858_v17 = vadd.f32 %v5743_v7, %v1851_v24 }
 0x827   :  { %v1826_v16 = vmul.f32 %v4539_v3, %v1825_v36  ;;  %v1832_v21 = vmul.f32 %v4541_v54, %v1780_v23  ;;  %vm1838_vm4 = vweird.f32 %v4541_v54 }
 0x828   :  { %4166 = vmatmul.msk.f32.gmra.mxu2 %vm143_vm1, %v1858_v17  ;;  %vm1839_vm8 = vmor %vm1837_vm5, %vm1838_vm4 }
 0x829   :  { %v1833_v14 = vmul.f32 %v4541_v54, %v1832_v21  ;;  %v1830_v39 = vsel %vm1829_vm3, %v4539_v3, %v1826_v16 }
 0x82a   :  { %v1845_v25 = vmul.f32 %v1830_v39, %v5726_v20  ;;  %v1985_v20 = vld [vmem:[#allocation4 + $0xf8] sm:$0xff] }
 0x82b   :  { %v1834_v27 = vmul.f32 0.5, %v1833_v14  ;;  %1996 = vmatpush.msrb.mxu1 %v1985_v20 }
 0x82c   :  { %v1852_v57 = vmul.f32 %v5740_v59, %v1845_v25 }
 0x82d   :  { %v1835_v19 = vsub.f32 1.5, %v1834_v27  ;;  %1997 = vmatpush.msrb.mxu1 %v1984_v45 }
 0x82e   :  { %v1859_v29 = vadd.f32 %v5743_v7, %v1852_v57 }
 0x82f   :  { %v1836_v11 = vmul.f32 %v4541_v54, %v1835_v19  ;;  %1998 = vmatpush.msrb.mxu1 %v1983_v8 }
 0x830   :  { %4167 = vmatmul.msk.f32.gmra.mxu2 %vm143_vm1, %v1859_v29 }
 0x831   :  { %v1840_v2 = vsel %vm1839_vm8, %v4541_v54, %v1836_v11  ;;  %1999 = vmatpush.msrb.mxu1 %v1982_v1 }
 0x832   :  { %v1846_v56 = vmul.f32 %v1840_v2, %v5733_v60  ;;  %v1978_v60 = vld [vmem:[#allocation4 + $0xc0] sm:$0xff] }
 0x833   :  { %2000 = vmatpush.msrb.mxu1 %v1981_v35 }
 0x834   :  { %v1853_v33 = vmul.f32 %v5740_v59, %v1846_v56  ;;  %v1977_v59 = vld [vmem:[#allocation4 + $0xb8] sm:$0xff] }
 0x835   :  { %2001 = vmatpush.msrb.mxu1 %v1980_v6 }
 0x836   :  { %v1860_v62 = vadd.f32 %v5743_v7, %v1853_v33  ;;  %v1976_v7 = vld [vmem:[#allocation4 + $0xb0] sm:$0xff] }
 0x837   :  { %2002 = vmatpush.msrb.mxu1 %v1979_v5 }
 0x838   :  { %4168 = vmatmul.msk.f32.gmra.mxu2 %vm143_vm1, %v1860_v62 }
 0x839   :  { %2003 = vmatpush.msrb.mxu1 %v1978_v60 }
 0x83b   :  { %2004 = vmatpush.msrb.mxu1 %v1977_v59 }
 0x83d   :  { %2005 = vmatpush.msrb.mxu1 %v1976_v7 }
 0x83f   :  { %2006 = vmatpush.msrb.mxu1 %v1975_v12 }
 0x841   :  { %2007 = vmatpush.msrb.mxu1 %v1974_v13 }
 0x859   :  { %v1902_v4 = vpop.f32.mrf.mxu2 }
 0x85a   :  { %v1903_v47 = vadd.f32 %v4408_v40, %v1902_v4 }
 0x85c   :  { %v1926_v15 = vmul.f32 0.044715, %v1903_v47  ;;  %v1920_v22 = vmul.f32 0.5, %v1903_v47 }
 0x85e   :  { %v1932_v55 = vmul.f32 %v1926_v15, %v1903_v47 }
 0x860   :  { %v1938_v10 = vmul.f32 %v1932_v55, %v1903_v47 }
 0x861   :  { %v1905_v31 = vpop.f32.mrf.mxu2 }
 0x862   :  { %v1906_v41 = vadd.f32 %v4408_v40, %v1905_v31  ;;  %v1944_v53 = vadd.f32 %v1938_v10, %v1903_v47 }
 0x864   :  { %v1950_v63 = vmul.f32 0.7978846, %v1944_v53  ;;  %v1927_v0 = vmul.f32 0.044715, %v1906_v41  ;;  %v1921_v23 = vmul.f32 0.5, %v1906_v41 }
 0x866   :  { %4542 = vtanh.f32 %v1950_v63  ;;  %v1933_v52 = vmul.f32 %v1927_v0, %v1906_v41  ;;  %v4409_v0 = vld [vmem:[#allocation6 + $0x67] ss:$0 sm:$0xff] }
 0x868   :  { %v1939_v48 = vmul.f32 %v1933_v52, %v1906_v41 }
 0x86a   :  { %v1945_v42 = vadd.f32 %v1939_v48, %v1906_v41 }
 0x86c   :  { %v4543_v18 = vpop.eup %4542  ;;  %v1951_v51 = vmul.f32 0.7978846, %v1945_v42 }
 0x86d   :  { %v1962_v61 = vadd.f32 1.0, %v4543_v18 }
 0x86e   :  { %4544 = vtanh.f32 %v1951_v51 }
 0x86f   :  { %v1968_v28 = vmul.f32 %v1962_v61, %v1920_v22 }
 0x871   :  { %2008 = vmatmul.f32.vlgmr.msrb.gmra.mxu1 %v1968_v28 }
 0x874   :  { %v4545_v3 = vpop.eup %4544 }
 0x875   :  { %v1963_v46 = vadd.f32 1.0, %v4545_v3 }
 0x877   :  { %v1969_v30 = vmul.f32 %v1963_v46, %v1921_v23 }
 0x879   :  { %v1908_v38 = vpop.f32.mrf.mxu2  ;;  %2011 = vmatmul.f32.gmra.mxu1 %v1969_v30 }
 0x87a   :  { %v1909_v50 = vadd.f32 %v4408_v40, %v1908_v38 }
 0x87c   :  { %v1928_v34 = vmul.f32 0.044715, %v1909_v50  ;;  %v1922_v16 = vmul.f32 0.5, %v1909_v50 }
 0x87e   :  { %v1934_v9 = vmul.f32 %v1928_v34, %v1909_v50 }
 0x880   :  { %v1940_v24 = vmul.f32 %v1934_v9, %v1909_v50 }
 0x882   :  { %v1946_v36 = vadd.f32 %v1940_v24, %v1909_v50 }
 0x884   :  { %v1952_v54 = vmul.f32 0.7978846, %v1946_v36 }
 0x886   :  { %4546 = vtanh.f32 %v1952_v54 }
 0x88c   :  { %v4547_v17 = vpop.eup %4546 }
 0x88d   :  { %v1964_v21 = vadd.f32 1.0, %v4547_v17 }
 0x88f   :  { %v1970_v14 = vmul.f32 %v1964_v21, %v1922_v16 }
 0x891   :  { %2014 = vmatmul.f32.gmra.mxu1 %v1970_v14 }
 0x8ab   :  { %v1911_v39 = vpop.f32.mrf.mxu2 }
 0x8ac   :  { %v1912_v25 = vadd.f32 %v4408_v40, %v1911_v39 }
 0x8ae   :  { %v1929_v27 = vmul.f32 0.044715, %v1912_v25  ;;  %v1923_v60 = vmul.f32 0.5, %v1912_v25 }
 0x8b0   :  { %v1935_v57 = vmul.f32 %v1929_v27, %v1912_v25 }
 0x8b2   :  { %v1941_v19 = vmul.f32 %v1935_v57, %v1912_v25 }
 0x8b3   :  { %v1914_v29 = vpop.f32.mrf.mxu2 }
 0x8b4   :  { %v1915_v11 = vadd.f32 %v4408_v40, %v1914_v29  ;;  %v1947_v2 = vadd.f32 %v1941_v19, %v1912_v25 }
 0x8b6   :  { %v1953_v56 = vmul.f32 0.7978846, %v1947_v2  ;;  %v1930_v33 = vmul.f32 0.044715, %v1915_v11  ;;  %v1924_v55 = vmul.f32 0.5, %v1915_v11 }
 0x8b8   :  { %4548 = vtanh.f32 %v1953_v56  ;;  %v1936_v62 = vmul.f32 %v1930_v33, %v1915_v11 }
 0x8ba   :  { %v1942_v20 = vmul.f32 %v1936_v62, %v1915_v11 }
 0x8bb   :  { %v1917_v45 = vpop.f32.mrf.mxu2 }
 0x8bc   :  { %v1918_v8 = vadd.f32 %v4408_v40, %v1917_v45  ;;  %v1948_v1 = vadd.f32 %v1942_v20, %v1915_v11 }
 0x8be   :  { %v4549_v35 = vpop.eup %4548  ;;  %v1954_v6 = vmul.f32 0.7978846, %v1948_v1  ;;  %v1931_v5 = vmul.f32 0.044715, %v1918_v8  ;;  %v1925_v41 = vmul.f32 0.5, %v1918_v8 }
 0x8bf   :  { %v1965_v59 = vadd.f32 1.0, %v4549_v35 }
 0x8c0   :  { %4550 = vtanh.f32 %v1954_v6  ;;  %v1937_v7 = vmul.f32 %v1931_v5, %v1918_v8 }
 0x8c1   :  { %v1971_v12 = vmul.f32 %v1965_v59, %v1923_v60 }
 0x8c2   :  { %v1943_v13 = vmul.f32 %v1937_v7, %v1918_v8 }
 0x8c3   :  { %2017 = vmatmul.f32.gmra.mxu1 %v1971_v12 }
 0x8c4   :  { %v1949_v4 = vadd.f32 %v1943_v13, %v1918_v8 }
 0x8c6   :  { %v4551_v47 = vpop.eup %4550  ;;  %v1955_v15 = vmul.f32 0.7978846, %v1949_v4 }
 0x8c7   :  { %v1966_v10 = vadd.f32 1.0, %v4551_v47 }
 0x8c8   :  { %4552 = vtanh.f32 %v1955_v15  ;;  %v2184_v15 = vld [vmem:[#allocation4 + $0x138] sm:$0xff] }
 0x8c9   :  { %v1972_v31 = vmul.f32 %v1966_v10, %v1924_v55  ;;  %2217 = vmatpush.msra.mxu3 %v2184_v15  ;;  %v2183_v55 = vld [vmem:[#allocation4 + $0x130] sm:$0xff]  ;;  %v2182_v10 = vld [vmem:[#allocation4 + $0x128] sm:$0xff] }
 0x8cb   :  { %2020 = vmatmul.f32.gmra.mxu1 %v1972_v31  ;;  %2218 = vmatpush.msra.mxu3 %v2183_v55  ;;  %v2181_v31 = vld [vmem:[#allocation4 + $0x120] sm:$0xff] }
 0x8cd   :  { %2219 = vmatpush.msra.mxu3 %v2182_v10 }
 0x8ce   :  { %v4553_v40 = vpop.eup %4552 }
 0x8cf   :  { %v1967_v53 = vadd.f32 1.0, %v4553_v40  ;;  %2220 = vmatpush.msra.mxu3 %v2181_v31 }
 0x8d1   :  { %v1973_v63 = vmul.f32 %v1967_v53, %v1925_v41 }
 0x8d3   :  { %2023 = vmatmul.f32.gmra.mxu1 %v1973_v63 }
 0x8ee   :  { %v2009_v52 = vpop.f32.mrf.mxu1 }
 0x8ef   :  { %v2010_v48 = vadd.f32 %v4409_v0, %v2009_v52 }
 0x8f1   :  { %v5773_v42 = vadd.f32 %v2010_v48, %v5667_v43 }
 0x8f3   :  { %v2035_v18 = vsel %vm143_vm1, %v5773_v42, 0.0 }
 0x8f4   :  { %2036 = vadd.xlane.f32.xlu1 %v2035_v18 }
 0x8f6   :  { %v2012_v51 = vpop.f32.mrf.mxu1 }
 0x8f7   :  { %v2013_v22 = vadd.f32 %v4409_v0, %v2012_v51 }
 0x8f9   :  { %v5778_v61 = vadd.f32 %v2013_v22, %v5672_v37 }
 0x8fb   :  { %v2038_v28 = vsel %vm143_vm1, %v5778_v61, 0.0 }
 0x8fc   :  { %2039 = vadd.xlane.f32.xlu2 %v2038_v28 }
 0x90e   :  { %v2015_v3 = vpop.f32.mrf.mxu1 }
 0x90f   :  { %v2016_v23 = vadd.f32 %v4409_v0, %v2015_v3 }
 0x911   :  { %v5783_v46 = vadd.f32 %v2016_v23, %v5677_v49 }
 0x913   :  { %v2041_v43 = vsel %vm143_vm1, %v5783_v46, 0.0 }
 0x914   :  { %2042 = vadd.xlane.f32.xlu0 %v2041_v43 }
 0x940   :  { %v2018_v30 = vpop.f32.mrf.mxu1 }
 0x941   :  { %v2019_v38 = vadd.f32 %v4409_v0, %v2018_v30  ;;  %v5846_v30 = vld [vmem:[#allocation6 + $0x68] ss:$0 sm:$0xff] }
 0x943   :  { %v5788_v50 = vadd.f32 %v2019_v38, %v5682_v58 }
 0x945   :  { %v2044_v37 = vsel %vm143_vm1, %v5788_v50, 0.0 }
 0x946   :  { %2045 = vadd.xlane.f32.xlu1 %v2044_v37 }
 0x948   :  { %v2021_v34 = vpop.f32.mrf.mxu1 }
 0x949   :  { %v2022_v9 = vadd.f32 %v4409_v0, %v2021_v34 }
 0x94b   :  { %v5793_v24 = vadd.f32 %v2022_v9, %v5687_v26  ;;  %v5849_v9 = vld [vmem:[#allocation6 + $0x69] ss:$0 sm:$0xff] }
 0x94d   :  { %v2047_v49 = vsel %vm143_vm1, %v5793_v24, 0.0 }
 0x94e   :  { %2048 = vadd.xlane.f32.xlu2 %v2047_v49 }
 0x950   :  { %v2024_v36 = vpop.f32.mrf.mxu1 }
 0x951   :  { %v2025_v54 = vadd.f32 %v4409_v0, %v2024_v36 }
 0x953   :  { %v5798_v17 = vadd.f32 %v2025_v54, %v5692_v32 }
 0x955   :  { %v2050_v58 = vsel %vm143_vm1, %v5798_v17, 0.0 }
 0x956   :  { %2051 = vadd.xlane.f32.xlu0 %v2050_v58 }
 0x967   :  { %v2037_v16 = vpop.xlane.xlu1 %2036 }
 0x968   :  { %v2053_v21 = vmul.f32 %v2037_v16, %v4855_v44 }
 0x96a   :  { %v5804_v14 = vsub.f32 %v5773_v42, %v2053_v21 }
 0x96c   :  { %v2065_v26 = vmul.f32 %v5804_v14, %v5804_v14 }
 0x96e   :  { %v2071_v39 = vsel %vm143_vm1, %v2065_v26, 0.0 }
 0x96f   :  { %2072 = vadd.xlane.f32.xlu1 %v2071_v39  ;;  %v2040_v25 = vpop.xlane.xlu2 %2039 }
 0x970   :  { %v2054_v32 = vmul.f32 %v2040_v25, %v4855_v44 }
 0x972   :  { %v5811_v27 = vsub.f32 %v5778_v61, %v2054_v32 }
 0x974   :  { %v2066_v57 = vmul.f32 %v5811_v27, %v5811_v27 }
 0x976   :  { %v2074_v19 = vsel %vm143_vm1, %v2066_v57, 0.0 }
 0x977   :  { %2075 = vadd.xlane.f32.xlu2 %v2074_v19 }
 0x987   :  { %v2043_v29 = vpop.xlane.xlu0 %2042 }
 0x988   :  { %v2055_v11 = vmul.f32 %v2043_v29, %v4855_v44 }
 0x98a   :  { %v5818_v2 = vsub.f32 %v5783_v46, %v2055_v11 }
 0x98c   :  { %v2067_v56 = vmul.f32 %v5818_v2, %v5818_v2 }
 0x98e   :  { %v2077_v33 = vsel %vm143_vm1, %v2067_v56, 0.0 }
 0x98f   :  { %2078 = vadd.xlane.f32.xlu0 %v2077_v33 }
 0x9b9   :  { %v2046_v62 = vpop.xlane.xlu1 %2045 }
 0x9ba   :  { %v2056_v20 = vmul.f32 %v2046_v62, %v4855_v44 }
 0x9bc   :  { %v5825_v45 = vsub.f32 %v5788_v50, %v2056_v20 }
 0x9be   :  { %v2068_v8 = vmul.f32 %v5825_v45, %v5825_v45 }
 0x9c0   :  { %v2080_v1 = vsel %vm143_vm1, %v2068_v8, 0.0 }
 0x9c1   :  { %2081 = vadd.xlane.f32.xlu1 %v2080_v1  ;;  %v2049_v35 = vpop.xlane.xlu2 %2048 }
 0x9c2   :  { %v2057_v6 = vmul.f32 %v2049_v35, %v4855_v44 }
 0x9c4   :  { %v5832_v5 = vsub.f32 %v5793_v24, %v2057_v6 }
 0x9c6   :  { %v2069_v60 = vmul.f32 %v5832_v5, %v5832_v5 }
 0x9c8   :  { %v2083_v59 = vsel %vm143_vm1, %v2069_v60, 0.0 }
 0x9c9   :  { %v2052_v7 = vpop.xlane.xlu0 %2051  ;;  %2084 = vadd.xlane.f32.xlu2 %v2083_v59 }
 0x9ca   :  { %v2058_v12 = vmul.f32 %v2052_v7, %v4855_v44 }
 0x9cc   :  { %v5839_v13 = vsub.f32 %v5798_v17, %v2058_v12 }
 0x9ce   :  { %v2070_v4 = vmul.f32 %v5839_v13, %v5839_v13 }
 0x9d0   :  { %v2086_v47 = vsel %vm143_vm1, %v2070_v4, 0.0 }
 0x9d1   :  { %2087 = vadd.xlane.f32.xlu0 %v2086_v47 }
 0x9e2   :  { %v2073_v40 = vpop.xlane.xlu1 %2072 }
 0x9e3   :  { %v2089_v41 = vmul.f32 %v2073_v40, %v4855_v44 }
 0x9e5   :  { %v2095_v53 = vadd.f32 1e-06, %v2089_v41 }
 0x9e7   :  { %4554 = vrsqrt.f32 %v2095_v53  ;;  %vm2107_vm10 = vweird.f32 %v2095_v53 }
 0x9ea   :  { %v2076_v63 = vpop.xlane.xlu2 %2075 }
 0x9eb   :  { %v2090_v0 = vmul.f32 %v2076_v63, %v4855_v44 }
 0x9ed   :  { %v4555_v52 = vpop.eup %4554  ;;  %v2096_v48 = vadd.f32 1e-06, %v2090_v0 }
 0x9ee   :  { %v2102_v18 = vmul.f32 %v4555_v52, %v2095_v53  ;;  %vm2108_vm9 = vweird.f32 %v4555_v52 }
 0x9ef   :  { %4556 = vrsqrt.f32 %v2096_v48  ;;  %vm2109_vm11 = vmor %vm2107_vm10, %vm2108_vm9  ;;  %vm2117_vm15 = vweird.f32 %v2096_v48 }
 0x9f0   :  { %v2103_v51 = vmul.f32 %v4555_v52, %v2102_v18 }
 0x9f2   :  { %v2104_v22 = vmul.f32 0.5, %v2103_v51 }
 0x9f4   :  { %v2105_v28 = vsub.f32 1.5, %v2104_v22 }
 0x9f5   :  { %v4557_v3 = vpop.eup %4556 }
 0x9f6   :  { %v2106_v23 = vmul.f32 %v4555_v52, %v2105_v28  ;;  %v2112_v43 = vmul.f32 %v4557_v3, %v2096_v48  ;;  %vm2118_vm12 = vweird.f32 %v4557_v3 }
 0x9f7   :  { %vm2119_vm0 = vmor %vm2117_vm15, %vm2118_vm12 }
 0x9f8   :  { %v2110_v38 = vsel %vm2109_vm11, %v4555_v52, %v2106_v23  ;;  %v2113_v37 = vmul.f32 %v4557_v3, %v2112_v43 }
 0x9f9   :  { %v2161_v34 = vmul.f32 %v2110_v38, %v5804_v14 }
 0x9fa   :  { %v2114_v49 = vmul.f32 0.5, %v2113_v37 }
 0x9fb   :  { %v2168_v36 = vmul.f32 %v5846_v30, %v2161_v34 }
 0x9fc   :  { %v2115_v54 = vsub.f32 1.5, %v2114_v49 }
 0x9fd   :  { %v2175_v58 = vadd.f32 %v5849_v9, %v2168_v36 }
 0x9fe   :  { %v2116_v16 = vmul.f32 %v4557_v3, %v2115_v54 }
 0x9ff   :  { %4169 = vmatmul.msk.f32.vlgmr.msra.gmra.mxu3 %vm143_vm1, %v2175_v58 }
 0xa00   :  { %v2120_v21 = vsel %vm2119_vm0, %v4557_v3, %v2116_v16 }
 0xa01   :  { %v2162_v39 = vmul.f32 %v2120_v21, %v5811_v27 }
 0xa02   :  { %v2079_v26 = vpop.xlane.xlu0 %2078 }
 0xa03   :  { %v2091_v14 = vmul.f32 %v2079_v26, %v4855_v44  ;;  %v2169_v25 = vmul.f32 %v5846_v30, %v2162_v39 }
 0xa05   :  { %v2097_v32 = vadd.f32 1e-06, %v2091_v14  ;;  %v2176_v57 = vadd.f32 %v5849_v9, %v2169_v25  ;;  %v4412_v25 = vld [vmem:[#allocation6 + $0x6a] ss:$0 sm:$0xff] }
 0xa07   :  { %4558 = vrsqrt.f32 %v2097_v32  ;;  %4170 = vmatmul.msk.f32.gmra.mxu3 %vm143_vm1, %v2176_v57  ;;  %vm2127_vm3 = vweird.f32 %v2097_v32 }
 0xa0d   :  { %v4559_v19 = vpop.eup %4558 }
 0xa0e   :  { %v2122_v29 = vmul.f32 %v4559_v19, %v2097_v32  ;;  %vm2128_vm2 = vweird.f32 %v4559_v19 }
 0xa0f   :  { %vm2129_vm4 = vmor %vm2127_vm3, %vm2128_vm2 }
 0xa10   :  { %v2123_v11 = vmul.f32 %v4559_v19, %v2122_v29 }
 0xa12   :  { %v2124_v56 = vmul.f32 0.5, %v2123_v11 }
 0xa14   :  { %v2125_v33 = vsub.f32 1.5, %v2124_v56 }
 0xa16   :  { %v2126_v62 = vmul.f32 %v4559_v19, %v2125_v33 }
 0xa18   :  { %v2130_v27 = vsel %vm2129_vm4, %v4559_v19, %v2126_v62 }
 0xa19   :  { %v2163_v20 = vmul.f32 %v2130_v27, %v5818_v2 }
 0xa1b   :  { %v2170_v8 = vmul.f32 %v5846_v30, %v2163_v20 }
 0xa1d   :  { %v2177_v1 = vadd.f32 %v5849_v9, %v2170_v8 }
 0xa1f   :  { %4171 = vmatmul.msk.f32.gmra.mxu3 %vm143_vm1, %v2177_v1 }
 0xa34   :  { %v2082_v35 = vpop.xlane.xlu1 %2081 }
 0xa35   :  { %v2092_v6 = vmul.f32 %v2082_v35, %v4855_v44 }
 0xa37   :  { %v2098_v60 = vadd.f32 1e-06, %v2092_v6 }
 0xa39   :  { %4560 = vrsqrt.f32 %v2098_v60  ;;  %vm2137_vm8 = vweird.f32 %v2098_v60 }
 0xa3c   :  { %v2085_v59 = vpop.xlane.xlu2 %2084 }
 0xa3d   :  { %v2093_v7 = vmul.f32 %v2085_v59, %v4855_v44 }
 0xa3f   :  { %v4561_v12 = vpop.eup %4560  ;;  %v2099_v4 = vadd.f32 1e-06, %v2093_v7 }
 0xa40   :  { %v2132_v47 = vmul.f32 %v4561_v12, %v2098_v60  ;;  %vm2138_vm5 = vweird.f32 %v4561_v12 }
 0xa41   :  { %4562 = vrsqrt.f32 %v2099_v4  ;;  %vm2139_vm9 = vmor %vm2137_vm8, %vm2138_vm5  ;;  %vm2147_vm11 = vweird.f32 %v2099_v4 }
 0xa42   :  { %v2133_v15 = vmul.f32 %v4561_v12, %v2132_v47 }
 0xa44   :  { %v2134_v2 = vmul.f32 0.5, %v2133_v15  ;;  %v2088_v55 = vpop.xlane.xlu0 %2087 }
 0xa45   :  { %v2094_v10 = vmul.f32 %v2088_v55, %v4855_v44 }
 0xa46   :  { %v2135_v31 = vsub.f32 1.5, %v2134_v2 }
 0xa47   :  { %v4563_v40 = vpop.eup %4562  ;;  %v2100_v41 = vadd.f32 1e-06, %v2094_v10 }
 0xa48   :  { %v2136_v53 = vmul.f32 %v4561_v12, %v2135_v31  ;;  %v2142_v63 = vmul.f32 %v4563_v40, %v2099_v4  ;;  %vm2148_vm10 = vweird.f32 %v4563_v40 }
 0xa49   :  { %4564 = vrsqrt.f32 %v2100_v41  ;;  %vm2149_vm12 = vmor %vm2147_vm11, %vm2148_vm10  ;;  %vm2157_vm0 = vweird.f32 %v2100_v41 }
 0xa4a   :  { %v2140_v0 = vsel %vm2139_vm9, %v4561_v12, %v2136_v53  ;;  %v2143_v52 = vmul.f32 %v4563_v40, %v2142_v63 }
 0xa4b   :  { %v2164_v48 = vmul.f32 %v2140_v0, %v5825_v45 }
 0xa4c   :  { %v2144_v18 = vmul.f32 0.5, %v2143_v52 }
 0xa4d   :  { %v2171_v51 = vmul.f32 %v5846_v30, %v2164_v48 }
 0xa4e   :  { %v2145_v22 = vsub.f32 1.5, %v2144_v18 }
 0xa4f   :  { %v4565_v28 = vpop.eup %4564  ;;  %v2178_v3 = vadd.f32 %v5849_v9, %v2171_v51 }
 0xa50   :  { %v2146_v23 = vmul.f32 %v4563_v40, %v2145_v22  ;;  %v2152_v43 = vmul.f32 %v4565_v28, %v2100_v41  ;;  %vm2158_vm15 = vweird.f32 %v4565_v28 }
 0xa51   :  { %4172 = vmatmul.msk.f32.gmra.mxu3 %vm143_vm1, %v2178_v3  ;;  %vm2159_vm2 = vmor %vm2157_vm0, %vm2158_vm15 }
 0xa52   :  { %v2150_v38 = vsel %vm2149_vm12, %v4563_v40, %v2146_v23  ;;  %v2153_v37 = vmul.f32 %v4565_v28, %v2152_v43 }
 0xa53   :  { %v2165_v34 = vmul.f32 %v2150_v38, %v5832_v5 }
 0xa54   :  { %v2154_v49 = vmul.f32 0.5, %v2153_v37 }
 0xa55   :  { %v2172_v45 = vmul.f32 %v5846_v30, %v2165_v34 }
 0xa56   :  { %v2155_v36 = vsub.f32 1.5, %v2154_v49 }
 0xa57   :  { %v2179_v54 = vadd.f32 %v5849_v9, %v2172_v45 }
 0xa58   :  { %v2156_v58 = vmul.f32 %v4565_v28, %v2155_v36 }
 0xa59   :  { %4173 = vmatmul.msk.f32.gmra.mxu3 %vm143_vm1, %v2179_v54 }
 0xa5a   :  { %v2160_v16 = vsel %vm2159_vm2, %v4565_v28, %v2156_v58 }
 0xa5b   :  { %v2166_v21 = vmul.f32 %v2160_v16, %v5839_v13 }
 0xa5d   :  { %v2173_v26 = vmul.f32 %v5846_v30, %v2166_v21 }
 0xa5f   :  { %v2180_v39 = vadd.f32 %v5849_v9, %v2173_v26 }
 0xa61   :  { %4174 = vmatmul.msk.f32.gmra.mxu3 %vm143_vm1, %v2180_v39 }
 0xa82   :  { %v2222_v5 = vpop.f32.mrf.mxu3 }
 0xa83   :  { %v2223_v56 = vadd.f32 %v4412_v25, %v2222_v5 }
 0xa85   :  { %v5890_v20 = vmul.f32 0.35355338, %v2223_v56 }
 0xa8a   :  { %v2225_v14 = vpop.f32.mrf.mxu3 }
 0xa8b   :  { %v2226_v19 = vadd.f32 %v4412_v25, %v2225_v14 }
 0xa8d   :  { %v5901_v35 = vmul.f32 0.35355338, %v2226_v19  ;;  %v5953_v47 = vpack.i.bf16 %v2223_v56, %v2226_v19 }
 0xaa2   :  { %v2228_v32 = vpop.f32.mrf.mxu3 }
 0xaa3   :  { %v2229_v57 = vadd.f32 %v4412_v25, %v2228_v32 }
 0xaa5   :  { %2256 = vrot.lane.b32.xlu1 %v2229_v57, %s4786_s0  ;;  %v5888_v27 = vmul.f32 0.35355338, %v2229_v57 }
 0xaad   :  { %2558 = vrot.lane.b32.xlu1 %v2226_v19, %s4787_s2 }
 0xad4   :  { %v2231_v29 = vpop.f32.mrf.mxu3 }
 0xad5   :  { %v2232_v11 = vadd.f32 %v4412_v25, %v2231_v29 }
 0xad7   :  { %2562 = vrot.lane.b32.xlu2 %v2232_v11, %s4787_s2  ;;  %2258 = vrot.lane.b32.xlu0 %v2232_v11, %s4786_s0  ;;  %v5897_v8 = vmul.f32 0.35355338, %v2232_v11  ;;  %v5946_v7 = vpack.i.bf16 %v2229_v57, %v2232_v11 }
 0xadc   :  { %v2234_v13 = vpop.f32.mrf.mxu3 }
 0xadd   :  { %v2235_v30 = vadd.f32 %v4412_v25, %v2234_v13 }
 0xadf   :  { %2254 = vrot.lane.b32.xlu2 %v2226_v19, %s4786_s0  ;;  %2564 = vrot.lane.b32.xlu1 %v2235_v30, %s4787_s2  ;;  %v5899_v1 = vmul.f32 0.35355338, %v2235_v30 }
 0xae0   :  { %2260 = vrot.lane.b32.xlu0 %v2235_v30, %s4786_s0 }
 0xae4   :  { %v2237_v9 = vpop.f32.mrf.mxu3 }
 0xae5   :  { %v2238_v33 = vadd.f32 %v4412_v25, %v2237_v9 }
 0xae7   :  { %2556 = vrot.lane.b32.xlu2 %v2223_v56, %s4787_s2  ;;  %2262 = vrot.lane.b32.xlu1 %v2238_v33, %s4786_s0  ;;  %v4347_v62 = vpack.i.bf16 %v2235_v30, %v2238_v33  ;;  %v5921_v6 = vmul.f32 0.35355338, %v2238_v33 }
 0xae8   :  { %2560 = vrot.lane.b32.xlu0 %v2229_v57, %s4787_s2 }
 0xaef   :  { %2548 = vrot.lane.b32.xlu2 %v5888_v27, %s4788_s28  ;;  %2544 = vrot.lane.b32.xlu1 %v5890_v20, %s4788_s28 }
 0xaf0   :  { %2252 = vrot.lane.b32.xlu0 %v2223_v56, %s4786_s0 }
 0xaf7   :  { %2550 = vrot.lane.b32.xlu1 %v5897_v8, %s4788_s28  ;;  %2552 = vrot.lane.b32.xlu2 %v5899_v1, %s4788_s28 }
 0xaf8   :  { %2546 = vrot.lane.b32.xlu0 %v5901_v35, %s4788_s28 }
 0xaff   :  { %2862 = vrot.lane.b32.xlu1 %v2235_v30, %s4789_s29  ;;  %2858 = vrot.lane.b32.xlu2 %v2229_v57, %s4789_s29 }
 0xb00   :  { %3160 = vrot.lane.b32.xlu0 %v2235_v30, %s4790_s30 }
 0xb07   :  { %2860 = vrot.lane.b32.xlu1 %v2232_v11, %s4789_s29  ;;  %2856 = vrot.lane.b32.xlu2 %v2226_v19, %s4789_s29 }
 0xb08   :  { %3158 = vrot.lane.b32.xlu0 %v2232_v11, %s4790_s30 }
 0xb0f   :  { %3156 = vrot.lane.b32.xlu1 %v2229_v57, %s4790_s30  ;;  %2566 = vrot.lane.b32.xlu2 %v2238_v33, %s4787_s2 }
 0xb10   :  { %2864 = vrot.lane.b32.xlu0 %v2238_v33, %s4789_s29 }
 0xb17   :  { %3154 = vrot.lane.b32.xlu1 %v2226_v19, %s4790_s30  ;;  %3152 = vrot.lane.b32.xlu2 %v2223_v56, %s4790_s30  ;;  %v2257_v12 = vpop.permute.xlu1 %2256 }
 0xb18   :  { %2854 = vrot.lane.b32.xlu0 %v2223_v56, %s4789_s29 }
 0xb1f   :  { %2842 = vrot.lane.b32.xlu1 %v5890_v20, %s4791_s4  ;;  %3162 = vrot.lane.b32.xlu2 %v2238_v33, %s4790_s30  ;;  %v2559_v15 = vpop.permute.xlu1 %2558 }
 0xb20   :  { %2554 = vrot.lane.b32.xlu0 %v5921_v6, %s4788_s28 }
 0xb27   :  { %3142 = vrot.lane.b32.xlu1 %v5901_v35, %s4792_s5  ;;  %2844 = vrot.lane.b32.xlu2 %v5901_v35, %s4791_s4 }
 0xb28   :  { %3140 = vrot.lane.b32.xlu0 %v5890_v20, %s4792_s5 }
 0xb2f   :  { %2848 = vrot.lane.b32.xlu1 %v5897_v8, %s4791_s4  ;;  %3144 = vrot.lane.b32.xlu2 %v5888_v27, %s4792_s5 }
 0xb30   :  { %2846 = vrot.lane.b32.xlu0 %v5888_v27, %s4791_s4 }
 0xb31   :  { %v2563_v60 = vpop.permute.xlu2 %2562 }
 0xb37   :  { %3148 = vrot.lane.b32.xlu1 %v5899_v1, %s4792_s5  ;;  %2850 = vrot.lane.b32.xlu2 %v5899_v1, %s4791_s4 }
 0xb38   :  { %3146 = vrot.lane.b32.xlu0 %v5897_v8, %s4792_s5 }
 0xb39   :  { %v2255_v59 = vpop.permute.xlu2 %2254 }
 0xb3f   :  { %4348 = vrot.lane.b32.xlu1 %v4347_v62, %s4794_s7  ;;  %4353 = vrot.lane.b32.xlu2 %v5946_v7, %s4793_s6 }
 0xb40   :  { %2852 = vrot.lane.b32.xlu0 %v5921_v6, %s4791_s4 }
 0xb41   :  { %v2557_v4 = vpop.permute.xlu2 %2556 }
 0xb47   :  { %4358 = vrot.lane.b32.xlu1 %v5946_v7, %s4794_s7  ;;  %4363 = vrot.lane.b32.xlu2 %v5953_v47, %s4793_s6 }
 0xb48   :  { %4343 = vrot.lane.b32.xlu0 %v4347_v62, %s4793_s6 }
 0xb49   :  { %v2259_v2 = vpop.permute.xlu0 %2258  ;;  %v2549_v55 = vpop.permute.xlu2 %2548 }
 0xb4f   :  { %4378 = vrot.lane.b32.xlu2 %v4347_v62, %s4796_s9 }
 0xb50   :  { %4368 = vrot.lane.b32.xlu0 %v5953_v47, %s4794_s7 }
 0xb51   :  { %v2565_v10 = vpop.permute.xlu1 %2564  ;;  %v5963_v31 = vpop.permute.xlu2 %2552 }
 0xb52   :  { %v2261_v40 = vpop.permute.xlu0 %2260 }
 0xb57   :  { %3150 = vrot.lane.b32.xlu2 %v5921_v6, %s4792_s5 }
 0xb58   :  { %4373 = vrot.lane.b32.xlu0 %v4347_v62, %s4795_s8 }
 0xb59   :  { %v2263_v41 = vpop.permute.xlu1 %2262  ;;  %v2859_v53 = vpop.permute.xlu2 %2858 }
 0xb5a   :  { %v2561_v63 = vpop.permute.xlu0 %2560  ;;  %4175 = vmatpush.xpose.msk.msrb.mxu0 %vm380_vm6, %v2263_v41 }
 0xb5e   :  { %4176 = vmatpush.xpose.msk.msrb.mxu0 %vm380_vm6, %v2261_v40 }
 0xb61   :  { %v2545_v0 = vpop.permute.xlu1 %2544  ;;  %v2857_v52 = vpop.permute.xlu2 %2856 }
 0xb62   :  { %v2253_v48 = vpop.permute.xlu0 %2252  ;;  %4177 = vmatpush.xpose.msk.msrb.mxu0 %vm380_vm6, %v2259_v2 }
 0xb66   :  { %4178 = vmatpush.xpose.msk.msrb.mxu0 %vm380_vm6, %v2257_v12 }
 0xb69   :  { %v2551_v18 = vpop.permute.xlu1 %2550  ;;  %v2567_v51 = vpop.permute.xlu2 %2566 }
 0xb6a   :  { %v2547_v22 = vpop.permute.xlu0 %2546  ;;  %4179 = vmatpush.xpose.msk.msrb.mxu0 %vm380_vm6, %v2255_v59  ;;  %4193 = vmatpush.xpose.msk.msra.mxu1 %vm380_vm6, %v2567_v51 }
 0xb6e   :  { %4180 = vmatpush.xpose.msk.msrb.mxu0 %vm380_vm6, %v2253_v48  ;;  %4194 = vmatpush.xpose.msk.msra.mxu1 %vm380_vm6, %v2565_v10 }
 0xb71   :  { %v2863_v28 = vpop.permute.xlu1 %2862  ;;  %4181 = vmatmul.msk.f32.vlgmr.msrb.gmra.mxu0 %vm380_vm6, %v5890_v20  ;;  %v3153_v23 = vpop.permute.xlu2 %3152 }
 0xb72   :  { %v3161_v3 = vpop.permute.xlu0 %3160  ;;  %4195 = vmatpush.xpose.msk.msra.mxu1 %vm380_vm6, %v2563_v60 }
 0xb76   :  { %4196 = vmatpush.xpose.msk.msra.mxu1 %vm380_vm6, %v2561_v63  ;;  %v4698_v63 = vld [vmem:[#allocation6 + $0x30] sm:$0xff] }
 0xb79   :  { %v2861_v43 = vpop.permute.xlu1 %2860  ;;  %4182 = vmatmul.msk.f32.gmra.mxu0 %vm380_vm6, %v5901_v35  ;;  %v3163_v37 = vpop.permute.xlu2 %3162 }
 0xb7a   :  { %v3159_v38 = vpop.permute.xlu0 %3158  ;;  %4197 = vmatpush.xpose.msk.msra.mxu1 %vm380_vm6, %v2559_v15 }
 0xb7e   :  { %4198 = vmatpush.xpose.msk.msra.mxu1 %vm380_vm6, %v2557_v4 }
 0xb81   :  { %v3157_v34 = vpop.permute.xlu1 %3156  ;;  %4183 = vmatmul.msk.f32.gmra.mxu0 %vm380_vm6, %v5888_v27  ;;  %4199 = vmatmul.msk.f32.vlgmr.msra.gmra.mxu1 %vm380_vm6, %v2545_v0  ;;  %v2845_v54 = vpop.permute.xlu2 %2844 }
 0xb82   :  { %4229 = vmatpush.xpose.msk.msrb.mxu1 %vm380_vm6, %v3163_v37  ;;  %v2865_v49 = vpop.permute.xlu0 %2864 }
 0xb83   :  { %4211 = vmatpush.xpose.msk.msra.mxu0 %vm380_vm6, %v2865_v49 }
 0xb86   :  { %4230 = vmatpush.xpose.msk.msrb.mxu1 %vm380_vm6, %v3161_v3 }
 0xb87   :  { %4212 = vmatpush.xpose.msk.msra.mxu0 %vm380_vm6, %v2863_v28 }
 0xb89   :  { %v3155_v45 = vpop.permute.xlu1 %3154  ;;  %4184 = vmatmul.msk.f32.gmra.mxu0 %vm380_vm6, %v5897_v8  ;;  %4200 = vmatmul.msk.f32.gmra.mxu1 %vm380_vm6, %v2547_v22  ;;  %v3145_v39 = vpop.permute.xlu2 %3144 }
 0xb8a   :  { %4231 = vmatpush.xpose.msk.msrb.mxu1 %vm380_vm6, %v3159_v38  ;;  %v2855_v36 = vpop.permute.xlu0 %2854  ;;  %v6035_v38 = vld [vmem:[#allocation6 + $0x40] sm:$0xff] }
 0xb8b   :  { %4213 = vmatpush.xpose.msk.msra.mxu0 %vm380_vm6, %v2861_v43 }
 0xb8e   :  { %4232 = vmatpush.xpose.msk.msrb.mxu1 %vm380_vm6, %v3157_v34 }
 0xb8f   :  { %4214 = vmatpush.xpose.msk.msra.mxu0 %vm380_vm6, %v2859_v53 }
 0xb91   :  { %v2843_v58 = vpop.permute.xlu1 %2842  ;;  %4185 = vmatmul.msk.f32.gmra.mxu0 %vm380_vm6, %v5899_v1  ;;  %4201 = vmatmul.msk.f32.gmra.mxu1 %vm380_vm6, %v2549_v55  ;;  %v2851_v25 = vpop.permute.xlu2 %2850 }
 0xb92   :  { %4233 = vmatpush.xpose.msk.msrb.mxu1 %vm380_vm6, %v3155_v45  ;;  %v2555_v16 = vpop.permute.xlu0 %2554 }
 0xb93   :  { %4215 = vmatpush.xpose.msk.msra.mxu0 %vm380_vm6, %v2857_v52 }
 0xb96   :  { %4234 = vmatpush.xpose.msk.msrb.mxu1 %vm380_vm6, %v3153_v23 }
 0xb97   :  { %4216 = vmatpush.xpose.msk.msra.mxu0 %vm380_vm6, %v2855_v36 }
 0xb99   :  { %v3143_v21 = vpop.permute.xlu1 %3142  ;;  %4186 = vmatmul.msk.f32.gmra.mxu0 %vm380_vm6, %v5921_v6  ;;  %4202 = vmatmul.msk.f32.gmra.mxu1 %vm380_vm6, %v2551_v18  ;;  %v4354_v19 = vpop.permute.xlu2 %4353  ;;  %v4699_v18 = vld [vmem:[#allocation6 + $0x38] sm:$0xff] }
 0xb9a   :  { %v3141_v26 = vpop.permute.xlu0 %3140  ;;  %v4355_v1 = vunpack.i.l.bf16 %v4354_v19  ;;  %v4356_v35 = vunpack.i.h.bf16 %v4354_v19 }
 0xba1   :  { %v2849_v5 = vpop.permute.xlu1 %2848  ;;  %4203 = vmatmul.msk.f32.gmra.mxu1 %vm380_vm6, %v5963_v31  ;;  %4217 = vmatmul.msk.f32.vlgmr.msra.gmra.mxu0 %vm380_vm6, %v2843_v58  ;;  %v4364_v9 = vpop.permute.xlu2 %4363  ;;  %v6046_v58 = vld [vmem:[#allocation6 + $0x48] sm:$0xff] }
 0xba2   :  { %v2847_v14 = vpop.permute.xlu0 %2846  ;;  %v4365_v60 = vunpack.i.l.bf16 %v4364_v9  ;;  %v4366_v4 = vunpack.i.h.bf16 %v4364_v9 }
 0xba9   :  { %v3149_v32 = vpop.permute.xlu1 %3148  ;;  %4204 = vmatmul.msk.f32.gmra.mxu1 %vm380_vm6, %v2555_v16  ;;  %4218 = vmatmul.msk.f32.gmra.mxu0 %vm380_vm6, %v2845_v54  ;;  %v4379_v59 = vpop.permute.xlu2 %4378 }
 0xbaa   :  { %v3147_v57 = vpop.permute.xlu0 %3146  ;;  %v4380_v2 = vunpack.i.l.bf16 %v4379_v59  ;;  %v4381_v55 = vunpack.i.h.bf16 %v4379_v59 }
 0xbb1   :  { %v4349_v29 = vpop.permute.xlu1 %4348  ;;  %4219 = vmatmul.msk.f32.gmra.mxu0 %vm380_vm6, %v2847_v14  ;;  %4235 = vmatmul.msk.f32.vlgmr.msrb.gmra.mxu1 %vm380_vm6, %v3141_v26  ;;  %v3151_v41 = vpop.permute.xlu2 %3150 }
 0xbb2   :  { %v2853_v11 = vpop.permute.xlu0 %2852  ;;  %v4350_v13 = vunpack.i.l.bf16 %v4349_v29  ;;  %v4351_v30 = vunpack.i.h.bf16 %v4349_v29 }
 0xbb4   :  { %2817 = vmatpush.msrb.mxu3 %v4350_v13 }
 0xbb6   :  { %2818 = vmatpush.msrb.mxu3 %v4351_v30  ;;  %v4703_v30 = vld [vmem:[#allocation6 + $0x58] sm:$0xff] }
 0xbb9   :  { %v4359_v56 = vpop.permute.xlu1 %4358  ;;  %4220 = vmatmul.msk.f32.gmra.mxu0 %vm380_vm6, %v2849_v5  ;;  %4236 = vmatmul.msk.f32.gmra.mxu1 %vm380_vm6, %v3143_v21 }
 0xbba   :  { %v4344_v33 = vpop.permute.xlu0 %4343  ;;  %v4360_v62 = vunpack.i.l.bf16 %v4359_v56  ;;  %v4361_v20 = vunpack.i.h.bf16 %v4359_v56 }
 0xbbb   :  { %v4345_v27 = vunpack.i.l.bf16 %v4344_v33  ;;  %v4346_v8 = vunpack.i.h.bf16 %v4344_v33 }
 0xbbc   :  { %2819 = vmatpush.msrb.mxu3 %v4360_v62 }
 0xbbd   :  { %2519 = vmatpush.msrb.mxu2 %v4345_v27 }
 0xbbe   :  { %2820 = vmatpush.msrb.mxu3 %v4361_v20 }
 0xbbf   :  { %2520 = vmatpush.msrb.mxu2 %v4346_v8 }
 0xbc1   :  { %2521 = vmatpush.msrb.mxu2 %v4355_v1  ;;  %4221 = vmatmul.msk.f32.gmra.mxu0 %vm380_vm6, %v2851_v25  ;;  %v4702_v25 = vld [vmem:[#allocation6 + $0x50] sm:$0xff] }
 0xbc2   :  { %v4369_v6 = vpop.permute.xlu0 %4368  ;;  %4237 = vmatmul.msk.f32.gmra.mxu1 %vm380_vm6, %v3145_v39 }
 0xbc3   :  { %v4370_v12 = vunpack.i.l.bf16 %v4369_v6  ;;  %2522 = vmatpush.msrb.mxu2 %v4356_v35  ;;  %v4371_v15 = vunpack.i.h.bf16 %v4369_v6 }
 0xbc5   :  { %2523 = vmatpush.msrb.mxu2 %v4365_v60  ;;  %2821 = vmatpush.msrb.mxu3 %v4370_v12 }
 0xbc7   :  { %2524 = vmatpush.msrb.mxu2 %v4366_v4  ;;  %2822 = vmatpush.msrb.mxu3 %v4371_v15 }
 0xbc9   :  { %3413 = vmatpush.msra.mxu3 %v4380_v2  ;;  %4222 = vmatmul.msk.f32.gmra.mxu0 %vm380_vm6, %v2853_v11 }
 0xbca   :  { %v4374_v10 = vpop.permute.xlu0 %4373  ;;  %4238 = vmatmul.msk.f32.gmra.mxu1 %vm380_vm6, %v3147_v57 }
 0xbcb   :  { %3414 = vmatpush.msra.mxu3 %v4381_v55  ;;  %v4375_v31 = vunpack.i.l.bf16 %v4374_v10  ;;  %v4376_v40 = vunpack.i.h.bf16 %v4374_v10 }
 0xbcd   :  { %3115 = vmatpush.msra.mxu2 %v4375_v31 }
 0xbcf   :  { %3116 = vmatpush.msra.mxu2 %v4376_v40 }
 0xbd2   :  { %4239 = vmatmul.msk.f32.gmra.mxu1 %vm380_vm6, %v3149_v32 }
 0xbda   :  { %4240 = vmatmul.msk.f32.gmra.mxu1 %vm380_vm6, %v3151_v41 }
 0xbee   :  { %v2311_v53 = vpop.f32.mrf.mxu0 }
 0xbef   :  { %v6023_v0 = vadd.f32 %v4698_v63, %v2311_v53 }
 0xbf1   :  { %v2329_v52 = vsel %vm446_vm7, %v6023_v0, -inf }
 0xbf2   :  { %2330 = vmax.xlane.f32.xlu1 %v2329_v52 }
 0xbf6   :  { %v2314_v48 = vpop.f32.mrf.mxu0 }
 0xbf7   :  { %v6027_v51 = vadd.f32 %v4699_v18, %v2314_v48 }
 0xbf9   :  { %v2332_v22 = vsel %vm446_vm7, %v6027_v51, -inf }
 0xbfa   :  { %2333 = vmax.xlane.f32.xlu2 %v2332_v22 }
 0xbfe   :  { %v2317_v28 = vpop.f32.mrf.mxu0  ;;  %v2609_v3 = vpop.f32.mrf.mxu1 }
 0xbff   :  { %v6031_v23 = vadd.f32 %v4698_v63, %v2609_v3  ;;  %v6038_v37 = vadd.f32 %v6035_v38, %v2317_v28 }
 0xc01   :  { %v2627_v43 = vsel %vm446_vm7, %v6031_v23, -inf  ;;  %v2335_v54 = vsel %vm446_vm7, %v6038_v37, -inf }
 0xc02   :  { %2628 = vmax.xlane.f32.xlu0 %v2627_v43 }
 0xc06   :  { %v2320_v34 = vpop.f32.mrf.mxu0  ;;  %v2612_v49 = vpop.f32.mrf.mxu1 }
 0xc07   :  { %v6040_v45 = vadd.f32 %v4699_v18, %v2612_v49  ;;  %v6049_v16 = vadd.f32 %v6046_v58, %v2320_v34 }
 0xc09   :  { %v2630_v36 = vsel %vm446_vm7, %v6040_v45, -inf  ;;  %v2338_v14 = vsel %vm446_vm7, %v6049_v16, -inf }
 0xc0a   :  { %2631 = vmax.xlane.f32.xlu1 %v2630_v36  ;;  %2336 = vmax.xlane.f32.xlu0 %v2335_v54 }
 0xc0e   :  { %v2323_v21 = vpop.f32.mrf.mxu0  ;;  %v2615_v26 = vpop.f32.mrf.mxu1 }
 0xc0f   :  { %v6052_v39 = vadd.f32 %v6035_v38, %v2615_v26  ;;  %v6058_v32 = vadd.f32 %v4702_v25, %v2323_v21 }
 0xc11   :  { %v2633_v5 = vsel %vm446_vm7, %v6052_v39, -inf  ;;  %v2341_v11 = vsel %vm446_vm7, %v6058_v32, -inf }
 0xc12   :  { %2634 = vmax.xlane.f32.xlu2 %v2633_v5  ;;  %2339 = vmax.xlane.f32.xlu1 %v2338_v14 }
 0xc16   :  { %v2326_v57 = vpop.f32.mrf.mxu0  ;;  %v2618_v19 = vpop.f32.mrf.mxu1 }
 0xc17   :  { %v6061_v29 = vadd.f32 %v6046_v58, %v2618_v19  ;;  %v6067_v9 = vadd.f32 %v4703_v30, %v2326_v57 }
 0xc19   :  { %v2636_v13 = vsel %vm446_vm7, %v6061_v29, -inf  ;;  %v2344_v20 = vsel %vm446_vm7, %v6067_v9, -inf }
 0xc1a   :  { %2342 = vmax.xlane.f32.xlu2 %v2341_v11  ;;  %2637 = vmax.xlane.f32.xlu0 %v2636_v13 }
 0xc1e   :  { %v2621_v56 = vpop.f32.mrf.mxu1  ;;  %v2907_v33 = vpop.f32.mrf.mxu0 }
 0xc1f   :  { %v6069_v62 = vadd.f32 %v4702_v25, %v2621_v56  ;;  %v6075_v8 = vadd.f32 %v4698_v63, %v2907_v33 }
 0xc21   :  { %v2639_v27 = vsel %vm446_vm7, %v6069_v62, -inf  ;;  %v2925_v59 = vsel %vm446_vm7, %v6075_v8, -inf }
 0xc22   :  { %2640 = vmax.xlane.f32.xlu1 %v2639_v27  ;;  %2345 = vmax.xlane.f32.xlu0 %v2344_v20 }
 0xc26   :  { %v2624_v1 = vpop.f32.mrf.mxu1  ;;  %v2910_v35 = vpop.f32.mrf.mxu0 }
 0xc27   :  { %v6077_v6 = vadd.f32 %v4703_v30, %v2624_v1  ;;  %v6087_v55 = vadd.f32 %v4699_v18, %v2910_v35 }
 0xc29   :  { %v2642_v60 = vsel %vm446_vm7, %v6077_v6, -inf  ;;  %v2928_v52 = vsel %vm446_vm7, %v6087_v55, -inf }
 0xc2a   :  { %2643 = vmax.xlane.f32.xlu2 %v2642_v60  ;;  %2926 = vmax.xlane.f32.xlu1 %v2925_v59 }
 0xc2e   :  { %v2913_v12 = vpop.f32.mrf.mxu0  ;;  %v3205_v4 = vpop.f32.mrf.mxu1 }
 0xc2f   :  { %v6083_v15 = vadd.f32 %v4698_v63, %v3205_v4  ;;  %v6101_v48 = vadd.f32 %v6035_v38, %v2913_v12 }
 0xc31   :  { %v3223_v2 = vsel %vm446_vm7, %v6083_v15, -inf  ;;  %v2931_v43 = vsel %vm446_vm7, %v6101_v48, -inf }
 0xc32   :  { %3224 = vmax.xlane.f32.xlu0 %v3223_v2 }
 0xc36   :  { %v2916_v10 = vpop.f32.mrf.mxu0  ;;  %v3208_v31 = vpop.f32.mrf.mxu1 }
 0xc37   :  { %v6090_v40 = vadd.f32 %v6046_v58, %v2916_v10  ;;  %v6092_v41 = vadd.f32 %v4699_v18, %v3208_v31 }
 0xc39   :  { %v3226_v53 = vsel %vm446_vm7, %v6092_v41, -inf  ;;  %v2934_v63 = vsel %vm446_vm7, %v6090_v40, -inf }
 0xc3a   :  { %3227 = vmax.xlane.f32.xlu2 %v3226_v53  ;;  %2935 = vmax.xlane.f32.xlu1 %v2934_v63 }
 0xc3b   :  { %2929 = vmax.xlane.f32.xlu0 %v2928_v52 }
 0xc3e   :  { %v2919_v22 = vpop.f32.mrf.mxu0 }
 0xc3f   :  { %v6103_v28 = vadd.f32 %v4702_v25, %v2919_v22  ;;  %v3211_v18 = vpop.f32.mrf.mxu1 }
 0xc40   :  { %v6106_v3 = vadd.f32 %v6035_v38, %v3211_v18 }
 0xc41   :  { %v2937_v34 = vsel %vm446_vm7, %v6103_v28, -inf }
 0xc42   :  { %2932 = vmax.xlane.f32.xlu2 %v2931_v43  ;;  %v3229_v49 = vsel %vm446_vm7, %v6106_v3, -inf  ;;  %2938 = vmax.xlane.f32.xlu1 %v2937_v34 }
 0xc43   :  { %3230 = vmax.xlane.f32.xlu0 %v3229_v49 }
 0xc46   :  { %v2922_v36 = vpop.f32.mrf.mxu0 }
 0xc47   :  { %v6114_v54 = vadd.f32 %v4703_v30, %v2922_v36  ;;  %v3214_v21 = vpop.f32.mrf.mxu1 }
 0xc48   :  { %v6117_v26 = vadd.f32 %v6046_v58, %v3214_v21 }
 0xc49   :  { %v2940_v38 = vsel %vm446_vm7, %v6114_v54, -inf }
 0xc4a   :  { %v3232_v5 = vsel %vm446_vm7, %v6117_v26, -inf  ;;  %2941 = vmax.xlane.f32.xlu1 %v2940_v38 }
 0xc4b   :  { %3233 = vmax.xlane.f32.xlu0 %v3232_v5 }
 0xc4f   :  { %v3217_v14 = vpop.f32.mrf.mxu1 }
 0xc50   :  { %v6123_v57 = vadd.f32 %v4702_v25, %v3217_v14 }
 0xc52   :  { %v3235_v19 = vsel %vm446_vm7, %v6123_v57, -inf }
 0xc53   :  { %3236 = vmax.xlane.f32.xlu2 %v3235_v19 }
 0xc57   :  { %v3220_v11 = vpop.f32.mrf.mxu1 }
 0xc58   :  { %v6127_v13 = vadd.f32 %v4703_v30, %v3220_v11 }
 0xc5a   :  { %v3238_v58 = vsel %vm446_vm7, %v6127_v13, -inf }
 0xc5b   :  { %3239 = vmax.xlane.f32.xlu2 %v3238_v58 }
 0xc65   :  { %v2331_v56 = vpop.xlane.xlu1 %2330 }
 0xc66   :  { %v2347_v33 = vsub.f32 %v6023_v0, %v2331_v56 }
 0xc68   :  { %v2353_v27 = vmul.f32 1.442695, %v2347_v33 }
 0xc6a   :  { %4566 = vpow2.f32 %v2353_v27 }
 0xc6d   :  { %v2334_v1 = vpop.xlane.xlu2 %2333 }
 0xc6e   :  { %v2348_v60 = vsub.f32 %v6027_v51, %v2334_v1 }
 0xc70   :  { %v6132_v20 = vpop.eup %4566  ;;  %v2355_v12 = vmul.f32 1.442695, %v2348_v60 }
 0xc71   :  { %v2365_v25 = vsel %vm446_vm7, %v6132_v20, 0.0 }
 0xc72   :  { %2366 = vadd.xlane.f32.xlu2 %v2365_v25 }
 0xc75   :  { %v2629_v35 = vpop.xlane.xlu0 %2628 }
 0xc76   :  { %v2645_v30 = vsub.f32 %v6031_v23, %v2629_v35 }
 0xc78   :  { %v2651_v59 = vmul.f32 1.442695, %v2645_v30 }
 0xc7a   :  { %4568 = vpow2.f32 %v2651_v59 }
 0xc7b   :  { %4570 = vpow2.f32 %v2355_v12 }
 0xc7d   :  { %v2632_v4 = vpop.xlane.xlu1 %2631  ;;  %v2337_v2 = vpop.xlane.xlu0 %2336 }
 0xc7e   :  { %v2646_v0 = vsub.f32 %v6040_v45, %v2632_v4  ;;  %v2349_v53 = vsub.f32 %v6038_v37, %v2337_v2 }
 0xc80   :  { %v6139_v10 = vpop.eup %4568  ;;  %v2653_v31 = vmul.f32 1.442695, %v2646_v0  ;;  %v2357_v23 = vmul.f32 1.442695, %v2349_v53 }
 0xc81   :  { %v2663_v63 = vsel %vm446_vm7, %v6139_v10, 0.0  ;;  %v6144_v22 = vpop.eup %4570 }
 0xc82   :  { %4572 = vpow2.f32 %v2653_v31  ;;  %2664 = vadd.xlane.f32.xlu1 %v2663_v63  ;;  %v2368_v49 = vsel %vm446_vm7, %v6144_v22, 0.0 }
 0xc83   :  { %4574 = vpow2.f32 %v2357_v23 }
 0xc85   :  { %v2340_v51 = vpop.xlane.xlu1 %2339  ;;  %v2635_v52 = vpop.xlane.xlu2 %2634 }
 0xc86   :  { %v2647_v18 = vsub.f32 %v6052_v39, %v2635_v52  ;;  %v2350_v45 = vsub.f32 %v6049_v16, %v2340_v51 }
 0xc88   :  { %v6147_v43 = vpop.eup %4572  ;;  %v2655_v34 = vmul.f32 1.442695, %v2647_v18  ;;  %v2359_v36 = vmul.f32 1.442695, %v2350_v45 }
 0xc89   :  { %v2666_v37 = vsel %vm446_vm7, %v6147_v43, 0.0  ;;  %v6154_v5 = vpop.eup %4574 }
 0xc8a   :  { %2667 = vadd.xlane.f32.xlu2 %v2666_v37  ;;  %2369 = vadd.xlane.f32.xlu1 %v2368_v49  ;;  %4576 = vpow2.f32 %v2655_v34  ;;  %v2371_v11 = vsel %vm446_vm7, %v6154_v5, 0.0 }
 0xc8b   :  { %4578 = vpow2.f32 %v2359_v36 }
 0xc8d   :  { %v2638_v21 = vpop.xlane.xlu0 %2637  ;;  %v2343_v38 = vpop.xlane.xlu2 %2342 }
 0xc8e   :  { %v2648_v39 = vsub.f32 %v6061_v29, %v2638_v21  ;;  %v2351_v16 = vsub.f32 %v6058_v32, %v2343_v38 }
 0xc90   :  { %v2657_v14 = vmul.f32 1.442695, %v2648_v39  ;;  %v6158_v19 = vpop.eup %4576  ;;  %v2361_v56 = vmul.f32 1.442695, %v2351_v16 }
 0xc91   :  { %v2669_v58 = vsel %vm446_vm7, %v6158_v19, 0.0  ;;  %v6164_v25 = vpop.eup %4578 }
 0xc92   :  { %4580 = vpow2.f32 %v2657_v14  ;;  %2372 = vadd.xlane.f32.xlu1 %v2371_v11  ;;  %2670 = vadd.xlane.f32.xlu2 %v2669_v58  ;;  %v2374_v30 = vsel %vm446_vm7, %v6164_v25, 0.0 }
 0xc93   :  { %4582 = vpow2.f32 %v2361_v56 }
 0xc95   :  { %v2641_v33 = vpop.xlane.xlu1 %2640  ;;  %v2346_v27 = vpop.xlane.xlu0 %2345 }
 0xc96   :  { %v2649_v29 = vsub.f32 %v6069_v62, %v2641_v33  ;;  %v2352_v35 = vsub.f32 %v6067_v9, %v2346_v27 }
 0xc98   :  { %v6167_v1 = vpop.eup %4580  ;;  %v2659_v32 = vmul.f32 1.442695, %v2649_v29  ;;  %v2363_v59 = vmul.f32 1.442695, %v2352_v35 }
 0xc99   :  { %v2672_v60 = vsel %vm446_vm7, %v6167_v1, 0.0  ;;  %v6174_v2 = vpop.eup %4582 }
 0xc9a   :  { %4584 = vpow2.f32 %v2659_v32  ;;  %2375 = vadd.xlane.f32.xlu1 %v2374_v30  ;;  %2673 = vadd.xlane.f32.xlu2 %v2672_v60  ;;  %v2377_v23 = vsel %vm446_vm7, %v6174_v2, 0.0 }
 0xc9b   :  { %4586 = vpow2.f32 %v2363_v59 }
 0xc9d   :  { %v2927_v12 = vpop.xlane.xlu1 %2926  ;;  %v2644_v4 = vpop.xlane.xlu2 %2643 }
 0xc9e   :  { %v2943_v62 = vsub.f32 %v6075_v8, %v2927_v12  ;;  %v2650_v0 = vsub.f32 %v6077_v6, %v2644_v4 }
 0xca0   :  { %v6178_v31 = vpop.eup %4584  ;;  %v2949_v9 = vmul.f32 1.442695, %v2943_v62  ;;  %v2661_v53 = vmul.f32 1.442695, %v2650_v0 }
 0xca1   :  { %v2675_v63 = vsel %vm446_vm7, %v6178_v31, 0.0  ;;  %v6184_v51 = vpop.eup %4586 }
 0xca2   :  { %4588 = vpow2.f32 %v2949_v9  ;;  %2378 = vadd.xlane.f32.xlu1 %v2377_v23  ;;  %2676 = vadd.xlane.f32.xlu2 %v2675_v63  ;;  %v2380_v18 = vsel %vm446_vm7, %v6184_v51, 0.0 }
 0xca3   :  { %4590 = vpow2.f32 %v2661_v53 }
 0xca5   :  { %v3225_v34 = vpop.xlane.xlu0 %3224 }
 0xca6   :  { %v3241_v56 = vsub.f32 %v6083_v15, %v3225_v34 }
 0xca8   :  { %v6186_v8 = vpop.eup %4588  ;;  %v3247_v29 = vmul.f32 1.442695, %v3241_v56 }
 0xca9   :  { %v6188_v6 = vpop.eup %4590  ;;  %v2961_v52 = vsel %vm446_vm7, %v6186_v8, 0.0 }
 0xcaa   :  { %2962 = vadd.xlane.f32.xlu0 %v2961_v52  ;;  %2381 = vadd.xlane.f32.xlu1 %v2380_v18  ;;  %v2678_v45 = vsel %vm446_vm7, %v6188_v6, 0.0 }
 0xcab   :  { %2679 = vadd.xlane.f32.xlu2 %v2678_v45 }
 0xcad   :  { %v3228_v37 = vpop.xlane.xlu2 %3227  ;;  %v6204_v39 = vpop.xlane.xlu1 %2935 }
 0xcae   :  { %v2930_v49 = vpop.xlane.xlu0 %2929  ;;  %v3242_v30 = vsub.f32 %v6092_v41, %v3228_v37 }
 0xcaf   :  { %v2944_v16 = vsub.f32 %v6087_v55, %v2930_v49 }
 0xcb0   :  { %v3249_v15 = vmul.f32 1.442695, %v3242_v30 }
 0xcb5   :  { %v2933_v36 = vpop.xlane.xlu2 %2932  ;;  %v2939_v32 = vpop.xlane.xlu1 %2938 }
 0xcb6   :  { %v3231_v21 = vpop.xlane.xlu0 %3230  ;;  %v2945_v14 = vsub.f32 %v6101_v48, %v2933_v36  ;;  %v2947_v60 = vsub.f32 %v6103_v28, %v2939_v32 }
 0xcb7   :  { %v3243_v41 = vsub.f32 %v6106_v3, %v3231_v21 }
 0xcb8   :  { %v2953_v11 = vmul.f32 1.442695, %v2945_v14  ;;  %v2957_v4 = vmul.f32 1.442695, %v2947_v60 }
 0xcb9   :  { %v3251_v52 = vmul.f32 1.442695, %v3243_v41 }
 0xcba   :  { %4592 = vpow2.f32 %v2953_v11 }
 0xcbd   :  { %v2942_v62 = vpop.xlane.xlu1 %2941 }
 0xcbe   :  { %4388 = vrot.lane.b32.xlu0 %v5946_v7, %s4796_s9  ;;  %v3234_v58 = vpop.xlane.xlu0 %3233  ;;  %v2948_v63 = vsub.f32 %v6114_v54, %v2942_v62 }
 0xcbf   :  { %v3244_v33 = vsub.f32 %v6117_v26, %v3234_v58 }
 0xcc0   :  { %v6213_v48 = vpop.eup %4592  ;;  %v2959_v37 = vmul.f32 1.442695, %v2948_v63 }
 0xcc1   :  { %v3253_v35 = vmul.f32 1.442695, %v3244_v33  ;;  %v2967_v26 = vsel %vm446_vm7, %v6213_v48, 0.0 }
 0xcc3   :  { %4393 = vrot.lane.b32.xlu2 %v5953_v47, %s4795_s8  ;;  %4383 = vrot.lane.b32.xlu1 %v5946_v7, %s4795_s8  ;;  %v2951_v7 = vmul.f32 1.442695, %v2944_v16 }
 0xcc5   :  { %4594 = vpow2.f32 %v2951_v7 }
 0xcc6   :  { %v6202_v38 = vpop.xlane.xlu2 %3236  ;;  %4596 = vpow2.f32 %v3247_v29 }
 0xcc7   :  { %4598 = vpow2.f32 %v3253_v35  ;;  %v3245_v54 = vsub.f32 %v6123_v57, %v6202_v38 }
 0xcc9   :  { %v3255_v7 = vmul.f32 1.442695, %v3245_v54 }
 0xccb   :  { %v6218_v59 = vpop.eup %4594 }
 0xccc   :  { %v6220_v12 = vpop.eup %4596  ;;  %v2964_v28 = vsel %vm446_vm7, %v6218_v59, 0.0 }
 0xccd   :  { %v6222_v0 = vpop.eup %4598  ;;  %v3259_v53 = vsel %vm446_vm7, %v6220_v12, 0.0 }
 0xcce   :  { %v6210_v27 = vpop.xlane.xlu2 %3239  ;;  %v3268_v45 = vsel %vm446_vm7, %v6222_v0, 0.0 }
 0xccf   :  { %v3246_v32 = vsub.f32 %v6127_v13, %v6210_v27 }
 0xce5   :  { %v2367_v55 = vpop.xlane.xlu2 %2366 }
 0xce6   :  { %4600 = vrcp.f32 %v2367_v55  ;;  %v2394_v34 = vand.u32 2147483648, %v2367_v55  ;;  %v2392_v36 = vand.u32 2147483647, %v2367_v55  ;;  %vm2388_vm4 = vweird.f32 %v2367_v55 }
 0xce7   :  { %4602 = vpow2.f32 %v3249_v15 }
 0xce8   :  { %2968 = vadd.xlane.f32.xlu0 %v2967_v26  ;;  %4604 = vpow2.f32 %v2957_v4  ;;  %v2395_v16 = vor.u32 1.1754944e-38, %v2394_v34  ;;  %vm2393_vm8 = vcmp.eq.f32.partialorder %v2392_v36, 8.507059e+37 }
 0xce9   :  { %4606 = vpow2.f32 %v3251_v52 }
 0xcea   :  { %4608 = vpow2.f32 %v2959_v37 }
 0xcec   :  { %v4601_v9 = vpop.eup %4600  ;;  %2965 = vadd.xlane.f32.xlu2 %v2964_v28 }
 0xced   :  { %v2384_v23 = vmul.f32 %v4601_v9, %v2367_v55  ;;  %3260 = vadd.xlane.f32.xlu1 %v3259_v53  ;;  %v6232_v3 = vpop.eup %4602  ;;  %vm2389_vm3 = vweird.f32 %v4601_v9 }
 0xcee   :  { %v6236_v14 = vpop.eup %4604  ;;  %vm2390_vm5 = vmor %vm2388_vm4, %vm2389_vm3  ;;  %v3262_v11 = vsel %vm446_vm7, %v6232_v3, 0.0 }
 0xcef   :  { %v2385_v18 = vsub.f32 1.0, %v2384_v23  ;;  %v2973_v57 = vsel %vm446_vm7, %v6236_v14, 0.0  ;;  %v6243_v29 = vpop.eup %4606 }
 0xcf0   :  { %3269 = vadd.xlane.f32.xlu0 %v3268_v45  ;;  %v6248_v35 = vpop.eup %4608  ;;  %v3265_v55 = vsel %vm446_vm7, %v6243_v29, 0.0 }
 0xcf1   :  { %v2386_v49 = vmul.f32 %v4601_v9, %v2385_v18  ;;  %v2976_v13 = vsel %vm446_vm7, %v6248_v35, 0.0 }
 0xcf3   :  { %v2387_v21 = vadd.f32 %v4601_v9, %v2386_v49 }
 0xcf5   :  { %v2391_v58 = vsel %vm2390_vm5, %v4601_v9, %v2387_v21  ;;  %v2665_v56 = vpop.xlane.xlu1 %2664  ;;  %3263 = vadd.xlane.f32.xlu1 %v3262_v11 }
 0xcf6   :  { %v2396_v33 = vsel %vm2393_vm8, %v2395_v16, %v2391_v58  ;;  %4610 = vrcp.f32 %v2665_v56  ;;  %v2692_v27 = vand.u32 2147483648, %v2665_v56  ;;  %v2690_v28 = vand.u32 2147483647, %v2665_v56 }
 0xcf7   :  { %v2397_v38 = vmul.f32 %v6132_v20, %v2396_v33  ;;  %4612 = vpow2.f32 %v3255_v7  ;;  %v3257_v20 = vmul.f32 1.442695, %v3246_v32  ;;  %vm2686_vm10 = vweird.f32 %v2665_v56 }
 0xcf8   :  { %2974 = vadd.xlane.f32.xlu0 %v2973_v57  ;;  %v2693_v63 = vor.u32 1.1754944e-38, %v2692_v27  ;;  %vm2691_vm12 = vcmp.eq.f32.partialorder %v2690_v28, 8.507059e+37 }
 0xcf9   :  { %4187 = vmatmul.msk.f32.vlgmr.msrb.gmra.mxu2 %vm446_vm7, %v2397_v38 }
 0xcfc   :  { %v4611_v30 = vpop.eup %4610 }
 0xcfd   :  { %v2682_v60 = vmul.f32 %v4611_v30, %v2665_v56  ;;  %v2370_v15 = vpop.xlane.xlu1 %2369  ;;  %3266 = vadd.xlane.f32.xlu1 %v3265_v55  ;;  %v6252_v26 = vpop.xlane.xlu2 %2667  ;;  %vm2687_vm9 = vweird.f32 %v4611_v30 }
 0xcfe   :  { %4614 = vrcp.f32 %v2370_v15  ;;  %v6257_v62 = vpop.eup %4612  ;;  %vm2688_vm11 = vmor %vm2686_vm10, %vm2687_vm9  ;;  %v2409_v16 = vand.u32 2147483648, %v2370_v15  ;;  %v2407_v58 = vand.u32 2147483647, %v2370_v15  ;;  %vm2403_vm0 = vweird.f32 %v2370_v15 }
 0xcff   :  { %v2683_v4 = vsub.f32 1.0, %v2682_v60  ;;  %4616 = vrcp.f32 %v6252_v26  ;;  %v3271_v23 = vsel %vm446_vm7, %v6257_v62, 0.0  ;;  %v2705_v32 = vand.u32 2147483647, %v6252_v26 }
 0xd00   :  { %2977 = vadd.xlane.f32.xlu0 %v2976_v13  ;;  %4618 = vpow2.f32 %v3257_v20  ;;  %vm2408_vm3 = vcmp.eq.f32.partialorder %v2407_v58, 8.507059e+37  ;;  %vm2701_vm5 = vweird.f32 %v6252_v26 }
 0xd01   :  { %v2684_v41 = vmul.f32 %v4611_v30, %v2683_v4  ;;  %vm2706_vm9 = vcmp.eq.f32.partialorder %v2705_v32, 8.507059e+37 }
 0xd03   :  { %v2685_v9 = vadd.f32 %v4611_v30, %v2684_v41 }
 0xd04   :  { %v4615_v53 = vpop.eup %4614  ;;  %4398 = vrot.lane.b32.xlu2 %v5953_v47, %s4796_s9 }
 0xd05   :  { %v4617_v52 = vpop.eup %4616  ;;  %v2689_v18 = vsel %vm2688_vm11, %v4611_v30, %v2685_v9  ;;  %v2399_v45 = vmul.f32 %v4615_v53, %v2370_v15  ;;  %v6263_v34 = vpop.xlane.xlu1 %2372  ;;  %3272 = vadd.xlane.f32.xlu1 %v3271_v23  ;;  %vm2404_vm15 = vweird.f32 %v4615_v53  ;;  %v2707_v30 = vand.u32 2147483648, %v6252_v26 }
 0xd06   :  { %v2694_v37 = vsel %vm2691_vm12, %v2693_v63, %v2689_v18  ;;  %v2697_v49 = vmul.f32 %v4617_v52, %v6252_v26  ;;  %4620 = vrcp.f32 %v6263_v34  ;;  %v6267_v36 = vpop.xlane.xlu2 %2670  ;;  %v6270_v21 = vpop.eup %4618  ;;  %vm2405_vm2 = vmor %vm2403_vm0, %vm2404_vm15  ;;  %vm2702_vm4 = vweird.f32 %v4617_v52 }
 0xd07   :  { %v2695_v54 = vmul.f32 %v6139_v10, %v2694_v37  ;;  %v2400_v47 = vsub.f32 1.0, %v2399_v45  ;;  %4622 = vrcp.f32 %v6267_v36  ;;  %v3274_v7 = vsel %vm446_vm7, %v6270_v21, 0.0  ;;  %vm2703_vm8 = vmor %vm2701_vm5, %vm2702_vm4 }
 0xd08   :  { %v2698_v11 = vsub.f32 1.0, %v2697_v49  ;;  %v2410_v10 = vor.u32 1.1754944e-38, %v2409_v16  ;;  %v2708_v9 = vor.u32 1.1754944e-38, %v2707_v30  ;;  %v2946_v45 = vsub.f32 %v6090_v40, %v6204_v39 }
 0xd09   :  { %v2401_v56 = vmul.f32 %v4615_v53, %v2400_v47  ;;  %4205 = vmatmul.msk.f32.vlgmr.msrb.gmra.mxu3 %vm446_vm7, %v2695_v54  ;;  %vm2418_vm11 = vweird.f32 %v6263_v34  ;;  %v2424_v26 = vand.u32 2147483648, %v6263_v34  ;;  %v2422_v16 = vand.u32 2147483647, %v6263_v34 }
 0xd0a   :  { %v2699_v33 = vmul.f32 %v4617_v52, %v2698_v11  ;;  %v2722_v40 = vand.u32 2147483648, %v6267_v36  ;;  %vm2716_vm0 = vweird.f32 %v6267_v36 }
 0xd0b   :  { %v2402_v57 = vadd.f32 %v4615_v53, %v2401_v56 }
 0xd0c   :  { %v6276_v38 = vpop.eup %4620  ;;  %v2700_v55 = vadd.f32 %v4617_v52, %v2699_v33  ;;  %v2955_v33 = vmul.f32 1.442695, %v2946_v45  ;;  %v2723_v30 = vor.u32 1.1754944e-38, %v2722_v40 }
 0xd0d   :  { %v2414_v60 = vmul.f32 %v6276_v38, %v6263_v34  ;;  %v6282_v20 = vpop.xlane.xlu1 %2375  ;;  %3275 = vadd.xlane.f32.xlu1 %v3274_v7  ;;  %v2406_v15 = vsel %vm2405_vm2, %v4615_v53, %v2402_v57  ;;  %v4623_v4 = vpop.eup %4622  ;;  %vm2419_vm10 = vweird.f32 %v6276_v38  ;;  %v2425_v7 = vor.u32 1.1754944e-38, %v2424_v26 }
 0xd0e   :  { %4624 = vrcp.f32 %v6282_v20  ;;  %v6285_v13 = vpop.xlane.xlu2 %2673  ;;  %v2411_v27 = vsel %vm2408_vm3, %v2410_v10, %v2406_v15  ;;  %v2712_v28 = vmul.f32 %v4623_v4, %v6267_v36  ;;  %v2704_v18 = vsel %vm2703_vm8, %v4617_v52, %v2700_v55  ;;  %vm6307_vm12 = vmor %vm2418_vm11, %vm2419_vm10 }
 0xd0f   :  { %v2415_v41 = vsub.f32 1.0, %v2414_v60  ;;  %4626 = vrcp.f32 %v6285_v13  ;;  %v2412_v23 = vmul.f32 %v6144_v22, %v2411_v27  ;;  %v2709_v37 = vsel %vm2706_vm9, %v2708_v9, %v2704_v18 }
 0xd10   :  { %v2713_v63 = vsub.f32 1.0, %v2712_v28  ;;  %v2710_v54 = vmul.f32 %v6147_v43, %v2709_v37  ;;  %v2720_v22 = vand.u32 2147483647, %v6267_v36  ;;  %vm2717_vm15 = vweird.f32 %v4623_v4 }
 0xd11   :  { %v2416_v53 = vmul.f32 %v6276_v38, %v2415_v41  ;;  %4188 = vmatmul.msk.f32.gmra.mxu2 %vm446_vm7, %v2412_v23  ;;  %vm2423_vm2 = vcmp.eq.f32.partialorder %v2422_v16, 8.507059e+37  ;;  %vm2718_vm3 = vmor %vm2716_vm0, %vm2717_vm15  ;;  %v2439_v15 = vand.u32 2147483648, %v6282_v20  ;;  %v2735_v28 = vand.u32 2147483647, %v6285_v13 }
 0xd12   :  { %v2714_v49 = vmul.f32 %v4623_v4, %v2713_v63  ;;  %4206 = vmatmul.msk.f32.gmra.mxu3 %vm446_vm7, %v2710_v54  ;;  %vm2721_vm4 = vcmp.eq.f32.partialorder %v2720_v22, 8.507059e+37  ;;  %v2737_v23 = vand.u32 2147483648, %v6285_v13  ;;  %vm2433_vm8 = vweird.f32 %v6282_v20 }
 0xd13   :  { %v2417_v47 = vadd.f32 %v6276_v38, %v2416_v53  ;;  %v2437_v37 = vand.u32 2147483647, %v6282_v20  ;;  %vm2731_vm9 = vweird.f32 %v6285_v13  ;;  %vm6352_vm10 = vcmp.eq.f32.partialorder %v2735_v28, 8.507059e+37 }
 0xd14   :  { %v6301_v11 = vpop.eup %4624  ;;  %v2715_v58 = vadd.f32 %v4623_v4, %v2714_v49  ;;  %v2738_v39 = vor.u32 1.1754944e-38, %v2737_v23 }
 0xd15   :  { %v6311_v52 = vpop.eup %4626  ;;  %v2429_v43 = vmul.f32 %v6301_v11, %v6282_v20  ;;  %v6316_v34 = vpop.xlane.xlu1 %2378  ;;  %v2421_v56 = vsel %vm6307_vm12, %v6276_v38, %v2417_v47  ;;  %vm2434_vm5 = vweird.f32 %v6301_v11  ;;  %vm2438_vm15 = vcmp.eq.f32.partialorder %v2437_v37, 8.507059e+37 }
 0xd16   :  { %v2727_v57 = vmul.f32 %v6311_v52, %v6285_v13  ;;  %4628 = vrcp.f32 %v6316_v34  ;;  %v6324_v10 = vpop.xlane.xlu2 %2676  ;;  %v2426_v38 = vsel %vm2423_vm2, %v2425_v7, %v2421_v56  ;;  %v2719_v41 = vsel %vm2718_vm3, %v4623_v4, %v2715_v58  ;;  %vm6368_vm12 = vmor %vm2433_vm8, %vm2434_vm5 }
 0xd17   :  { %v2430_v32 = vsub.f32 1.0, %v2429_v43  ;;  %4630 = vrcp.f32 %v6324_v10  ;;  %v2427_v27 = vmul.f32 %v6154_v5, %v2426_v38  ;;  %v2724_v9 = vsel %vm2721_vm4, %v2723_v30, %v2719_v41 }
 0xd18   :  { %v2728_v55 = vsub.f32 1.0, %v2727_v57  ;;  %v2725_v53 = vmul.f32 %v6158_v19, %v2724_v9  ;;  %4632 = vpow2.f32 %v2955_v33  ;;  %v2440_v4 = vor.u32 1.1754944e-38, %v2439_v15 }
 0xd19   :  { %v2431_v60 = vmul.f32 %v6301_v11, %v2430_v32  ;;  %4189 = vmatmul.msk.f32.gmra.mxu2 %vm446_vm7, %v2427_v27  ;;  %vm2732_vm11 = vweird.f32 %v6311_v52  ;;  %v2454_v33 = vand.u32 2147483648, %v6316_v34  ;;  %vm2448_vm3 = vweird.f32 %v6316_v34 }
 0xd1a   :  { %v2729_v36 = vmul.f32 %v6311_v52, %v2728_v55  ;;  %4207 = vmatmul.msk.f32.gmra.mxu3 %vm446_vm7, %v2725_v53  ;;  %vm6383_vm2 = vmor %vm2731_vm9, %vm2732_vm11  ;;  %v2752_v32 = vand.u32 2147483648, %v6324_v10  ;;  %vm2746_vm5 = vweird.f32 %v6324_v10  ;;  %v2750_v15 = vand.u32 2147483647, %v6324_v10 }
 0xd1b   :  { %v2432_v18 = vadd.f32 %v6301_v11, %v2431_v60 }
 0xd1c   :  { %v6335_v63 = vpop.eup %4628  ;;  %v2730_v16 = vadd.f32 %v6311_v52, %v2729_v36 }
 0xd1d   :  { %v6340_v5 = vpop.eup %4630  ;;  %v2444_v45 = vmul.f32 %v6335_v63, %v6316_v34  ;;  %v6346_v19 = vpop.xlane.xlu0 %2962  ;;  %v2436_v43 = vsel %vm6368_vm12, %v6301_v11, %v2432_v18  ;;  %vm2449_vm0 = vweird.f32 %v6335_v63  ;;  %v2452_v11 = vand.u32 2147483647, %v6316_v34 }
 0xd1e   :  { %v6348_v26 = vpop.xlane.xlu1 %2381  ;;  %v2742_v54 = vmul.f32 %v6340_v5, %v6324_v10  ;;  %4634 = vrcp.f32 %v6346_v19  ;;  %v6359_v47 = vpop.xlane.xlu2 %2679  ;;  %vm2747_vm4 = vweird.f32 %v6340_v5  ;;  %v2441_v30 = vsel %vm2438_vm15, %v2440_v4, %v2436_v43  ;;  %vm6404_vm8 = vmor %vm2448_vm3, %vm2449_vm0 }
 0xd1f   :  { %v2445_v22 = vsub.f32 1.0, %v2444_v45  ;;  %4636 = vrcp.f32 %v6348_v26  ;;  %v6379_v20 = vpop.eup %4632  ;;  %v2734_v55 = vsel %vm6383_vm2, %v6311_v52, %v2730_v16  ;;  %v2442_v27 = vmul.f32 %v6164_v25, %v2441_v30  ;;  %vm6408_vm9 = vmor %vm2746_vm5, %vm2747_vm4 }
 0xd20   :  { %v2743_v58 = vsub.f32 1.0, %v2742_v54  ;;  %4638 = vrcp.f32 %v6359_v47  ;;  %v2455_v52 = vor.u32 1.1754944e-38, %v2454_v33  ;;  %v2739_v9 = vsel %vm6352_vm10, %v2738_v39, %v2734_v55 }
 0xd21   :  { %v2446_v56 = vmul.f32 %v6335_v63, %v2445_v22  ;;  %4190 = vmatmul.msk.f32.gmra.mxu2 %vm446_vm7, %v2442_v27  ;;  %v2740_v53 = vmul.f32 %v6167_v1, %v2739_v9  ;;  %vm2453_vm11 = vcmp.eq.f32.partialorder %v2452_v11, 8.507059e+37  ;;  %v2753_v18 = vor.u32 1.1754944e-38, %v2752_v32 }
 0xd22   :  { %v2744_v57 = vmul.f32 %v6340_v5, %v2743_v58  ;;  %vm2751_vm10 = vcmp.eq.f32.partialorder %v2750_v15, 8.507059e+37  ;;  %v2469_v49 = vand.u32 2147483648, %v6348_v26  ;;  %v2970_v16 = vsel %vm446_vm7, %v6379_v20, 0.0 }
 0xd23   :  { %v2447_v13 = vadd.f32 %v6335_v63, %v2446_v56  ;;  %4208 = vmatmul.msk.f32.gmra.mxu3 %vm446_vm7, %v2740_v53  ;;  %v2467_v40 = vand.u32 2147483647, %v6348_v26  ;;  %v2767_v43 = vand.u32 2147483648, %v6359_v47  ;;  %vm2463_vm0 = vweird.f32 %v6348_v26 }
 0xd24   :  { %v6396_v38 = vpop.eup %4634  ;;  %v2745_v60 = vadd.f32 %v6340_v5, %v2744_v57  ;;  %v2765_v56 = vand.u32 2147483647, %v6359_v47  ;;  %v2470_v57 = vor.u32 1.1754944e-38, %v2469_v49  ;;  %vm2761_vm2 = vweird.f32 %v6359_v47 }
 0xd25   :  { %v4637_v41 = vpop.eup %4636  ;;  %v2451_v10 = vsel %vm6404_vm8, %v6335_v63, %v2447_v13  ;;  %v2980_v4 = vmul.f32 %v6396_v38, %v6346_v19  ;;  %vm2468_vm5 = vcmp.eq.f32.partialorder %v2467_v40, 8.507059e+37  ;;  %v2768_v30 = vor.u32 1.1754944e-38, %v2767_v43 }
 0xd26   :  { %v4639_v25 = vpop.eup %4638  ;;  %v2459_v36 = vmul.f32 %v4637_v41, %v6348_v26  ;;  %v2749_v23 = vsel %vm6408_vm9, %v6340_v5, %v2745_v60  ;;  %v2456_v37 = vsel %vm2453_vm11, %v2455_v52, %v2451_v10  ;;  %vm2464_vm12 = vweird.f32 %v4637_v41  ;;  %v4394_v10 = vpop.permute.xlu2 %4393 }
 0xd27   :  { %v2757_v45 = vmul.f32 %v4639_v25, %v6359_v47  ;;  %v2754_v1 = vsel %vm2751_vm10, %v2753_v18, %v2749_v23  ;;  %v2457_v5 = vmul.f32 %v6174_v2, %v2456_v37  ;;  %v2981_v39 = vsub.f32 1.0, %v2980_v4  ;;  %vm2465_vm3 = vmor %vm2463_vm0, %vm2464_vm12 }
 0xd28   :  { %v2460_v63 = vsub.f32 1.0, %v2459_v36  ;;  %vm2762_vm15 = vweird.f32 %v4639_v25  ;;  %v2755_v33 = vmul.f32 %v6178_v31, %v2754_v1  ;;  %vm2766_vm8 = vcmp.eq.f32.partialorder %v2765_v56, 8.507059e+37 }
 0xd29   :  { %v2758_v54 = vsub.f32 1.0, %v2757_v45  ;;  %vm2763_vm4 = vmor %vm2761_vm2, %vm2762_vm15  ;;  %4191 = vmatmul.msk.f32.gmra.mxu2 %vm446_vm7, %v2457_v5  ;;  %v2982_v32 = vmul.f32 %v6396_v38, %v2981_v39  ;;  %vm2985_vm9 = vweird.f32 %v6396_v38  ;;  %v2990_v34 = vand.u32 2147483648, %v6346_v19 }
 0xd2a   :  { %v2461_v22 = vmul.f32 %v4637_v41, %v2460_v63  ;;  %vm2984_vm11 = vweird.f32 %v6346_v19  ;;  %v2988_v52 = vand.u32 2147483647, %v6346_v19  ;;  %v4395_v53 = vunpack.i.l.bf16 %v4394_v10 }
 0xd2b   :  { %v2759_v58 = vmul.f32 %v4639_v25, %v2758_v54  ;;  %4209 = vmatmul.msk.f32.gmra.mxu3 %vm446_vm7, %v2755_v33  ;;  %v2983_v15 = vadd.f32 %v6396_v38, %v2982_v32  ;;  %vm2986_vm10 = vmor %vm2984_vm11, %vm2985_vm9  ;;  %v4396_v23 = vunpack.i.h.bf16 %v4394_v10 }
 0xd2c   :  { %v2462_v7 = vadd.f32 %v4637_v41, %v2461_v22  ;;  %vm2989_vm12 = vcmp.eq.f32.partialorder %v2988_v52, 8.507059e+37 }
 0xd2d   :  { %v2760_v11 = vadd.f32 %v4639_v25, %v2759_v58  ;;  %2971 = vadd.xlane.f32.xlu2 %v2970_v16  ;;  %v2987_v9 = vsel %vm2986_vm10, %v6396_v38, %v2983_v15 }
 0xd2e   :  { %v2466_v2 = vsel %vm2465_vm3, %v4637_v41, %v2462_v7 }
 0xd2f   :  { %v2471_v26 = vsel %vm2468_vm5, %v2470_v57, %v2466_v2  ;;  %v2764_v55 = vsel %vm2763_vm4, %v4639_v25, %v2760_v11  ;;  %v2991_v25 = vor.u32 1.1754944e-38, %v2990_v34 }
 0xd30   :  { %v4389_v31 = vpop.permute.xlu0 %4388  ;;  %v2769_v60 = vsel %vm2766_vm8, %v2768_v30, %v2764_v55  ;;  %v2472_v47 = vmul.f32 %v6184_v51, %v2471_v26 }
 0xd31   :  { %v4390_v13 = vunpack.i.l.bf16 %v4389_v31  ;;  %v4391_v27 = vunpack.i.h.bf16 %v4389_v31  ;;  %v2770_v41 = vmul.f32 %v6188_v6, %v2769_v60  ;;  %v2992_v6 = vsel %vm2989_vm12, %v2991_v25, %v2987_v9 }
 0xd32   :  { %4192 = vmatmul.msk.f32.gmra.mxu2 %vm446_vm7, %v2472_v47  ;;  %v2993_v19 = vmul.f32 %v6186_v8, %v2992_v6 }
 0xd33   :  { %3415 = vmatpush.msra.mxu3 %v4390_v13 }
 0xd34   :  { %4210 = vmatmul.msk.f32.gmra.mxu3 %vm446_vm7, %v2770_v41 }
 0xd35   :  { %v4384_v28 = vpop.permute.xlu1 %4383  ;;  %3416 = vmatpush.msra.mxu3 %v4391_v27 }
 0xd36   :  { %v4385_v51 = vunpack.i.l.bf16 %v4384_v28  ;;  %v4386_v36 = vunpack.i.h.bf16 %v4384_v28 }
 0xd38   :  { %3117 = vmatpush.msra.mxu2 %v4385_v51 }
 0xd3a   :  { %3118 = vmatpush.msra.mxu2 %v4386_v36 }
 0xd3c   :  { %3119 = vmatpush.msra.mxu2 %v4395_v53 }
 0xd3e   :  { %3120 = vmatpush.msra.mxu2 %v4396_v23 }
 0xd3f   :  { %4223 = vmatmul.msk.f32.vlgmr.msra.gmra.mxu2 %vm446_vm7, %v2993_v19 }
 0xd5b   :  { %v6452_v18 = vpop.xlane.xlu0 %2968 }
 0xd5c   :  { %4640 = vrcp.f32 %v6452_v18  ;;  %vm3014_vm10 = vweird.f32 %v6452_v18  ;;  %v3018_v10 = vand.u32 2147483647, %v6452_v18  ;;  %v3020_v25 = vand.u32 2147483648, %v6452_v18 }
 0xd5f   :  { %v2966_v38 = vpop.xlane.xlu2 %2965 }
 0xd60   :  { %4642 = vrcp.f32 %v2966_v38  ;;  %v3261_v4 = vpop.xlane.xlu1 %3260  ;;  %vm2999_vm2 = vweird.f32 %v2966_v38  ;;  %v3003_v2 = vand.u32 2147483647, %v2966_v38  ;;  %v3005_v32 = vand.u32 2147483648, %v2966_v38 }
 0xd61   :  { %4644 = vrcp.f32 %v3261_v4  ;;  %v3288_v33 = vand.u32 2147483648, %v3261_v4  ;;  %v3286_v57 = vand.u32 2147483647, %v3261_v4  ;;  %vm3282_vm4 = vweird.f32 %v3261_v4 }
 0xd62   :  { %v6455_v45 = vpop.eup %4640  ;;  %vm3004_vm9 = vcmp.eq.f32.partialorder %v3003_v2, 8.507059e+37  ;;  %v3006_v34 = vor.u32 1.1754944e-38, %v3005_v32 }
 0xd63   :  { %v3010_v63 = vmul.f32 %v6455_v45, %v6452_v18  ;;  %v6461_v40 = vpop.xlane.xlu0 %3269  ;;  %v3289_v13 = vor.u32 1.1754944e-38, %v3288_v33  ;;  %vm3287_vm8 = vcmp.eq.f32.partialorder %v3286_v57, 8.507059e+37  ;;  %vm3015_vm11 = vweird.f32 %v6455_v45 }
 0xd65   :  { %v3011_v39 = vsub.f32 1.0, %v3010_v63 }
 0xd66   :  { %v4643_v37 = vpop.eup %4642 }
 0xd67   :  { %v4645_v49 = vpop.eup %4644  ;;  %v2995_v54 = vmul.f32 %v4643_v37, %v2966_v38  ;;  %v4399_v8 = vpop.permute.xlu2 %4398  ;;  %vm3000_vm15 = vweird.f32 %v4643_v37  ;;  %v3012_v30 = vmul.f32 %v6455_v45, %v3011_v39 }
 0xd68   :  { %v3278_v1 = vmul.f32 %v4645_v49, %v3261_v4  ;;  %v4400_v16 = vunpack.i.l.bf16 %v4399_v8  ;;  %v6459_v22 = vpop.xlane.xlu1 %3263  ;;  %v4401_v43 = vunpack.i.h.bf16 %v4399_v8  ;;  %vm3283_vm0 = vweird.f32 %v4645_v49  ;;  %vm6466_vm3 = vmor %vm2999_vm2, %vm3000_vm15 }
 0xd69   :  { %v2996_v5 = vsub.f32 1.0, %v2995_v54  ;;  %4646 = vrcp.f32 %v6459_v22  ;;  %vm3284_vm5 = vmor %vm3282_vm4, %vm3283_vm0  ;;  %v3013_v28 = vadd.f32 %v6455_v45, %v3012_v30  ;;  %v3303_v53 = vand.u32 2147483648, %v6459_v22 }
 0xd6a   :  { %v3279_v58 = vsub.f32 1.0, %v3278_v1  ;;  %3417 = vmatpush.msra.mxu3 %v4400_v16  ;;  %4648 = vrcp.f32 %v6461_v40  ;;  %vm6484_vm15 = vmor %vm3014_vm10, %vm3015_vm11  ;;  %v3301_v38 = vand.u32 2147483647, %v6459_v22  ;;  %vm3297_vm0 = vweird.f32 %v6459_v22 }
 0xd6b   :  { %v2997_v56 = vmul.f32 %v4643_v37, %v2996_v5  ;;  %v3304_v63 = vor.u32 1.1754944e-38, %v3303_v53 }
 0xd6c   :  { %v3280_v7 = vmul.f32 %v4645_v49, %v3279_v58  ;;  %3418 = vmatpush.msra.mxu3 %v4401_v43  ;;  %vm3302_vm4 = vcmp.eq.f32.partialorder %v3301_v38, 8.507059e+37 }
 0xd6d   :  { %v2998_v11 = vadd.f32 %v4643_v37, %v2997_v56 }
 0xd6e   :  { %v3281_v55 = vadd.f32 %v4645_v49, %v3280_v7 }
 0xd6f   :  { %v4647_v31 = vpop.eup %4646  ;;  %v3002_v27 = vsel %vm6466_vm3, %v4643_v37, %v2998_v11  ;;  %v3021_v37 = vor.u32 1.1754944e-38, %v3020_v25  ;;  %vm3019_vm3 = vcmp.eq.f32.partialorder %v3018_v10, 8.507059e+37 }
 0xd70   :  { %v3285_v60 = vsel %vm3284_vm5, %v4645_v49, %v3281_v55  ;;  %v3293_v47 = vmul.f32 %v4647_v31, %v6459_v22  ;;  %v3267_v15 = vpop.xlane.xlu1 %3266  ;;  %v6473_v52 = vpop.eup %4648  ;;  %v3007_v36 = vsel %vm3004_vm9, %v3006_v34, %v3002_v27  ;;  %vm3298_vm12 = vweird.f32 %v4647_v31 }
 0xd71   :  { %v3290_v41 = vsel %vm3287_vm8, %v3289_v13, %v3285_v60  ;;  %4650 = vrcp.f32 %v3267_v15  ;;  %v3008_v23 = vmul.f32 %v6218_v59, %v3007_v36  ;;  %v3017_v59 = vsel %vm6484_vm15, %v6455_v45, %v3013_v28  ;;  %vm3299_vm2 = vmor %vm3297_vm0, %vm3298_vm12 }
 0xd72   :  { %v3291_v51 = vmul.f32 %v6220_v12, %v3290_v41  ;;  %v3294_v9 = vsub.f32 1.0, %v3293_v47  ;;  %v3323_v12 = vmul.f32 %v6473_v52, %v6461_v40  ;;  %v3022_v16 = vsel %vm3019_vm3, %v3021_v37, %v3017_v59 }
 0xd73   :  { %4224 = vmatmul.msk.f32.gmra.mxu2 %vm446_vm7, %v3008_v23  ;;  %v3318_v43 = vand.u32 2147483648, %v3267_v15  ;;  %v3023_v45 = vmul.f32 %v6213_v48, %v3022_v16  ;;  %v3316_v33 = vand.u32 2147483647, %v3267_v15  ;;  %vm3312_vm8 = vweird.f32 %v3267_v15 }
 0xd74   :  { %v3295_v6 = vmul.f32 %v4647_v31, %v3294_v9  ;;  %4241 = vmatmul.msk.f32.vlgmr.msra.gmra.mxu3 %vm446_vm7, %v3291_v51  ;;  %v3324_v1 = vsub.f32 1.0, %v3323_v12  ;;  %vm3328_vm11 = vweird.f32 %v6473_v52  ;;  %v3333_v48 = vand.u32 2147483648, %v6461_v40 }
 0xd75   :  { %v3319_v11 = vor.u32 1.1754944e-38, %v3318_v43  ;;  %vm3317_vm10 = vcmp.eq.f32.partialorder %v3316_v33, 8.507059e+37  ;;  %vm3327_vm12 = vweird.f32 %v6461_v40 }
 0xd76   :  { %v3296_v4 = vadd.f32 %v4647_v31, %v3295_v6  ;;  %v3325_v56 = vmul.f32 %v6473_v52, %v3324_v1  ;;  %vm3329_vm15 = vmor %vm3327_vm12, %vm3328_vm11 }
 0xd77   :  { %v4651_v18 = vpop.eup %4650 }
 0xd78   :  { %v3308_v49 = vmul.f32 %v4651_v18, %v3267_v15  ;;  %v3273_v54 = vpop.xlane.xlu1 %3272  ;;  %v3300_v8 = vsel %vm3299_vm2, %v4647_v31, %v3296_v4  ;;  %vm3313_vm5 = vweird.f32 %v4651_v18  ;;  %v3326_v30 = vadd.f32 %v6473_v52, %v3325_v56  ;;  %v2975_v4 = vpop.xlane.xlu0 %2974 }
 0xd79   :  { %4652 = vrcp.f32 %v3273_v54  ;;  %v3305_v22 = vsel %vm3302_vm4, %v3304_v63, %v3300_v8  ;;  %vm3314_vm9 = vmor %vm3312_vm8, %vm3313_vm5  ;;  %v3331_v31 = vand.u32 2147483647, %v6461_v40  ;;  %v3334_v15 = vor.u32 1.1754944e-38, %v3333_v48 }
 0xd7a   :  { %v3309_v5 = vsub.f32 1.0, %v3308_v49  ;;  %v3306_v39 = vmul.f32 %v6232_v3, %v3305_v22  ;;  %v3330_v47 = vsel %vm3329_vm15, %v6473_v52, %v3326_v30  ;;  %v3348_v51 = vand.u32 2147483648, %v3273_v54 }
 0xd7b   :  { %4225 = vmatmul.msk.f32.gmra.mxu2 %vm446_vm7, %v3023_v45  ;;  %vm3332_vm0 = vcmp.eq.f32.partialorder %v3331_v31, 8.507059e+37  ;;  %vm3342_vm3 = vweird.f32 %v3273_v54  ;;  %v3346_v10 = vand.u32 2147483647, %v3273_v54  ;;  %v3050_v48 = vand.u32 2147483648, %v2975_v4 }
 0xd7c   :  { %v3310_v58 = vmul.f32 %v4651_v18, %v3309_v5  ;;  %4242 = vmatmul.msk.f32.gmra.mxu3 %vm446_vm7, %v3306_v39  ;;  %v3335_v41 = vsel %vm3332_vm0, %v3334_v15, %v3330_v47  ;;  %v3349_v36 = vor.u32 1.1754944e-38, %v3348_v51  ;;  %v6512_v6 = vpop.f32.mrf.mxu2  ;;  %v3048_v31 = vand.u32 2147483647, %v2975_v4 }
 0xd7d   :  { %v3336_v40 = vmul.f32 %v6222_v0, %v3335_v41  ;;  %vm3347_vm5 = vcmp.eq.f32.partialorder %v3346_v10, 8.507059e+37  ;;  %v3051_v15 = vor.u32 1.1754944e-38, %v3050_v48 }
 0xd7e   :  { %v3311_v7 = vadd.f32 %v4651_v18, %v3310_v58 }
 0xd7f   :  { %v4653_v57 = vpop.eup %4652 }
 0xd80   :  { %v3338_v2 = vmul.f32 %v4653_v57, %v3273_v54  ;;  %v3276_v32 = vpop.xlane.xlu1 %3275  ;;  %v3315_v3 = vsel %vm3314_vm9, %v4651_v18, %v3311_v7  ;;  %vm3343_vm2 = vweird.f32 %v4653_v57  ;;  %v2978_v8 = vpop.xlane.xlu0 %2977 }
 0xd81   :  { %4654 = vrcp.f32 %v3276_v32  ;;  %v3320_v55 = vsel %vm3317_vm10, %v3319_v11, %v3315_v3  ;;  %vm3344_vm4 = vmor %vm3342_vm3, %vm3343_vm2  ;;  %v3363_v19 = vand.u32 2147483648, %v3276_v32  ;;  %vm3357_vm9 = vweird.f32 %v3276_v32 }
 0xd82   :  { %v3339_v26 = vsub.f32 1.0, %v3338_v2  ;;  %v3321_v13 = vmul.f32 %v6243_v29, %v3320_v55  ;;  %v3361_v12 = vand.u32 2147483647, %v3276_v32  ;;  %4656 = vrcp.f32 %v2975_v4 }
 0xd83   :  { %v3364_v59 = vor.u32 1.1754944e-38, %v3363_v19  ;;  %v3065_v41 = vand.u32 2147483648, %v2978_v8 }
 0xd84   :  { %v3340_v60 = vmul.f32 %v4653_v57, %v3339_v26  ;;  %4243 = vmatmul.msk.f32.gmra.mxu3 %vm446_vm7, %v3321_v13  ;;  %vm3362_vm10 = vcmp.eq.f32.partialorder %v3361_v12, 8.507059e+37 }
 0xd85   :  { %v3066_v10 = vor.u32 1.1754944e-38, %v3065_v41 }
 0xd86   :  { %v3341_v28 = vadd.f32 %v4653_v57, %v3340_v60 }
 0xd87   :  { %v4655_v27 = vpop.eup %4654 }
 0xd88   :  { %v3353_v34 = vmul.f32 %v4655_v27, %v3276_v32  ;;  %v3345_v52 = vsel %vm3344_vm4, %v4653_v57, %v3341_v28  ;;  %vm3358_vm8 = vweird.f32 %v4655_v27  ;;  %vm3044_vm4 = vweird.f32 %v2975_v4 }
 0xd89   :  { %v3350_v53 = vsel %vm3347_vm5, %v3349_v36, %v3345_v52  ;;  %vm3359_vm11 = vmor %vm3357_vm9, %vm3358_vm8  ;;  %vm3049_vm8 = vcmp.eq.f32.partialorder %v3048_v31, 8.507059e+37  ;;  %v3063_v28 = vand.u32 2147483647, %v2978_v8 }
 0xd8a   :  { %v3354_v9 = vsub.f32 1.0, %v3353_v34  ;;  %v3351_v0 = vmul.f32 %v6257_v62, %v3350_v53  ;;  %v4657_v62 = vpop.eup %4656 }
 0xd8b   :  { %v3040_v16 = vmul.f32 %v4657_v62, %v2975_v4  ;;  %vm3045_vm0 = vweird.f32 %v4657_v62 }
 0xd8c   :  { %v2824_v29 = vpop.f32.mrf.mxu3  ;;  %v3355_v25 = vmul.f32 %v4655_v27, %v3354_v9  ;;  %4244 = vmatmul.msk.f32.gmra.mxu3 %vm446_vm7, %v3336_v40  ;;  %vm3046_vm5 = vmor %vm3044_vm4, %vm3045_vm0 }
 0xd8d   :  { %3444 = vrot.lane.b32.xlu2 %v2824_v29, %s4782_s21  ;;  %v3041_v22 = vsub.f32 1.0, %v3040_v16  ;;  %v3528_v16 = vld [vmem:[#allocation4 + $0x140] sm:$0xff] }
 0xd8e   :  { %v3356_v23 = vadd.f32 %v4655_v27, %v3355_v25 }
 0xd8f   :  { %v3042_v56 = vmul.f32 %v4657_v62, %v3041_v22 }
 0xd90   :  { %v3360_v38 = vsel %vm3359_vm11, %v4655_v27, %v3356_v23  ;;  %vm3059_vm11 = vweird.f32 %v2978_v8 }
 0xd91   :  { %v3365_v63 = vsel %vm3362_vm10, %v3364_v59, %v3360_v38  ;;  %v3043_v32 = vadd.f32 %v4657_v62, %v3042_v56 }
 0xd92   :  { %v3366_v49 = vmul.f32 %v6270_v21, %v3365_v63 }
 0xd93   :  { %v3047_v47 = vsel %vm3046_vm5, %v4657_v62, %v3043_v32  ;;  %v3530_v62 = vld [vmem:[#allocation4 + $0x150] sm:$0xff] }
 0xd94   :  { %4245 = vmatmul.msk.f32.gmra.mxu3 %vm446_vm7, %v3351_v0  ;;  %v6516_v18 = vpop.f32.mrf.mxu2  ;;  %v3052_v27 = vsel %vm3049_vm8, %v3051_v15, %v3047_v47 }
 0xd95   :  { %v2827_v37 = vpop.f32.mrf.mxu3  ;;  %v3053_v9 = vmul.f32 %v6236_v14, %v3052_v27 }
 0xd96   :  { %3446 = vrot.lane.b32.xlu2 %v2827_v37, %s4782_s21 }
 0xd9c   :  { %4246 = vmatmul.msk.f32.gmra.mxu3 %vm446_vm7, %v3366_v49  ;;  %v6521_v54 = vpop.f32.mrf.mxu2  ;;  %v3531_v49 = vld [vmem:[#allocation4 + $0x158] sm:$0xff] }
 0xd9d   :  { %v2830_v52 = vpop.f32.mrf.mxu3  ;;  %3564 = vmatpush.msrb.mxu0 %v3531_v49 }
 0xd9f   :  { %3565 = vmatpush.msrb.mxu0 %v3530_v62 }
 0xda0   :  { %v2972_v1 = vpop.xlane.xlu2 %2971 }
 0xda1   :  { %4658 = vrcp.f32 %v2972_v1  ;;  %v3035_v33 = vand.u32 2147483648, %v2972_v1  ;;  %v3033_v57 = vand.u32 2147483647, %v2972_v1  ;;  %vm3029_vm15 = vweird.f32 %v2972_v1 }
 0xda2   :  { %4660 = vrcp.f32 %v2978_v8 }
 0xda3   :  { %v3036_v2 = vor.u32 1.1754944e-38, %v3035_v33  ;;  %vm3034_vm3 = vcmp.eq.f32.partialorder %v3033_v57, 8.507059e+37 }
 0xda4   :  { %v6523_v43 = vpop.f32.mrf.mxu2 }
 0xda6   :  { %v2833_v36 = vpop.f32.mrf.mxu3 }
 0xda7   :  { %v4659_v5 = vpop.eup %4658 }
 0xda8   :  { %v3025_v39 = vmul.f32 %v4659_v5, %v2972_v1  ;;  %v4661_v58 = vpop.eup %4660  ;;  %vm3030_vm12 = vweird.f32 %v4659_v5  ;;  %v3529_v1 = vld [vmem:[#allocation4 + $0x148] sm:$0xff] }
 0xda9   :  { %v3055_v21 = vmul.f32 %v4661_v58, %v2978_v8  ;;  %vm3031_vm2 = vmor %vm3029_vm15, %vm3030_vm12  ;;  %vm3060_vm9 = vweird.f32 %v4661_v58  ;;  %vm3064_vm12 = vcmp.eq.f32.partialorder %v3063_v28, 8.507059e+37  ;;  %3566 = vmatpush.msrb.mxu0 %v3529_v1 }
 0xdaa   :  { %v3026_v45 = vsub.f32 1.0, %v3025_v39  ;;  %vm3061_vm10 = vmor %vm3059_vm11, %vm3060_vm9 }
 0xdab   :  { %v3056_v3 = vsub.f32 1.0, %v3055_v21  ;;  %3567 = vmatpush.msrb.mxu0 %v3528_v16 }
 0xdac   :  { %v3027_v7 = vmul.f32 %v4659_v5, %v3026_v45  ;;  %v6525_v26 = vpop.f32.mrf.mxu2 }
 0xdad   :  { %v3057_v60 = vmul.f32 %v4661_v58, %v3056_v3 }
 0xdae   :  { %v3028_v11 = vadd.f32 %v4659_v5, %v3027_v7  ;;  %v2836_v53 = vpop.f32.mrf.mxu3 }
 0xdaf   :  { %v3058_v34 = vadd.f32 %v4661_v58, %v3057_v60 }
 0xdb0   :  { %v3032_v30 = vsel %vm3031_vm2, %v4659_v5, %v3028_v11 }
 0xdb1   :  { %v3037_v55 = vsel %vm3034_vm3, %v3036_v2, %v3032_v30 }
 0xdb2   :  { %v3038_v13 = vmul.f32 %v6379_v20, %v3037_v55  ;;  %v3062_v20 = vsel %vm3061_vm10, %v4661_v58, %v3058_v34 }
 0xdb3   :  { %v3067_v40 = vsel %vm3064_vm12, %v3066_v10, %v3062_v20 }
 0xdb4   :  { %4226 = vmatmul.msk.f32.gmra.mxu2 %vm446_vm7, %v3038_v13  ;;  %v3068_v25 = vmul.f32 %v6248_v35, %v3067_v40 }
 0xdb5   :  { %v6529_v51 = vpop.f32.mrf.mxu2 }
 0xdb7   :  { %v2839_v23 = vpop.f32.mrf.mxu3 }
 0xdbc   :  { %4227 = vmatmul.msk.f32.gmra.mxu2 %vm446_vm7, %v3053_v9 }
 0xdc2   :  { %v3122_v29 = vpop.f32.mrf.mxu2 }
 0xdc3   :  { %3468 = vrot.lane.b32.xlu0 %v3122_v29, %s4797_s10 }
 0xdc4   :  { %4228 = vmatmul.msk.f32.gmra.mxu2 %vm446_vm7, %v3068_v25 }
 0xde7   :  { %v3445_v5 = vpop.permute.xlu2 %3444 }
 0xde8   :  { %v3510_v58 = vsel %vm380_vm6, %v6512_v6, %v3445_v5 }
 0xdf0   :  { %v3447_v39 = vpop.permute.xlu2 %3446 }
 0xdf1   :  { %v3511_v7 = vsel %vm380_vm6, %v6516_v18, %v3447_v39 }
 0xdf6   :  { %v3125_v14 = vpop.f32.mrf.mxu2 }
 0xdf7   :  { %v3420_v19 = vpop.f32.mrf.mxu3  ;;  %3470 = vrot.lane.b32.xlu0 %v3125_v14, %s4797_s10 }
 0xdf8   :  { %3492 = vrot.lane.b32.xlu1 %v3420_v19, %s4798_s11 }
 0xdfe   :  { %v3128_v0 = vpop.f32.mrf.mxu2 }
 0xdff   :  { %v3423_v12 = vpop.f32.mrf.mxu3  ;;  %3472 = vrot.lane.b32.xlu0 %v3128_v0, %s4797_s10 }
 0xe00   :  { %3448 = vrot.lane.b32.xlu1 %v2830_v52, %s4782_s21  ;;  %3494 = vrot.lane.b32.xlu2 %v3423_v12, %s4798_s11 }
 0xe07   :  { %v3426_v35 = vpop.f32.mrf.mxu3 }
 0xe08   :  { %3450 = vrot.lane.b32.xlu1 %v2833_v36, %s4782_s21  ;;  %3496 = vrot.lane.b32.xlu2 %v3426_v35, %s4798_s11 }
 0xe0f   :  { %v3429_v38 = vpop.f32.mrf.mxu3 }
 0xe10   :  { %3452 = vrot.lane.b32.xlu1 %v2836_v53, %s4782_s21  ;;  %3498 = vrot.lane.b32.xlu2 %v3429_v38, %s4798_s11 }
 0xe17   :  { %v3432_v4 = vpop.f32.mrf.mxu3 }
 0xe18   :  { %3454 = vrot.lane.b32.xlu1 %v2839_v23, %s4782_s21  ;;  %3500 = vrot.lane.b32.xlu2 %v3432_v4, %s4798_s11 }
 0xe1f   :  { %v3435_v59 = vpop.f32.mrf.mxu3 }
 0xe20   :  { %3502 = vrot.lane.b32.xlu2 %v3435_v59, %s4798_s11 }
 0xe35   :  { %v3469_v22 = vpop.permute.xlu0 %3468 }
 0xe36   :  { %v3516_v45 = vsel %vm1634_vm13, %v3510_v58, %v3469_v22 }
 0xe37   :  { %v3131_v37 = vpop.f32.mrf.mxu2 }
 0xe38   :  { %3474 = vrot.lane.b32.xlu0 %v3131_v37, %s4797_s10 }
 0xe3f   :  { %v3134_v63 = vpop.f32.mrf.mxu2 }
 0xe40   :  { %3476 = vrot.lane.b32.xlu0 %v3134_v63, %s4797_s10 }
 0xe47   :  { %v3137_v8 = vpop.f32.mrf.mxu2 }
 0xe48   :  { %3478 = vrot.lane.b32.xlu0 %v3137_v8, %s4797_s10 }
 0xe5a   :  { %v3495_v57 = vpop.permute.xlu2 %3494 }
 0xe62   :  { %v3497_v48 = vpop.permute.xlu2 %3496 }
 0xe69   :  { %v3471_v21 = vpop.permute.xlu0 %3470 }
 0xe6a   :  { %v3493_v56 = vpop.permute.xlu1 %3492  ;;  %v3517_v11 = vsel %vm1634_vm13, %v3511_v7, %v3471_v21  ;;  %v3499_v31 = vpop.permute.xlu2 %3498 }
 0xe6b   :  { %v3522_v33 = vsel %vm1641_vm14, %v3516_v45, %v3493_v56  ;;  %v3523_v32 = vsel %vm1641_vm14, %v3517_v11, %v3495_v57 }
 0xe6c   :  { %4247 = vmatmul.msk.f32.vlgmr.msrb.gmra.mxu0 %vm143_vm1, %v3522_v33 }
 0xe71   :  { %v3473_v3 = vpop.permute.xlu0 %3472 }
 0xe72   :  { %v3449_v2 = vpop.permute.xlu1 %3448 }
 0xe73   :  { %v3512_v6 = vsel %vm380_vm6, %v6521_v54, %v3449_v2  ;;  %v3501_v54 = vpop.permute.xlu2 %3500 }
 0xe74   :  { %4248 = vmatmul.msk.f32.gmra.mxu0 %vm143_vm1, %v3523_v32  ;;  %v3518_v30 = vsel %vm1634_vm13, %v3512_v6, %v3473_v3 }
 0xe75   :  { %v3524_v55 = vsel %vm1641_vm14, %v3518_v30, %v3497_v48 }
 0xe7a   :  { %v3451_v18 = vpop.permute.xlu1 %3450 }
 0xe7b   :  { %v3513_v13 = vsel %vm380_vm6, %v6523_v43, %v3451_v18  ;;  %v3503_v40 = vpop.permute.xlu2 %3502 }
 0xe7c   :  { %4249 = vmatmul.msk.f32.gmra.mxu0 %vm143_vm1, %v3524_v55 }
 0xe82   :  { %v3453_v27 = vpop.permute.xlu1 %3452 }
 0xe83   :  { %v3514_v34 = vsel %vm380_vm6, %v6525_v26, %v3453_v27  ;;  %v4413_v26 = vld [vmem:[#allocation6 + $0x6b] ss:$0 sm:$0xff] }
 0xe8a   :  { %v3455_v43 = vpop.permute.xlu1 %3454 }
 0xe8b   :  { %v3515_v20 = vsel %vm380_vm6, %v6529_v51, %v3455_v43 }
 0xeaa   :  { %v3475_v60 = vpop.permute.xlu0 %3474 }
 0xeab   :  { %v3519_v47 = vsel %vm1634_vm13, %v3513_v13, %v3475_v60 }
 0xeac   :  { %v3525_v15 = vsel %vm1641_vm14, %v3519_v47, %v3499_v31 }
 0xead   :  { %4250 = vmatmul.msk.f32.gmra.mxu0 %vm143_vm1, %v3525_v15 }
 0xeb2   :  { %v3477_v41 = vpop.permute.xlu0 %3476 }
 0xeb3   :  { %v3520_v28 = vsel %vm1634_vm13, %v3514_v34, %v3477_v41 }
 0xeb4   :  { %v3526_v9 = vsel %vm1641_vm14, %v3520_v28, %v3501_v54  ;;  %v3744_v28 = vld [vmem:[#allocation4 + $0x178] sm:$0xff] }
 0xeb5   :  { %4251 = vmatmul.msk.f32.gmra.mxu0 %vm143_vm1, %v3526_v9  ;;  %3777 = vmatpush.msrb.mxu2 %v3744_v28  ;;  %v3869_v28 = vld [vmem:[#allocation4 + $0x1f8] sm:$0xff] }
 0xeb6   :  { %3872 = vmatpush.msra.mxu1 %v3869_v28 }
 0xeba   :  { %v3479_v10 = vpop.permute.xlu0 %3478 }
 0xebb   :  { %v3521_v29 = vsel %vm1634_vm13, %v3515_v20, %v3479_v10  ;;  %v3743_v20 = vld [vmem:[#allocation4 + $0x170] sm:$0xff] }
 0xebc   :  { %v3527_v25 = vsel %vm1641_vm14, %v3521_v29, %v3503_v40  ;;  %3778 = vmatpush.msrb.mxu2 %v3743_v20  ;;  %v3742_v40 = vld [vmem:[#allocation4 + $0x168] sm:$0xff]  ;;  %v3741_v29 = vld [vmem:[#allocation4 + $0x160] sm:$0xff] }
 0xebd   :  { %4252 = vmatmul.msk.f32.gmra.mxu0 %vm143_vm1, %v3527_v25 }
 0xebe   :  { %3779 = vmatpush.msrb.mxu2 %v3742_v40 }
 0xec0   :  { %3780 = vmatpush.msrb.mxu2 %v3741_v29  ;;  %v3866_v29 = vld [vmem:[#allocation4 + $0x1e0] sm:$0xff] }
 0xee9   :  { %v3569_v52 = vpop.f32.mrf.mxu0 }
 0xeea   :  { %v3570_v36 = vadd.f32 %v4413_v26, %v3569_v52 }
 0xeec   :  { %v6582_v53 = vadd.f32 %v3570_v36, %v5773_v42 }
 0xeee   :  { %v3595_v23 = vsel %vm143_vm1, %v6582_v53, 0.0 }
 0xeef   :  { %3596 = vadd.xlane.f32.xlu1 %v3595_v23 }
 0xef1   :  { %v3572_v19 = vpop.f32.mrf.mxu0 }
 0xef2   :  { %v3573_v51 = vadd.f32 %v4413_v26, %v3572_v19 }
 0xef4   :  { %v6587_v14 = vadd.f32 %v3573_v51, %v5778_v61 }
 0xef6   :  { %v3598_v12 = vsel %vm143_vm1, %v6587_v14, 0.0 }
 0xef7   :  { %3599 = vadd.xlane.f32.xlu0 %v3598_v12 }
 0xef9   :  { %v3575_v0 = vpop.f32.mrf.mxu0 }
 0xefa   :  { %v3576_v35 = vadd.f32 %v4413_v26, %v3575_v0 }
 0xefc   :  { %v6592_v38 = vadd.f32 %v3576_v35, %v5783_v46 }
 0xefe   :  { %v3601_v42 = vsel %vm143_vm1, %v6592_v38, 0.0 }
 0xeff   :  { %3602 = vadd.xlane.f32.xlu2 %v3601_v42 }
 0xf2a   :  { %v3578_v4 = vpop.f32.mrf.mxu0 }
 0xf2b   :  { %v3579_v59 = vadd.f32 %v4413_v26, %v3578_v4 }
 0xf2d   :  { %v6597_v37 = vadd.f32 %v3579_v59, %v5788_v50 }
 0xf2f   :  { %v3604_v61 = vsel %vm143_vm1, %v6597_v37, 0.0 }
 0xf30   :  { %3605 = vadd.xlane.f32.xlu1 %v3604_v61 }
 0xf32   :  { %v3581_v63 = vpop.f32.mrf.mxu0 }
 0xf33   :  { %v3582_v49 = vadd.f32 %v4413_v26, %v3581_v63  ;;  %v6656_v63 = vld [vmem:[#allocation6 + $0x6c] ss:$0 sm:$0xff] }
 0xf35   :  { %v6602_v62 = vadd.f32 %v3582_v49, %v5793_v24 }
 0xf37   :  { %v3607_v46 = vsel %vm143_vm1, %v6602_v62, 0.0 }
 0xf38   :  { %3608 = vadd.xlane.f32.xlu0 %v3607_v46 }
 0xf3a   :  { %v3584_v8 = vpop.f32.mrf.mxu0 }
 0xf3b   :  { %v3585_v1 = vadd.f32 %v4413_v26, %v3584_v8  ;;  %v6658_v8 = vld [vmem:[#allocation6 + $0x6d] ss:$0 sm:$0xff] }
 0xf3d   :  { %v6607_v16 = vadd.f32 %v3585_v1, %v5798_v17 }
 0xf3f   :  { %v3610_v50 = vsel %vm143_vm1, %v6607_v16, 0.0 }
 0xf40   :  { %3611 = vadd.xlane.f32.xlu2 %v3610_v50 }
 0xf62   :  { %v3597_v5 = vpop.xlane.xlu1 %3596 }
 0xf63   :  { %v3613_v22 = vmul.f32 %v3597_v5, %v4855_v44 }
 0xf65   :  { %v6613_v39 = vsub.f32 %v6582_v53, %v3613_v22 }
 0xf67   :  { %v3625_v24 = vmul.f32 %v6613_v39, %v6613_v39 }
 0xf69   :  { %v3631_v58 = vsel %vm143_vm1, %v3625_v24, 0.0 }
 0xf6a   :  { %3632 = vadd.xlane.f32.xlu1 %v3631_v58  ;;  %v3600_v45 = vpop.xlane.xlu0 %3599 }
 0xf6b   :  { %v3614_v17 = vmul.f32 %v3600_v45, %v4855_v44 }
 0xf6d   :  { %v6620_v56 = vsub.f32 %v6587_v14, %v3614_v17 }
 0xf6f   :  { %v3626_v33 = vmul.f32 %v6620_v56, %v6620_v56 }
 0xf71   :  { %v3634_v21 = vsel %vm143_vm1, %v3626_v33, 0.0 }
 0xf72   :  { %v3603_v7 = vpop.xlane.xlu2 %3602  ;;  %3635 = vadd.xlane.f32.xlu0 %v3634_v21 }
 0xf73   :  { %v3615_v57 = vmul.f32 %v3603_v7, %v4855_v44 }
 0xf75   :  { %v6627_v11 = vsub.f32 %v6592_v38, %v3615_v57 }
 0xf77   :  { %v3627_v2 = vmul.f32 %v6627_v11, %v6627_v11 }
 0xf79   :  { %v3637_v32 = vsel %vm143_vm1, %v3627_v2, 0.0 }
 0xf7a   :  { %3638 = vadd.xlane.f32.xlu2 %v3637_v32 }
 0xfa3   :  { %v3606_v6 = vpop.xlane.xlu1 %3605 }
 0xfa4   :  { %v3616_v3 = vmul.f32 %v3606_v6, %v4855_v44 }
 0xfa6   :  { %v6634_v30 = vsub.f32 %v6597_v37, %v3616_v3 }
 0xfa8   :  { %v3628_v48 = vmul.f32 %v6634_v30, %v6634_v30 }
 0xfaa   :  { %v3640_v55 = vsel %vm143_vm1, %v3628_v48, 0.0 }
 0xfab   :  { %3641 = vadd.xlane.f32.xlu1 %v3640_v55  ;;  %v3609_v18 = vpop.xlane.xlu0 %3608 }
 0xfac   :  { %v3617_v31 = vmul.f32 %v3609_v18, %v4855_v44 }
 0xfae   :  { %v6641_v13 = vsub.f32 %v6602_v62, %v3617_v31 }
 0xfb0   :  { %v3629_v60 = vmul.f32 %v6641_v13, %v6641_v13 }
 0xfb2   :  { %v3643_v47 = vsel %vm143_vm1, %v3629_v60, 0.0 }
 0xfb3   :  { %v3612_v15 = vpop.xlane.xlu2 %3611  ;;  %3644 = vadd.xlane.f32.xlu0 %v3643_v47 }
 0xfb4   :  { %v3618_v27 = vmul.f32 %v3612_v15, %v4855_v44 }
 0xfb6   :  { %v6648_v54 = vsub.f32 %v6607_v16, %v3618_v27 }
 0xfb8   :  { %v3630_v34 = vmul.f32 %v6648_v54, %v6648_v54 }
 0xfba   :  { %v3646_v41 = vsel %vm143_vm1, %v3630_v34, 0.0 }
 0xfbb   :  { %3647 = vadd.xlane.f32.xlu2 %v3646_v41 }
 0xfdd   :  { %v3633_v9 = vpop.xlane.xlu1 %3632 }
 0xfde   :  { %v3649_v43 = vmul.f32 %v3633_v9, %v4855_v44 }
 0xfe0   :  { %v3655_v10 = vadd.f32 1e-06, %v3649_v43  ;;  %v3867_v43 = vld [vmem:[#allocation4 + $0x1e8] sm:$0xff] }
 0xfe2   :  { %4662 = vrsqrt.f32 %v3655_v10  ;;  %vm3667_vm7 = vweird.f32 %v3655_v10 }
 0xfe5   :  { %v3636_v25 = vpop.xlane.xlu0 %3635 }
 0xfe6   :  { %v3650_v26 = vmul.f32 %v3636_v25, %v4855_v44 }
 0xfe8   :  { %v4663_v52 = vpop.eup %4662  ;;  %v3656_v36 = vadd.f32 1e-06, %v3650_v26 }
 0xfe9   :  { %v3662_v23 = vmul.f32 %v4663_v52, %v3655_v10  ;;  %vm3668_vm6 = vweird.f32 %v4663_v52 }
 0xfea   :  { %4664 = vrsqrt.f32 %v3656_v36  ;;  %vm3669_vm13 = vmor %vm3667_vm7, %vm3668_vm6  ;;  %vm3677_vm15 = vweird.f32 %v3656_v36 }
 0xfeb   :  { %v3663_v19 = vmul.f32 %v4663_v52, %v3662_v23 }
 0xfed   :  { %v3664_v51 = vmul.f32 0.5, %v3663_v19  ;;  %v3639_v12 = vpop.xlane.xlu2 %3638 }
 0xfee   :  { %v3651_v0 = vmul.f32 %v3639_v12, %v4855_v44 }
 0xfef   :  { %v3665_v35 = vsub.f32 1.5, %v3664_v51 }
 0xff0   :  { %v4665_v42 = vpop.eup %4664  ;;  %v3657_v4 = vadd.f32 1e-06, %v3651_v0 }
 0xff1   :  { %v3666_v59 = vmul.f32 %v4663_v52, %v3665_v35  ;;  %v3672_v61 = vmul.f32 %v4665_v42, %v3656_v36  ;;  %vm3678_vm14 = vweird.f32 %v4665_v42 }
 0xff2   :  { %4666 = vrsqrt.f32 %v3657_v4  ;;  %vm3679_vm0 = vmor %vm3677_vm15, %vm3678_vm14  ;;  %vm3687_vm3 = vweird.f32 %v3657_v4 }
 0xff3   :  { %v3670_v49 = vsel %vm3669_vm13, %v4663_v52, %v3666_v59  ;;  %v3673_v46 = vmul.f32 %v4665_v42, %v3672_v61 }
 0xff4   :  { %v3721_v1 = vmul.f32 %v3670_v49, %v6613_v39 }
 0xff5   :  { %v3674_v50 = vmul.f32 0.5, %v3673_v46 }
 0xff6   :  { %v3728_v5 = vmul.f32 %v6656_v63, %v3721_v1 }
 0xff7   :  { %v3675_v22 = vsub.f32 1.5, %v3674_v50 }
 0xff8   :  { %v4667_v24 = vpop.eup %4666  ;;  %v3735_v58 = vadd.f32 %v6658_v8, %v3728_v5 }
 0xff9   :  { %v3676_v45 = vmul.f32 %v4665_v42, %v3675_v22  ;;  %v3682_v17 = vmul.f32 %v4667_v24, %v3657_v4  ;;  %vm3688_vm2 = vweird.f32 %v4667_v24 }
 0xffa   :  { %4253 = vmatmul.msk.f32.vlgmr.msrb.gmra.mxu2 %vm143_vm1, %v3735_v58  ;;  %vm3689_vm4 = vmor %vm3687_vm3, %vm3688_vm2 }
 0xffb   :  { %v3680_v33 = vsel %vm3679_vm0, %v4665_v42, %v3676_v45  ;;  %v3683_v21 = vmul.f32 %v4667_v24, %v3682_v17 }
 0xffc   :  { %v3722_v7 = vmul.f32 %v3680_v33, %v6620_v56 }
 0xffd   :  { %v3684_v57 = vmul.f32 0.5, %v3683_v21 }
 0xffe   :  { %v3729_v39 = vmul.f32 %v6656_v63, %v3722_v7  ;;  %v3864_v7 = vld [vmem:[#allocation4 + $0x1d0] sm:$0xff] }
 0xfff   :  { %v3685_v2 = vsub.f32 1.5, %v3684_v57  ;;  %v3863_v57 = vld [vmem:[#allocation4 + $0x1c8] sm:$0xff] }
0x1000   :  { %v3736_v32 = vadd.f32 %v6658_v8, %v3729_v39  ;;  %v3862_v39 = vld [vmem:[#allocation4 + $0x1c0] sm:$0xff] }
0x1001   :  { %v3686_v6 = vmul.f32 %v4667_v24, %v3685_v2  ;;  %v3861_v2 = vld [vmem:[#allocation4 + $0x1b8] sm:$0xff] }
0x1002   :  { %4254 = vmatmul.msk.f32.gmra.mxu2 %vm143_vm1, %v3736_v32  ;;  %v3860_v32 = vld [vmem:[#allocation4 + $0x1b0] sm:$0xff] }
0x1003   :  { %v3690_v3 = vsel %vm3689_vm4, %v4667_v24, %v3686_v6  ;;  %v3859_v6 = vld [vmem:[#allocation4 + $0x1a8] sm:$0xff] }
0x1004   :  { %v3723_v48 = vmul.f32 %v3690_v3, %v6627_v11  ;;  %v3868_v11 = vld [vmem:[#allocation4 + $0x1f0] sm:$0xff]  ;;  %v3855_v3 = vld [vmem:[#allocation4 + $0x188] sm:$0xff] }
0x1005   :  { %3873 = vmatpush.msra.mxu1 %v3868_v11 }
0x1006   :  { %v3730_v55 = vmul.f32 %v6656_v63, %v3723_v48  ;;  %v4416_v48 = vld [vmem:[#allocation6 + $0x6e] ss:$0 sm:$0xff] }
0x1007   :  { %3874 = vmatpush.msra.mxu1 %v3867_v43 }
0x1008   :  { %v3737_v18 = vadd.f32 %v6658_v8, %v3730_v55  ;;  %v3854_v55 = vld [vmem:[#allocation4 + $0x180] sm:$0xff] }
0x1009   :  { %3875 = vmatpush.msra.mxu1 %v3866_v29 }
0x100a   :  { %4255 = vmatmul.msk.f32.gmra.mxu2 %vm143_vm1, %v3737_v18 }
0x101e   :  { %v3642_v56 = vpop.xlane.xlu1 %3641 }
0x101f   :  { %v3652_v31 = vmul.f32 %v3642_v56, %v4855_v44 }
0x1021   :  { %v3658_v60 = vadd.f32 1e-06, %v3652_v31 }
0x1023   :  { %4668 = vrsqrt.f32 %v3658_v60  ;;  %vm3697_vm8 = vweird.f32 %v3658_v60 }
0x1026   :  { %v3645_v47 = vpop.xlane.xlu0 %3644 }
0x1027   :  { %v3653_v15 = vmul.f32 %v3645_v47, %v4855_v44 }
0x1029   :  { %v4669_v27 = vpop.eup %4668  ;;  %v3659_v34 = vadd.f32 1e-06, %v3653_v15 }
0x102a   :  { %v3692_v41 = vmul.f32 %v4669_v27, %v3658_v60  ;;  %vm3698_vm5 = vweird.f32 %v4669_v27 }
0x102b   :  { %4670 = vrsqrt.f32 %v3659_v34  ;;  %vm3699_vm9 = vmor %vm3697_vm8, %vm3698_vm5  ;;  %vm3707_vm10 = vweird.f32 %v3659_v34 }
0x102c   :  { %v3693_v9 = vmul.f32 %v4669_v27, %v3692_v41 }
0x102e   :  { %v3694_v20 = vmul.f32 0.5, %v3693_v9  ;;  %v3648_v10 = vpop.xlane.xlu2 %3647 }
0x102f   :  { %v3654_v40 = vmul.f32 %v3648_v10, %v4855_v44 }
0x1030   :  { %v3695_v25 = vsub.f32 1.5, %v3694_v20 }
0x1031   :  { %v4671_v26 = vpop.eup %4670  ;;  %v3660_v52 = vadd.f32 1e-06, %v3654_v40 }
0x1032   :  { %v3696_v36 = vmul.f32 %v4669_v27, %v3695_v25  ;;  %v3702_v23 = vmul.f32 %v4671_v26, %v3659_v34  ;;  %vm3708_vm11 = vweird.f32 %v4671_v26 }
0x1033   :  { %4672 = vrsqrt.f32 %v3660_v52  ;;  %vm3709_vm12 = vmor %vm3707_vm10, %vm3708_vm11  ;;  %vm3717_vm7 = vweird.f32 %v3660_v52 }
0x1034   :  { %v3700_v19 = vsel %vm3699_vm9, %v4669_v27, %v3696_v36  ;;  %v3703_v51 = vmul.f32 %v4671_v26, %v3702_v23 }
0x1035   :  { %v3724_v12 = vmul.f32 %v3700_v19, %v6634_v30 }
0x1036   :  { %v3704_v0 = vmul.f32 0.5, %v3703_v51 }
0x1037   :  { %v3731_v35 = vmul.f32 %v6656_v63, %v3724_v12 }
0x1038   :  { %v3705_v42 = vsub.f32 1.5, %v3704_v0 }
0x1039   :  { %v4673_v4 = vpop.eup %4672  ;;  %v3738_v59 = vadd.f32 %v6658_v8, %v3731_v35 }
0x103a   :  { %v3706_v61 = vmul.f32 %v4671_v26, %v3705_v42  ;;  %v3712_v49 = vmul.f32 %v4673_v4, %v3660_v52  ;;  %vm3718_vm6 = vweird.f32 %v4673_v4 }
0x103b   :  { %4256 = vmatmul.msk.f32.gmra.mxu2 %vm143_vm1, %v3738_v59  ;;  %vm3719_vm13 = vmor %vm3717_vm7, %vm3718_vm6 }
0x103c   :  { %v3710_v46 = vsel %vm3709_vm12, %v4671_v26, %v3706_v61  ;;  %v3713_v1 = vmul.f32 %v4673_v4, %v3712_v49 }
0x103d   :  { %v3725_v50 = vmul.f32 %v3710_v46, %v6641_v13  ;;  %v3865_v13 = vld [vmem:[#allocation4 + $0x1d8] sm:$0xff] }
0x103e   :  { %v3714_v5 = vmul.f32 0.5, %v3713_v1  ;;  %3876 = vmatpush.msra.mxu1 %v3865_v13 }
0x103f   :  { %v3732_v30 = vmul.f32 %v6656_v63, %v3725_v50 }
0x1040   :  { %v3715_v22 = vsub.f32 1.5, %v3714_v5  ;;  %3877 = vmatpush.msra.mxu1 %v3864_v7 }
0x1041   :  { %v3739_v24 = vadd.f32 %v6658_v8, %v3732_v30 }
0x1042   :  { %v3716_v58 = vmul.f32 %v4673_v4, %v3715_v22  ;;  %3878 = vmatpush.msra.mxu1 %v3863_v57 }
0x1043   :  { %4257 = vmatmul.msk.f32.gmra.mxu2 %vm143_vm1, %v3739_v24 }
0x1044   :  { %v3720_v45 = vsel %vm3719_vm13, %v4673_v4, %v3716_v58  ;;  %3879 = vmatpush.msra.mxu1 %v3862_v39 }
0x1045   :  { %v3726_v17 = vmul.f32 %v3720_v45, %v6648_v54  ;;  %v3858_v54 = vld [vmem:[#allocation4 + $0x1a0] sm:$0xff] }
0x1046   :  { %3880 = vmatpush.msra.mxu1 %v3861_v2 }
0x1047   :  { %v3733_v33 = vmul.f32 %v6656_v63, %v3726_v17  ;;  %v3857_v63 = vld [vmem:[#allocation4 + $0x198] sm:$0xff] }
0x1048   :  { %3881 = vmatpush.msra.mxu1 %v3860_v32 }
0x1049   :  { %v3740_v21 = vadd.f32 %v6658_v8, %v3733_v33  ;;  %v3856_v8 = vld [vmem:[#allocation4 + $0x190] sm:$0xff] }
0x104a   :  { %3882 = vmatpush.msra.mxu1 %v3859_v6 }
0x104b   :  { %4258 = vmatmul.msk.f32.gmra.mxu2 %vm143_vm1, %v3740_v21 }
0x104c   :  { %3883 = vmatpush.msra.mxu1 %v3858_v54 }
0x104e   :  { %3884 = vmatpush.msra.mxu1 %v3857_v63 }
0x1050   :  { %3885 = vmatpush.msra.mxu1 %v3856_v8 }
0x1052   :  { %3886 = vmatpush.msra.mxu1 %v3855_v3 }
0x1054   :  { %3887 = vmatpush.msra.mxu1 %v3854_v55 }
0x107d   :  { %v3782_v18 = vpop.f32.mrf.mxu2 }
0x107e   :  { %v3783_v56 = vadd.f32 %v4416_v48, %v3782_v18 }
0x1080   :  { %v3806_v31 = vmul.f32 0.044715, %v3783_v56  ;;  %v3800_v26 = vmul.f32 0.5, %v3783_v56 }
0x1082   :  { %v3812_v60 = vmul.f32 %v3806_v31, %v3783_v56 }
0x1084   :  { %v3818_v47 = vmul.f32 %v3812_v60, %v3783_v56 }
0x1085   :  { %v3785_v15 = vpop.f32.mrf.mxu2 }
0x1086   :  { %v3824_v27 = vadd.f32 %v3818_v47, %v3783_v56  ;;  %v3786_v34 = vadd.f32 %v4416_v48, %v3785_v15 }
0x1088   :  { %v3830_v41 = vmul.f32 0.7978846, %v3824_v27  ;;  %v3807_v28 = vmul.f32 0.044715, %v3786_v34  ;;  %v3801_v35 = vmul.f32 0.5, %v3786_v34 }
0x108a   :  { %4674 = vtanh.f32 %v3830_v41  ;;  %v3813_v11 = vmul.f32 %v3807_v28, %v3786_v34  ;;  %v4417_v28 = vld [vmem:[#allocation6 + $0x6f] ss:$0 sm:$0xff] }
0x108c   :  { %v3819_v9 = vmul.f32 %v3813_v11, %v3786_v34 }
0x108d   :  { %v3788_v43 = vpop.f32.mrf.mxu2 }
0x108e   :  { %v3789_v20 = vadd.f32 %v4416_v48, %v3788_v43  ;;  %v3825_v10 = vadd.f32 %v3819_v9, %v3786_v34 }
0x1090   :  { %v4675_v40 = vpop.eup %4674  ;;  %v3808_v29 = vmul.f32 0.044715, %v3789_v20  ;;  %v3831_v25 = vmul.f32 0.7978846, %v3825_v10  ;;  %v3802_v61 = vmul.f32 0.5, %v3789_v20 }
0x1091   :  { %v3842_v52 = vadd.f32 1.0, %v4675_v40 }
0x1092   :  { %4676 = vtanh.f32 %v3831_v25  ;;  %v3814_v36 = vmul.f32 %v3808_v29, %v3789_v20 }
0x1093   :  { %v3848_v23 = vmul.f32 %v3842_v52, %v3800_v26 }
0x1094   :  { %v3820_v19 = vmul.f32 %v3814_v36, %v3789_v20 }
0x1095   :  { %3888 = vmatmul.f32.vlgmr.msra.gmra.mxu1 %v3848_v23 }
0x1096   :  { %v3826_v51 = vadd.f32 %v3820_v19, %v3789_v20 }
0x1098   :  { %v4677_v12 = vpop.eup %4676  ;;  %v3832_v0 = vmul.f32 0.7978846, %v3826_v51 }
0x1099   :  { %v3843_v42 = vadd.f32 1.0, %v4677_v12 }
0x109a   :  { %4678 = vtanh.f32 %v3832_v0 }
0x109b   :  { %v3849_v4 = vmul.f32 %v3843_v42, %v3801_v35 }
0x109d   :  { %3891 = vmatmul.f32.gmra.mxu1 %v3849_v4 }
0x10a0   :  { %v4679_v59 = vpop.eup %4678 }
0x10a1   :  { %v3844_v49 = vadd.f32 1.0, %v4679_v59 }
0x10a3   :  { %v3850_v46 = vmul.f32 %v3844_v49, %v3802_v61 }
0x10a5   :  { %3894 = vmatmul.f32.gmra.mxu1 %v3850_v46 }
0x10be   :  { %v3791_v1 = vpop.f32.mrf.mxu2 }
0x10bf   :  { %v3792_v50 = vadd.f32 %v4416_v48, %v3791_v1 }
0x10c1   :  { %v3809_v5 = vmul.f32 0.044715, %v3792_v50  ;;  %v3803_v54 = vmul.f32 0.5, %v3792_v50 }
0x10c3   :  { %v3815_v30 = vmul.f32 %v3809_v5, %v3792_v50 }
0x10c5   :  { %v3821_v22 = vmul.f32 %v3815_v30, %v3792_v50 }
0x10c6   :  { %v3794_v24 = vpop.f32.mrf.mxu2 }
0x10c7   :  { %v3795_v58 = vadd.f32 %v4416_v48, %v3794_v24  ;;  %v3827_v45 = vadd.f32 %v3821_v22, %v3792_v50 }
0x10c9   :  { %v3810_v17 = vmul.f32 0.044715, %v3795_v58  ;;  %v3833_v33 = vmul.f32 0.7978846, %v3827_v45  ;;  %v3804_v60 = vmul.f32 0.5, %v3795_v58 }
0x10cb   :  { %4680 = vtanh.f32 %v3833_v33  ;;  %v3816_v21 = vmul.f32 %v3810_v17, %v3795_v58 }
0x10cd   :  { %v3822_v13 = vmul.f32 %v3816_v21, %v3795_v58 }
0x10ce   :  { %v3797_v7 = vpop.f32.mrf.mxu2 }
0x10cf   :  { %v3798_v57 = vadd.f32 %v4416_v48, %v3797_v7  ;;  %v3828_v39 = vadd.f32 %v3822_v13, %v3795_v58 }
0x10d1   :  { %v4681_v2 = vpop.eup %4680  ;;  %v3811_v32 = vmul.f32 0.044715, %v3798_v57  ;;  %v3834_v6 = vmul.f32 0.7978846, %v3828_v39  ;;  %v3805_v27 = vmul.f32 0.5, %v3798_v57 }
0x10d2   :  { %v3845_v63 = vadd.f32 1.0, %v4681_v2 }
0x10d3   :  { %4682 = vtanh.f32 %v3834_v6  ;;  %v3817_v8 = vmul.f32 %v3811_v32, %v3798_v57 }
0x10d4   :  { %v3851_v3 = vmul.f32 %v3845_v63, %v3803_v54 }
0x10d5   :  { %v3823_v55 = vmul.f32 %v3817_v8, %v3798_v57 }
0x10d6   :  { %3897 = vmatmul.f32.gmra.mxu1 %v3851_v3 }
0x10d7   :  { %v3829_v18 = vadd.f32 %v3823_v55, %v3798_v57 }
0x10d9   :  { %v4683_v56 = vpop.eup %4682  ;;  %v3835_v31 = vmul.f32 0.7978846, %v3829_v18 }
0x10da   :  { %v3846_v47 = vadd.f32 1.0, %v4683_v56 }
0x10db   :  { %4684 = vtanh.f32 %v3835_v31 }
0x10dc   :  { %v3852_v15 = vmul.f32 %v3846_v47, %v3804_v60 }
0x10de   :  { %3900 = vmatmul.f32.gmra.mxu1 %v3852_v15 }
0x10e1   :  { %v4685_v48 = vpop.eup %4684 }
0x10e2   :  { %v3847_v34 = vadd.f32 1.0, %v4685_v48 }
0x10e4   :  { %v3853_v41 = vmul.f32 %v3847_v34, %v3805_v27 }
0x10e6   :  { %3903 = vmatmul.f32.gmra.mxu1 %v3853_v41 }
0x1112   :  { %v3889_v11 = vpop.f32.mrf.mxu1 }
0x1113   :  { %v3890_v9 = vadd.f32 %v4417_v28, %v3889_v11 }
0x1115   :  { %v3907_v43 = vadd.f32 %v3890_v9, %v6582_v53 }
0x1117   :  { %v3915_v20 = vsel %vm143_vm1, %v3907_v43, 0.0 }
0x1118   :  { %3916 = vadd.xlane.f32.xlu1 %v3915_v20 }
0x111a   :  { %v3892_v10 = vpop.f32.mrf.mxu1 }
0x111b   :  { %v3893_v40 = vadd.f32 %v4417_v28, %v3892_v10 }
0x111d   :  { %v3908_v29 = vadd.f32 %v3893_v40, %v6587_v14 }
0x111f   :  { %v3918_v25 = vsel %vm143_vm1, %v3908_v29, 0.0 }
0x1120   :  { %3919 = vadd.xlane.f32.xlu0 %v3918_v25 }
0x1122   :  { %v3895_v26 = vpop.f32.mrf.mxu1 }
0x1123   :  { %v3896_v52 = vadd.f32 %v4417_v28, %v3895_v26  ;;  %v6734_v26 = vld [vmem:[#allocation6 + $0x70] ss:$0 sm:$0xff] }
0x1125   :  { %v3909_v36 = vadd.f32 %v3896_v52, %v6592_v38 }
0x1127   :  { %v3921_v23 = vsel %vm143_vm1, %v3909_v36, 0.0 }
0x1128   :  { %3922 = vadd.xlane.f32.xlu2 %v3921_v23  ;;  %v6736_v23 = vld [vmem:[#allocation6 + $0x71] ss:$0 sm:$0xff] }
0x1153   :  { %v3898_v19 = vpop.f32.mrf.mxu1 }
0x1154   :  { %v3899_v51 = vadd.f32 %v4417_v28, %v3898_v19 }
0x1156   :  { %v3910_v53 = vadd.f32 %v3899_v51, %v6597_v37 }
0x1158   :  { %v3924_v12 = vsel %vm143_vm1, %v3910_v53, 0.0 }
0x1159   :  { %3925 = vadd.xlane.f32.xlu1 %v3924_v12 }
0x115b   :  { %v3901_v0 = vpop.f32.mrf.mxu1 }
0x115c   :  { %v3902_v35 = vadd.f32 %v4417_v28, %v3901_v0 }
0x115e   :  { %v3911_v14 = vadd.f32 %v3902_v35, %v6602_v62 }
0x1160   :  { %v3927_v42 = vsel %vm143_vm1, %v3911_v14, 0.0 }
0x1161   :  { %3928 = vadd.xlane.f32.xlu0 %v3927_v42 }
0x1163   :  { %v3904_v4 = vpop.f32.mrf.mxu1 }
0x1164   :  { %v3905_v59 = vadd.f32 %v4417_v28, %v3904_v4 }
0x1166   :  { %v3912_v38 = vadd.f32 %v3905_v59, %v6607_v16 }
0x1168   :  { %v3930_v61 = vsel %vm143_vm1, %v3912_v38, 0.0 }
0x1169   :  { %3931 = vadd.xlane.f32.xlu2 %v3930_v61 }
0x118b   :  { %v3917_v49 = vpop.xlane.xlu1 %3916 }
0x118c   :  { %v3933_v37 = vmul.f32 %v3917_v49, %v4855_v44 }
0x118e   :  { %v3939_v46 = vsub.f32 %v3907_v43, %v3933_v37 }
0x1190   :  { %v3945_v1 = vmul.f32 %v3939_v46, %v3939_v46 }
0x1192   :  { %v3951_v50 = vsel %vm143_vm1, %v3945_v1, 0.0 }
0x1193   :  { %v3920_v5 = vpop.xlane.xlu0 %3919  ;;  %3952 = vadd.xlane.f32.xlu1 %v3951_v50 }
0x1194   :  { %v3934_v62 = vmul.f32 %v3920_v5, %v4855_v44 }
0x1196   :  { %v6702_v30 = vsub.f32 %v3908_v29, %v3934_v62 }
0x1198   :  { %v3946_v22 = vmul.f32 %v6702_v30, %v6702_v30 }
0x119a   :  { %v3954_v16 = vsel %vm143_vm1, %v3946_v22, 0.0 }
0x119b   :  { %v3923_v24 = vpop.xlane.xlu2 %3922  ;;  %3955 = vadd.xlane.f32.xlu0 %v3954_v16 }
0x119c   :  { %v3935_v58 = vmul.f32 %v3923_v24, %v4855_v44 }
0x119e   :  { %v6708_v45 = vsub.f32 %v3909_v36, %v3935_v58 }
0x11a0   :  { %v3947_v17 = vmul.f32 %v6708_v45, %v6708_v45 }
0x11a2   :  { %v3957_v33 = vsel %vm143_vm1, %v3947_v17, 0.0 }
0x11a3   :  { %3958 = vadd.xlane.f32.xlu2 %v3957_v33 }
0x11cc   :  { %v3926_v21 = vpop.xlane.xlu1 %3925 }
0x11cd   :  { %v3936_v13 = vmul.f32 %v3926_v21, %v4855_v44 }
0x11cf   :  { %v6714_v7 = vsub.f32 %v3910_v53, %v3936_v13 }
0x11d1   :  { %v3948_v57 = vmul.f32 %v6714_v7, %v6714_v7 }
0x11d3   :  { %v3960_v39 = vsel %vm143_vm1, %v3948_v57, 0.0 }
0x11d4   :  { %v3929_v2 = vpop.xlane.xlu0 %3928  ;;  %3961 = vadd.xlane.f32.xlu1 %v3960_v39 }
0x11d5   :  { %v3937_v32 = vmul.f32 %v3929_v2, %v4855_v44 }
0x11d7   :  { %v6720_v6 = vsub.f32 %v3911_v14, %v3937_v32 }
0x11d9   :  { %v3949_v54 = vmul.f32 %v6720_v6, %v6720_v6 }
0x11db   :  { %v3963_v63 = vsel %vm143_vm1, %v3949_v54, 0.0 }
0x11dc   :  { %v3932_v8 = vpop.xlane.xlu2 %3931  ;;  %3964 = vadd.xlane.f32.xlu0 %v3963_v63 }
0x11dd   :  { %v3938_v3 = vmul.f32 %v3932_v8, %v4855_v44 }
0x11df   :  { %v6726_v55 = vsub.f32 %v3912_v38, %v3938_v3 }
0x11e1   :  { %v3950_v18 = vmul.f32 %v6726_v55, %v6726_v55 }
0x11e3   :  { %v3966_v56 = vsel %vm143_vm1, %v3950_v18, 0.0 }
0x11e4   :  { %3967 = vadd.xlane.f32.xlu2 %v3966_v56 }
0x1206   :  { %v3953_v31 = vpop.xlane.xlu1 %3952 }
0x1207   :  { %v3969_v60 = vmul.f32 %v3953_v31, %v4855_v44 }
0x1209   :  { %v3975_v47 = vadd.f32 1e-06, %v3969_v60 }
0x120b   :  { %4686 = vrsqrt.f32 %v3975_v47  ;;  %vm3987_vm15 = vweird.f32 %v3975_v47 }
0x120e   :  { %v3956_v15 = vpop.xlane.xlu0 %3955 }
0x120f   :  { %v3970_v48 = vmul.f32 %v3956_v15, %v4855_v44 }
0x1211   :  { %v4687_v27 = vpop.eup %4686  ;;  %v3976_v34 = vadd.f32 1e-06, %v3970_v48 }
0x1212   :  { %v3982_v41 = vmul.f32 %v4687_v27, %v3975_v47  ;;  %vm3988_vm14 = vweird.f32 %v4687_v27 }
0x1213   :  { %4688 = vrsqrt.f32 %v3976_v34  ;;  %vm3989_vm0 = vmor %vm3987_vm15, %vm3988_vm14  ;;  %vm3997_vm3 = vweird.f32 %v3976_v34 }
0x1214   :  { %v3983_v28 = vmul.f32 %v4687_v27, %v3982_v41 }
0x1216   :  { %v3984_v11 = vmul.f32 0.5, %v3983_v28  ;;  %v3959_v9 = vpop.xlane.xlu2 %3958 }
0x1217   :  { %v3971_v43 = vmul.f32 %v3959_v9, %v4855_v44 }
0x1218   :  { %v3985_v20 = vsub.f32 1.5, %v3984_v11 }
0x1219   :  { %v4689_v10 = vpop.eup %4688  ;;  %v3977_v40 = vadd.f32 1e-06, %v3971_v43 }
0x121a   :  { %v3986_v29 = vmul.f32 %v4687_v27, %v3985_v20  ;;  %v3992_v25 = vmul.f32 %v4689_v10, %v3976_v34  ;;  %vm3998_vm2 = vweird.f32 %v4689_v10 }
0x121b   :  { %4690 = vrsqrt.f32 %v3977_v40  ;;  %vm3999_vm4 = vmor %vm3997_vm3, %vm3998_vm2  ;;  %vm4007_vm8 = vweird.f32 %v3977_v40 }
0x121c   :  { %v3990_v52 = vsel %vm3989_vm0, %v4687_v27, %v3986_v29  ;;  %v3993_v36 = vmul.f32 %v4689_v10, %v3992_v25 }
0x121d   :  { %v4041_v19 = vmul.f32 %v3990_v52, %v3939_v46 }
0x121e   :  { %v3994_v51 = vmul.f32 0.5, %v3993_v36 }
0x121f   :  { %v4048_v53 = vmul.f32 %v6734_v26, %v4041_v19 }
0x1220   :  { %v3995_v12 = vsub.f32 1.5, %v3994_v51 }
0x1221   :  { %v4691_v0 = vpop.eup %4690  ;;  %v4055_v35 = vadd.f32 %v6736_v23, %v4048_v53 }
0x1222   :  { %v3996_v14 = vmul.f32 %v4689_v10, %v3995_v12  ;;  %v4002_v42 = vmul.f32 %v4691_v0, %v3977_v40  ;;  %vm4008_vm5 = vweird.f32 %v4691_v0 }
0x1223   :  { %4061 = vst.msk [vmem:[%s6785_s3] sm:$0xff] %vm143_vm1, %v4055_v35  ;;  %vm4009_vm9 = vmor %vm4007_vm8, %vm4008_vm5 }
0x1224   :  { %v4000_v4 = vsel %vm3999_vm4, %v4689_v10, %v3996_v14  ;;  %v4003_v59 = vmul.f32 %v4691_v0, %v4002_v42 }
0x1225   :  { %v4042_v38 = vmul.f32 %v4000_v4, %v6702_v30 }
0x1226   :  { %v4004_v61 = vmul.f32 0.5, %v4003_v59 }
0x1227   :  { %v4049_v49 = vmul.f32 %v6734_v26, %v4042_v38 }
0x1228   :  { %v4005_v37 = vsub.f32 1.5, %v4004_v61 }
0x1229   :  { %v4056_v46 = vadd.f32 %v6736_v23, %v4049_v49 }
0x122a   :  { %v4006_v1 = vmul.f32 %v4691_v0, %v4005_v37 }
0x122b   :  { %4062 = vst.msk [vmem:[%s6785_s3 + $0x8] sm:$0xff] %vm143_vm1, %v4056_v46 }
0x122c   :  { %v4010_v50 = vsel %vm4009_vm9, %v4691_v0, %v4006_v1 }
0x122d   :  { %v4043_v5 = vmul.f32 %v4010_v50, %v6708_v45 }
0x122f   :  { %v4050_v62 = vmul.f32 %v6734_v26, %v4043_v5 }
0x1231   :  { %v4057_v30 = vadd.f32 %v6736_v23, %v4050_v62 }
0x1233   :  { %4063 = vst.msk [vmem:[%s6785_s3 + $0x10] sm:$0xff] %vm143_vm1, %v4057_v30 }
0x1247   :  { %v3962_v22 = vpop.xlane.xlu1 %3961 }
0x1248   :  { %v3972_v16 = vmul.f32 %v3962_v22, %v4855_v44 }
0x124a   :  { %v3978_v24 = vadd.f32 1e-06, %v3972_v16 }
0x124c   :  { %4692 = vrsqrt.f32 %v3978_v24  ;;  %vm4017_vm10 = vweird.f32 %v3978_v24 }
0x124f   :  { %v3965_v58 = vpop.xlane.xlu0 %3964 }
0x1250   :  { %v3973_v17 = vmul.f32 %v3965_v58, %v4855_v44 }
0x1252   :  { %v4693_v33 = vpop.eup %4692  ;;  %v3979_v21 = vadd.f32 1e-06, %v3973_v17 }
0x1253   :  { %v4012_v45 = vmul.f32 %v4693_v33, %v3978_v24  ;;  %vm4018_vm11 = vweird.f32 %v4693_v33 }
0x1254   :  { %4694 = vrsqrt.f32 %v3979_v21  ;;  %vm4019_vm12 = vmor %vm4017_vm10, %vm4018_vm11  ;;  %vm4027_vm7 = vweird.f32 %v3979_v21 }
0x1255   :  { %v4013_v13 = vmul.f32 %v4693_v33, %v4012_v45 }
0x1257   :  { %v4014_v57 = vmul.f32 0.5, %v4013_v13  ;;  %v3968_v39 = vpop.xlane.xlu2 %3967 }
0x1258   :  { %v3974_v2 = vmul.f32 %v3968_v39, %v4855_v44 }
0x1259   :  { %v4015_v32 = vsub.f32 1.5, %v4014_v57 }
0x125a   :  { %v4695_v54 = vpop.eup %4694  ;;  %v3980_v63 = vadd.f32 1e-06, %v3974_v2 }
0x125b   :  { %v4016_v8 = vmul.f32 %v4693_v33, %v4015_v32  ;;  %v4022_v3 = vmul.f32 %v4695_v54, %v3979_v21  ;;  %vm4028_vm6 = vweird.f32 %v4695_v54 }
0x125c   :  { %4696 = vrsqrt.f32 %v3980_v63  ;;  %vm4029_vm13 = vmor %vm4027_vm7, %vm4028_vm6  ;;  %vm4037_vm15 = vweird.f32 %v3980_v63 }
0x125d   :  { %v4020_v18 = vsel %vm4019_vm12, %v4693_v33, %v4016_v8  ;;  %v4023_v56 = vmul.f32 %v4695_v54, %v4022_v3 }
0x125e   :  { %v4044_v31 = vmul.f32 %v4020_v18, %v6714_v7 }
0x125f   :  { %v4024_v60 = vmul.f32 0.5, %v4023_v56 }
0x1260   :  { %v4051_v47 = vmul.f32 %v6734_v26, %v4044_v31 }
0x1261   :  { %v4025_v15 = vsub.f32 1.5, %v4024_v60 }
0x1262   :  { %v4697_v48 = vpop.eup %4696  ;;  %v4058_v44 = vadd.f32 %v6736_v23, %v4051_v47 }
0x1263   :  { %v4026_v27 = vmul.f32 %v4695_v54, %v4025_v15  ;;  %v4032_v34 = vmul.f32 %v4697_v48, %v3980_v63  ;;  %vm4038_vm14 = vweird.f32 %v4697_v48 }
0x1264   :  { %4064 = vst.msk [vmem:[%s6785_s3 + $0x18] sm:$0xff] %vm143_vm1, %v4058_v44  ;;  %vm4039_vm0 = vmor %vm4037_vm15, %vm4038_vm14 }
0x1265   :  { %v4030_v41 = vsel %vm4029_vm13, %v4695_v54, %v4026_v27  ;;  %v4033_v28 = vmul.f32 %v4697_v48, %v4032_v34 }
0x1266   :  { %v4045_v7 = vmul.f32 %v4030_v41, %v6720_v6 }
0x1267   :  { %v4034_v11 = vmul.f32 0.5, %v4033_v28 }
0x1268   :  { %v4052_v9 = vmul.f32 %v6734_v26, %v4045_v7 }
0x1269   :  { %v4035_v43 = vsub.f32 1.5, %v4034_v11 }
0x126a   :  { %v4059_v20 = vadd.f32 %v6736_v23, %v4052_v9 }
0x126b   :  { %v4036_v10 = vmul.f32 %v4697_v48, %v4035_v43 }
0x126c   :  { %4065 = vst.msk [vmem:[%s6785_s3 + $0x20] sm:$0xff] %vm143_vm1, %v4059_v20 }
0x126d   :  { %v4040_v40 = vsel %vm4039_vm0, %v4697_v48, %v4036_v10 }
0x126e   :  { %v4046_v29 = vmul.f32 %v4040_v40, %v6726_v55 }
0x1270   :  { %v4053_v6 = vmul.f32 %v6734_v26, %v4046_v29 }
0x1272   :  { %v4060_v25 = vadd.f32 %v6736_v23, %v4053_v6 }
0x1274   :  { %4066 = vst.msk [vmem:[%s6785_s3 + $0x28] sm:$0xff] %vm143_vm1, %v4060_v25 }
0x1275   :  { %4071 = vsyncpa [#allocation3], 1 }
0x1276   :  { %4072 = vsyncpa [#allocation5], 1 }

</bundles_post_ra>
